<compile_context>
chip_gen: v7x
topology: tpu7x:2x2x1
jax: 0.10.0
libtpu: 0.0.40
codegen_flags: <defaults>
</compile_context>

<pallas_src>
import math
import functools

import jax
import jax.numpy as jnp
from jax import lax
from jax.experimental import pallas as pl
from jax.experimental.pallas import tpu as pltpu


# ---------------- in-kernel helpers (pure jnp, traced inside the kernel) ----------------

def _layernorm(x, g, b, eps=1e-5):
    mu = jnp.mean(x, axis=-1, keepdims=True)
    var = jnp.mean(jnp.square(x - mu), axis=-1, keepdims=True)
    return (x - mu) * lax.rsqrt(var + eps) * g + b


def _mish(x):
    # mish(x) = x * tanh(softplus(x)); with t = 1 + e^x:
    #   tanh(log t) = (t^2 - 1) / (t^2 + 1)
    # -> a single exp per element instead of exp + log1p + tanh (EUP pressure /3).
    # Clamp the exponent: for x >= 20, mish(x) == x to f32 precision.
    t = 1.0 + jnp.exp(jnp.minimum(x, 20.0))
    t2 = t * t
    return x * (t2 - 1.0) / (t2 + 1.0)


def _entmax15_halved(z, n_iter=24):
    """1.5-entmax along the last axis; `z` must ALREADY be scores / 2.

    The exact sort-based threshold of the entmax package is replaced by a
    bisection on the threshold tau (equivalent to entmax_bisect(alpha=1.5)).
    n_iter-1 halvings of the unit search interval (2^-23 ~ 1e-7) converge to
    f32 resolution; the final midpoint is fused with the p recompute and the
    normalization (which absorbs any residual error in sum(p)).
    """
    z = z - jnp.max(z, axis=-1, keepdims=True)                 # max(z) == 0 after shift
    shp = z.shape[:-1] + (1,)
    lo = jnp.full(shp, -1.0, dtype=z.dtype)                    # sum(p) >= 1 at tau = -1
    hi = jnp.zeros(shp, dtype=z.dtype)                         # sum(p) <= 1 at tau = 0

    def body(_, carry):
        lo, hi = carry
        tau = 0.5 * (lo + hi)
        s = jnp.sum(jnp.square(jnp.maximum(z - tau, 0.0)), axis=-1, keepdims=True)
        gt = s > 1.0
        return jnp.where(gt, tau, lo), jnp.where(gt, hi, tau)

    lo, hi = lax.fori_loop(0, n_iter - 1, body, (lo, hi))
    # final bisection step fused with the p recompute + normalization
    tau = 0.5 * (lo + hi)
    p = jnp.square(jnp.maximum(z - tau, 0.0))
    denom = jnp.sum(p, axis=-1, keepdims=True)
    return p * pl.reciprocal(denom, approx=True)


# ---------------- the Pallas kernel ----------------

def encoder_kernel(x_ref,
                   ln1_g_ref, ln1_b_ref,
                   wqkv_ref, bqkv_ref, woh_ref, bo_ref,
                   ln2_g_ref, ln2_b_ref,
                   wu_ref, bu_ref, wd_ref, bd_ref,
                   out_ref, *, heads, n_iter):
    Bb, S, D = x_ref.shape                       # batch-tile, sequence, features
    hd = D // heads
    M = Bb * S

    # flatten the batch tile: all row-wise ops (LayerNorm, projections, FFN)
    # run on one (Bb*S, D) slab.  (leading-dim merge only -> no relayout)
    x = x_ref[...].astype(jnp.float32).reshape(M, D)

    # -------- attention sub-layer (pre-norm) --------
    y = _layernorm(x, ln1_g_ref[...], ln1_b_ref[...])
    # fused Q|K|V projection: one (M, D) x (D, 3D) bf16 matmul, f32 accumulation.
    # NOTE: 1/sqrt(hd) and entmax's 0.5 are pre-folded into the Q weight/bias.
    qkv = jnp.dot(y.astype(jnp.bfloat16), wqkv_ref[...],
                  preferred_element_type=jnp.float32) + bqkv_ref[...]

    def heads_stack(base):
        # (M, hd) lane slices -> (heads*Bb, S, hd), head-major along axis 0
        parts = [qkv[:, base + h * hd: base + (h + 1) * hd].reshape(Bb, S, hd)
                 for h in range(heads)]
        return jnp.concatenate(parts, axis=0)

    qh = heads_stack(0).astype(jnp.bfloat16)      # (G, S, hd), G = heads * Bb
    kh = heads_stack(D).astype(jnp.bfloat16)
    vh = heads_stack(2 * D).astype(jnp.bfloat16)

    # one batched score matmul + ONE entmax over all (batch, head) pairs;
    # q was pre-scaled so this einsum directly yields z = scores / 2.
    z = jnp.einsum("gqd,gkd->gqk", qh, kh,
                   preferred_element_type=jnp.float32)                  # (G, S, S)
    att = _entmax15_halved(z, n_iter=n_iter)
    ctx = jnp.einsum("gqk,gkd->gqd", att.astype(jnp.bfloat16), vh,
                     preferred_element_type=jnp.float32)                # (G, S, hd)

    # output projection: accumulate per-head (M,hd)x(hd,D) matmuls into one
    # (M, D) f32 slab -- no (heads, M, D) intermediate, no separate reduce.
    ctx = ctx.reshape(heads, M, hd)              # major-dim split/merge only
    attn_out = jnp.zeros((M, D), jnp.float32)
    for h in range(heads):
        attn_out = attn_out + jnp.dot(ctx[h].astype(jnp.bfloat16), woh_ref[h],
                                      preferred_element_type=jnp.float32)
    attn_out = attn_out + bo_ref[...]
    # TODO(synk): nn.Dropout is treated as identity (eval-mode semantics).
    x = x + attn_out

    # -------- feed-forward sub-layer (pre-norm) --------
    y = _layernorm(x, ln2_g_ref[...], ln2_b_ref[...])
    y = jnp.dot(y.astype(jnp.bfloat16), wu_ref[...],
                preferred_element_type=jnp.float32) + bu_ref[...]
    y = _mish(y)
    y = jnp.dot(y.astype(jnp.bfloat16), wd_ref[...],
                preferred_element_type=jnp.float32) + bd_ref[...]
    x = x + y

    out_ref[...] = x.reshape(Bb, S, D).astype(out_ref.dtype)


# ---------------- wrapper ----------------

_PACKED_ORDER = ["ln1_g", "ln1_b", "wqkv", "bqkv", "woh", "bo",
                 "ln2_g", "ln2_b", "w_up", "b_up", "w_down", "b_down"]


def _pack_params(params, heads):
    """Fuse Q/K/V weights (with the attention + entmax scale folded into Q),
    pre-split Wo by head, and pre-cast matmul weights to bf16 (host-side)."""
    D = params["wq"].shape[0]
    hd = D // heads
    q_scale = 0.5 / math.sqrt(hd)        # 1/sqrt(hd) attention scale * entmax 0.5
    bf = jnp.bfloat16
    wqkv = jnp.concatenate([params["wq"] * q_scale, params["wk"], params["wv"]], axis=1)
    bqkv = jnp.concatenate([params["bq"] * q_scale, params["bk"], params["bv"]], axis=1)
    return dict(
        ln1_g=params["an_g"].astype(jnp.float32), ln1_b=params["an_b"].astype(jnp.float32),
        wqkv=wqkv.astype(bf),
        bqkv=bqkv.astype(jnp.float32),
        woh=params["wo"].reshape(heads, hd, D).astype(bf),
        bo=params["bo"].astype(jnp.float32),
        ln2_g=params["fn_g"].astype(jnp.float32), ln2_b=params["fn_b"].astype(jnp.float32),
        w_up=params["w_up"].astype(bf), b_up=params["b_up"].astype(jnp.float32),
        w_down=params["w_down"].astype(bf), b_down=params["b_down"].astype(jnp.float32),
    )


def _vmem_limit_bytes():
    """Generation-aware scoped-VMEM limit: ~80% of physical capacity
    (v5e/v6e: 128 MiB -> ~102 MiB, v7x: 64 MiB/TC -> ~51 MiB)."""
    try:
        cap = int(pltpu.get_tpu_info().vmem_capacity_bytes)
    except Exception:
        cap = 64 * 1024 * 1024            # conservative default (v7x per-core)
    return max(32 * 1024 * 1024, int(cap * 0.80))


def _pick_block_b(B, S, D, heads, hidden, vmem_limit, weight_bytes):
    """Largest divisor of B whose per-step working set fits the VMEM budget,
    while keeping >= min(4, B) grid blocks (>= 2 pipelined steps per
    TensorCore on v7x; harmless elsewhere since per-step overhead ~0.35us)."""
    budget = vmem_limit - weight_bytes - (2 << 20)          # headroom
    f32, bf16 = 4, 2

    def footprint(bb):
        m = bb * S
        scores = 2 * bb * heads * S * S * f32               # z + att slabs
        qkv = m * 3 * D * f32 + 3 * bb * S * D * (f32 + bf16)
        ffn = m * hidden * f32
        io = 2 * 2 * bb * S * D * f32                       # double-buffered x/out
        misc = 3 * m * D * f32                              # x, ln, attn_out slabs
        return scores + qkv + ffn + io + misc

    divisors = [d for d in range(1, B + 1) if B % d == 0]
    par_ok = [d for d in divisors if B // d >= min(4, B)]
    max_bb_parallel = max(par_ok) if par_ok else 1
    best = 1
    for bb in divisors:
        if bb <= max_bb_parallel and footprint(bb) <= budget:
            best = max(best, bb)
    return best


def _const_imap(rank):
    zeros = (0,) * rank
    return lambda b: zeros


def _build_call(B, S, D, heads, block_b, param_args, dtype, n_iter, vmem_limit, mode):
    x_spec = pl.BlockSpec((block_b, S, D), lambda b: (b, 0, 0))
    if mode == "vmem_whole":
        # grid-invariant weights: whole array resident in VMEM, single copy
        # (no per-step DMA, no double-buffering).
        p_specs = [pl.BlockSpec(memory_space=pltpu.MemorySpace.VMEM)
                   for _ in param_args]
    elif mode == "blocked_single":
        # blocked whole-shape specs, but single-buffered (weights are
        # grid-invariant so double-buffering only wastes VMEM).
        p_specs = [pl.BlockSpec(a.shape, _const_imap(len(a.shape)),
                                pipeline_mode=pl.Buffered(1))
                   for a in param_args]
    else:
        # last-resort: plain whole-shape blocked specs (always supported).
        p_specs = [pl.BlockSpec(a.shape, _const_imap(len(a.shape)))
                   for a in param_args]
    return pl.pallas_call(
        functools.partial(encoder_kernel, heads=heads, n_iter=n_iter),
        out_shape=jax.ShapeDtypeStruct((B, S, D), dtype),
        grid=(B // block_b,),
        in_specs=[x_spec] + p_specs,
        out_specs=pl.BlockSpec((block_b, S, D), lambda b: (b, 0, 0)),
        compiler_params=pltpu.CompilerParams(
            dimension_semantics=("parallel",),
            vmem_limit_bytes=vmem_limit,
        ),
    )


def encoder_forward(x, params, heads, *, block_b=None, n_iter=24):
    B, S, D = x.shape
    assert D % heads == 0, "inputs must be divisible by head count"
    hidden = params["w_up"].shape[1]

    packed = _pack_params(params, heads)
    args = [x] + [packed[name] for name in _PACKED_ORDER]
    param_args = args[1:]
    weight_bytes = sum(int(a.size) * a.dtype.itemsize for a in param_args)

    vmem_limit = _vmem_limit_bytes()
    if block_b is None:
        block_b = _pick_block_b(B, S, D, heads, hidden, vmem_limit, weight_bytes)
    assert B % block_b == 0

    # Try the most VMEM-efficient operand-spec style first; fall back only on
    # spec-support / resource errors (the kernel itself is identical in every
    # mode, so a genuine kernel bug fails in all of them and is re-raised).
    errors = []
    for mode in ("vmem_whole", "blocked_single", "blocked"):
        try:
            call = _build_call(B, S, D, heads, block_b, param_args, x.dtype,
                               n_iter, vmem_limit, mode)
            return call(*args)
        except Exception as e:   # noqa: BLE001 - re-raised below if all modes fail
            errors.append(e)
    raise errors[-1]


# ---------------- deterministic parameter initialization ----------------

def init_params(key, inputs, hidden):
    def linear(k, fan_in, fan_out):
        k1, k2 = jax.random.split(k)
        bound = 1.0 / math.sqrt(fan_in)
        w = jax.random.uniform(k1, (fan_in, fan_out), jnp.float32, -bound, bound)
        b = jax.random.uniform(k2, (1, fan_out), jnp.float32, -bound, bound)
        return w, b

    keys = jax.random.split(key, 6)
    wq, bq = linear(keys[0], inputs, inputs)
    wk, bk = linear(keys[1], inputs, inputs)
    wv, bv = linear(keys[2], inputs, inputs)
    wo, bo = linear(keys[3], inputs, inputs)
    w_up, b_up = linear(keys[4], inputs, hidden)
    w_down, b_down = linear(keys[5], hidden, inputs)

    ones = lambda n: jnp.ones((1, n), jnp.float32)
    zeros = lambda n: jnp.zeros((1, n), jnp.float32)
    return dict(
        an_g=ones(inputs), an_b=zeros(inputs),
        wq=wq, bq=bq, wk=wk, bk=bk, wv=wv, bv=bv, wo=wo, bo=bo,
        fn_g=ones(inputs), fn_b=zeros(inputs),
        w_up=w_up, b_up=b_up, w_down=w_down, b_down=b_down,
    )


if __name__ == "__main__":
    B, S, INPUTS, HIDDEN, HEADS = 2, 8, 32, 64, 4

    key = jax.random.PRNGKey(0)
    kx, kp = jax.random.split(key)
    x = jax.random.normal(kx, (B, S, INPUTS), dtype=jnp.float32)
    params = init_params(kp, INPUTS, HIDDEN)

    out = encoder_forward(x, params, HEADS)
    out = jax.block_until_ready(out)
    assert out.shape == (B, S, INPUTS) and bool(jnp.all(jnp.isfinite(out)))
    print("KERNEL_OK")
</pallas_src>

<mosaic_0001>
module attributes {stable_mosaic.version = 11 : i64} {
  func.func @encoder_kernel(%arg0: i32, %arg1: memref<1x8x32xf32, #tpu.memory_space<vmem>>, %arg2: memref<1x32xf32, #tpu.memory_space<vmem>>, %arg3: memref<1x32xf32, #tpu.memory_space<vmem>>, %arg4: memref<32x96xbf16, #tpu.memory_space<vmem>>, %arg5: memref<1x96xf32, #tpu.memory_space<vmem>>, %arg6: memref<4x8x32xbf16, #tpu.memory_space<vmem>>, %arg7: memref<1x32xf32, #tpu.memory_space<vmem>>, %arg8: memref<1x32xf32, #tpu.memory_space<vmem>>, %arg9: memref<1x32xf32, #tpu.memory_space<vmem>>, %arg10: memref<32x64xbf16, #tpu.memory_space<vmem>>, %arg11: memref<1x64xf32, #tpu.memory_space<vmem>>, %arg12: memref<64x32xbf16, #tpu.memory_space<vmem>>, %arg13: memref<1x32xf32, #tpu.memory_space<vmem>>, %arg14: memref<1x8x32xf32, #tpu.memory_space<vmem>>) attributes {dimension_semantics = [#tpu.dimension_semantics<parallel>], iteration_bounds = array<i64: 2>, scalar_prefetch = 0 : i64, scratch_operands = 0 : i64, tpu.core_type = #tpu.core_type<tc>, window_params = [{transform_indices = @transform_0, window_bounds = array<i64: 1, 8, 32>}, {pipeline_mode = #tpu.pipeline_mode<synchronous>, transform_indices = @transform_1, window_bounds = array<i64: 1, 32>}, {pipeline_mode = #tpu.pipeline_mode<synchronous>, transform_indices = @transform_2, window_bounds = array<i64: 1, 32>}, {pipeline_mode = #tpu.pipeline_mode<synchronous>, transform_indices = @transform_3, window_bounds = array<i64: 32, 96>}, {pipeline_mode = #tpu.pipeline_mode<synchronous>, transform_indices = @transform_4, window_bounds = array<i64: 1, 96>}, {pipeline_mode = #tpu.pipeline_mode<synchronous>, transform_indices = @transform_5, window_bounds = array<i64: 4, 8, 32>}, {pipeline_mode = #tpu.pipeline_mode<synchronous>, transform_indices = @transform_6, window_bounds = array<i64: 1, 32>}, {pipeline_mode = #tpu.pipeline_mode<synchronous>, transform_indices = @transform_7, window_bounds = array<i64: 1, 32>}, {pipeline_mode = #tpu.pipeline_mode<synchronous>, transform_indices = @transform_8, window_bounds = array<i64: 1, 32>}, {pipeline_mode = #tpu.pipeline_mode<synchronous>, transform_indices = @transform_9, window_bounds = array<i64: 32, 64>}, {pipeline_mode = #tpu.pipeline_mode<synchronous>, transform_indices = @transform_10, window_bounds = array<i64: 1, 64>}, {pipeline_mode = #tpu.pipeline_mode<synchronous>, transform_indices = @transform_11, window_bounds = array<i64: 64, 32>}, {pipeline_mode = #tpu.pipeline_mode<synchronous>, transform_indices = @transform_12, window_bounds = array<i64: 1, 32>}, {transform_indices = @transform_13, window_bounds = array<i64: 1, 8, 32>}]} {
    %c0 = arith.constant 0 : index
    %c0_0 = arith.constant 0 : index
    %c0_1 = arith.constant 0 : index
    %0 = vector.load %arg1[%c0, %c0_0, %c0_1] : memref<1x8x32xf32, #tpu.memory_space<vmem>>, vector<1x8x32xf32>
    %1 = vector.shape_cast %0 : vector<1x8x32xf32> to vector<8x32xf32>
    %c0_2 = arith.constant 0 : index
    %c0_3 = arith.constant 0 : index
    %2 = vector.load %arg2[%c0_2, %c0_3] : memref<1x32xf32, #tpu.memory_space<vmem>>, vector<1x32xf32>
    %c0_4 = arith.constant 0 : index
    %c0_5 = arith.constant 0 : index
    %3 = vector.load %arg3[%c0_4, %c0_5] : memref<1x32xf32, #tpu.memory_space<vmem>>, vector<1x32xf32>
    %cst = arith.constant dense<0.000000e+00> : vector<8xf32>
    %4 = vector.multi_reduction <add>, %1, %cst [1] : vector<8x32xf32> to vector<8xf32>
    %5 = vector.shape_cast %4 : vector<8xf32> to vector<8x1xf32>
    %cst_6 = arith.constant 3.200000e+01 : f32
    %6 = vector.broadcast %cst_6 : f32 to vector<8x1xf32>
    %7 = arith.divf %5, %6 : vector<8x1xf32>
    %8 = vector.broadcast %7 : vector<8x1xf32> to vector<8x32xf32>
    %9 = arith.subf %1, %8 : vector<8x32xf32>
    %10 = arith.mulf %9, %9 : vector<8x32xf32>
    %cst_7 = arith.constant dense<0.000000e+00> : vector<8xf32>
    %11 = vector.multi_reduction <add>, %10, %cst_7 [1] : vector<8x32xf32> to vector<8xf32>
    %12 = vector.shape_cast %11 : vector<8xf32> to vector<8x1xf32>
    %cst_8 = arith.constant 3.200000e+01 : f32
    %13 = vector.broadcast %cst_8 : f32 to vector<8x1xf32>
    %14 = arith.divf %12, %13 : vector<8x1xf32>
    %15 = vector.broadcast %7 : vector<8x1xf32> to vector<8x32xf32>
    %16 = arith.subf %1, %15 : vector<8x32xf32>
    %cst_9 = arith.constant 9.99999974E-6 : f32
    %17 = vector.broadcast %cst_9 : f32 to vector<8x1xf32>
    %18 = arith.addf %14, %17 : vector<8x1xf32>
    %19 = math.rsqrt %18 : vector<8x1xf32>
    %20 = vector.broadcast %19 : vector<8x1xf32> to vector<8x32xf32>
    %21 = arith.mulf %16, %20 : vector<8x32xf32>
    %22 = vector.broadcast %2 : vector<1x32xf32> to vector<8x32xf32>
    %23 = arith.mulf %21, %22 : vector<8x32xf32>
    %24 = vector.broadcast %3 : vector<1x32xf32> to vector<8x32xf32>
    %25 = arith.addf %23, %24 : vector<8x32xf32>
    %26 = arith.truncf %25 : vector<8x32xf32> to vector<8x32xbf16>
    %c0_10 = arith.constant 0 : index
    %c0_11 = arith.constant 0 : index
    %27 = vector.load %arg4[%c0_10, %c0_11] : memref<32x96xbf16, #tpu.memory_space<vmem>>, vector<32x96xbf16>
    %cst_12 = arith.constant dense<0.000000e+00> : vector<8x96xf32>
    %28 = tpu.matmul %26, %27, %cst_12 {dimension_numbers = #tpu.dot_dimension_numbers<[1], [0], [0], [1], [0, 0, 1, 1], [], []>} : vector<8x32xbf16>, vector<32x96xbf16>, vector<8x96xf32> -> vector<8x96xf32>
    %c0_13 = arith.constant 0 : index
    %c0_14 = arith.constant 0 : index
    %29 = vector.load %arg5[%c0_13, %c0_14] : memref<1x96xf32, #tpu.memory_space<vmem>>, vector<1x96xf32>
    %30 = vector.broadcast %29 : vector<1x96xf32> to vector<8x96xf32>
    %31 = arith.addf %28, %30 : vector<8x96xf32>
    %32 = vector.extract_strided_slice %31 {offsets = [0, 0], sizes = [8, 8], strides = [1, 1]} : vector<8x96xf32> to vector<8x8xf32>
    %33 = vector.shape_cast %32 : vector<8x8xf32> to vector<1x8x8xf32>
    %34 = vector.extract_strided_slice %31 {offsets = [0, 8], sizes = [8, 8], strides = [1, 1]} : vector<8x96xf32> to vector<8x8xf32>
    %35 = vector.shape_cast %34 : vector<8x8xf32> to vector<1x8x8xf32>
    %36 = vector.extract_strided_slice %31 {offsets = [0, 16], sizes = [8, 8], strides = [1, 1]} : vector<8x96xf32> to vector<8x8xf32>
    %37 = vector.shape_cast %36 : vector<8x8xf32> to vector<1x8x8xf32>
    %38 = vector.extract_strided_slice %31 {offsets = [0, 24], sizes = [8, 8], strides = [1, 1]} : vector<8x96xf32> to vector<8x8xf32>
    %39 = vector.shape_cast %38 : vector<8x8xf32> to vector<1x8x8xf32>
    %40 = tpu.concatenate %33, %35, %37, %39 in 0 : vector<1x8x8xf32>, vector<1x8x8xf32>, vector<1x8x8xf32>, vector<1x8x8xf32> -> vector<4x8x8xf32>
    %41 = arith.truncf %40 : vector<4x8x8xf32> to vector<4x8x8xbf16>
    %42 = vector.extract_strided_slice %31 {offsets = [0, 32], sizes = [8, 8], strides = [1, 1]} : vector<8x96xf32> to vector<8x8xf32>
    %43 = vector.shape_cast %42 : vector<8x8xf32> to vector<1x8x8xf32>
    %44 = vector.extract_strided_slice %31 {offsets = [0, 40], sizes = [8, 8], strides = [1, 1]} : vector<8x96xf32> to vector<8x8xf32>
    %45 = vector.shape_cast %44 : vector<8x8xf32> to vector<1x8x8xf32>
    %46 = vector.extract_strided_slice %31 {offsets = [0, 48], sizes = [8, 8], strides = [1, 1]} : vector<8x96xf32> to vector<8x8xf32>
    %47 = vector.shape_cast %46 : vector<8x8xf32> to vector<1x8x8xf32>
    %48 = vector.extract_strided_slice %31 {offsets = [0, 56], sizes = [8, 8], strides = [1, 1]} : vector<8x96xf32> to vector<8x8xf32>
    %49 = vector.shape_cast %48 : vector<8x8xf32> to vector<1x8x8xf32>
    %50 = tpu.concatenate %43, %45, %47, %49 in 0 : vector<1x8x8xf32>, vector<1x8x8xf32>, vector<1x8x8xf32>, vector<1x8x8xf32> -> vector<4x8x8xf32>
    %51 = arith.truncf %50 : vector<4x8x8xf32> to vector<4x8x8xbf16>
    %52 = vector.extract_strided_slice %31 {offsets = [0, 64], sizes = [8, 8], strides = [1, 1]} : vector<8x96xf32> to vector<8x8xf32>
    %53 = vector.shape_cast %52 : vector<8x8xf32> to vector<1x8x8xf32>
    %54 = vector.extract_strided_slice %31 {offsets = [0, 72], sizes = [8, 8], strides = [1, 1]} : vector<8x96xf32> to vector<8x8xf32>
    %55 = vector.shape_cast %54 : vector<8x8xf32> to vector<1x8x8xf32>
    %56 = vector.extract_strided_slice %31 {offsets = [0, 80], sizes = [8, 8], strides = [1, 1]} : vector<8x96xf32> to vector<8x8xf32>
    %57 = vector.shape_cast %56 : vector<8x8xf32> to vector<1x8x8xf32>
    %58 = vector.extract_strided_slice %31 {offsets = [0, 88], sizes = [8, 8], strides = [1, 1]} : vector<8x96xf32> to vector<8x8xf32>
    %59 = vector.shape_cast %58 : vector<8x8xf32> to vector<1x8x8xf32>
    %60 = tpu.concatenate %53, %55, %57, %59 in 0 : vector<1x8x8xf32>, vector<1x8x8xf32>, vector<1x8x8xf32>, vector<1x8x8xf32> -> vector<4x8x8xf32>
    %61 = arith.truncf %60 : vector<4x8x8xf32> to vector<4x8x8xbf16>
    "tpu.trace_start"() <{level = 10 : i32, message = "gqd,gkd->gqk"}> : () -> ()
    %cst_15 = arith.constant dense<0.000000e+00> : vector<4x8x8xf32>
    %62 = tpu.matmul %41, %51, %cst_15 {dimension_numbers = #tpu.dot_dimension_numbers<[2], [2], [1], [1], [0, 0, 0, 1, 1, 1], [0], [0]>} : vector<4x8x8xbf16>, vector<4x8x8xbf16>, vector<4x8x8xf32> -> vector<4x8x8xf32>
    "tpu.trace_stop"() : () -> ()
    %cst_16 = arith.constant dense<0xFF800000> : vector<4x8xf32>
    %63 = vector.multi_reduction <maximumf>, %62, %cst_16 [2] : vector<4x8x8xf32> to vector<4x8xf32>
    %64 = vector.shape_cast %63 : vector<4x8xf32> to vector<4x8x1xf32>
    %65 = vector.broadcast %64 : vector<4x8x1xf32> to vector<4x8x8xf32>
    %66 = arith.subf %62, %65 : vector<4x8x8xf32>
    %cst_17 = arith.constant -1.000000e+00 : f32
    %67 = vector.broadcast %cst_17 : f32 to vector<4x8x1xf32>
    %cst_18 = arith.constant 0.000000e+00 : f32
    %68 = vector.broadcast %cst_18 : f32 to vector<4x8x1xf32>
    %c0_i32 = arith.constant 0 : i32
    %c23_i32 = arith.constant 23 : i32
    %69 = arith.addi %c0_i32, %c23_i32 : i32
    %c1_i32 = arith.constant 1 : i32
    %70:2 = scf.for %arg15 = %c0_i32 to %69 step %c1_i32 iter_args(%arg16 = %67, %arg17 = %68) -> (vector<4x8x1xf32>, vector<4x8x1xf32>)  : i32 {
      %170 = arith.addf %arg16, %arg17 : vector<4x8x1xf32>
      %cst_65 = arith.constant 5.000000e-01 : f32
      %171 = vector.broadcast %cst_65 : f32 to vector<4x8x1xf32>
      %172 = arith.mulf %171, %170 : vector<4x8x1xf32>
      %173 = vector.broadcast %172 : vector<4x8x1xf32> to vector<4x8x8xf32>
      %174 = arith.subf %66, %173 : vector<4x8x8xf32>
      %cst_66 = arith.constant 0.000000e+00 : f32
      %175 = vector.broadcast %cst_66 : f32 to vector<4x8x8xf32>
      %176 = arith.maximumf %174, %175 : vector<4x8x8xf32>
      %177 = arith.mulf %176, %176 : vector<4x8x8xf32>
      %cst_67 = arith.constant dense<0.000000e+00> : vector<4x8xf32>
      %178 = vector.multi_reduction <add>, %177, %cst_67 [2] : vector<4x8x8xf32> to vector<4x8xf32>
      %179 = vector.shape_cast %178 : vector<4x8xf32> to vector<4x8x1xf32>
      %cst_68 = arith.constant 1.000000e+00 : f32
      %180 = vector.broadcast %cst_68 : f32 to vector<4x8x1xf32>
      %181 = arith.cmpf ogt, %179, %180 : vector<4x8x1xf32>
      %182 = arith.select %181, %172, %arg16 : vector<4x8x1xi1>, vector<4x8x1xf32>
      %183 = arith.select %181, %arg17, %172 : vector<4x8x1xi1>, vector<4x8x1xf32>
      scf.yield %182, %183 : vector<4x8x1xf32>, vector<4x8x1xf32>
    }
    %71 = arith.addf %70#0, %70#1 : vector<4x8x1xf32>
    %cst_19 = arith.constant 5.000000e-01 : f32
    %72 = vector.broadcast %cst_19 : f32 to vector<4x8x1xf32>
    %73 = arith.mulf %72, %71 : vector<4x8x1xf32>
    %74 = vector.broadcast %73 : vector<4x8x1xf32> to vector<4x8x8xf32>
    %75 = arith.subf %66, %74 : vector<4x8x8xf32>
    %cst_20 = arith.constant 0.000000e+00 : f32
    %76 = vector.broadcast %cst_20 : f32 to vector<4x8x8xf32>
    %77 = arith.maximumf %75, %76 : vector<4x8x8xf32>
    %78 = arith.mulf %77, %77 : vector<4x8x8xf32>
    %cst_21 = arith.constant dense<0.000000e+00> : vector<4x8xf32>
    %79 = vector.multi_reduction <add>, %78, %cst_21 [2] : vector<4x8x8xf32> to vector<4x8xf32>
    %80 = vector.shape_cast %79 : vector<4x8xf32> to vector<4x8x1xf32>
    %81 = tpu.reciprocal %80 {approx = true} : vector<4x8x1xf32> -> vector<4x8x1xf32>
    %82 = vector.broadcast %81 : vector<4x8x1xf32> to vector<4x8x8xf32>
    %83 = arith.mulf %78, %82 : vector<4x8x8xf32>
    %84 = arith.truncf %83 : vector<4x8x8xf32> to vector<4x8x8xbf16>
    "tpu.trace_start"() <{level = 10 : i32, message = "gqk,gkd->gqd"}> : () -> ()
    %cst_22 = arith.constant dense<0.000000e+00> : vector<4x8x8xf32>
    %85 = tpu.matmul %84, %61, %cst_22 {dimension_numbers = #tpu.dot_dimension_numbers<[2], [1], [1], [2], [0, 0, 0, 1, 1, 2], [0], [0]>} : vector<4x8x8xbf16>, vector<4x8x8xbf16>, vector<4x8x8xf32> -> vector<4x8x8xf32>
    %cst_23 = arith.constant 0.000000e+00 : f32
    "tpu.trace_stop"() : () -> ()
    %86 = vector.broadcast %cst_23 : f32 to vector<8x32xf32>
    %87 = vector.extract_strided_slice %85 {offsets = [0, 0, 0], sizes = [1, 8, 8], strides = [1, 1, 1]} : vector<4x8x8xf32> to vector<1x8x8xf32>
    %88 = vector.shape_cast %87 : vector<1x8x8xf32> to vector<8x8xf32>
    %89 = arith.truncf %88 : vector<8x8xf32> to vector<8x8xbf16>
    %c0_24 = arith.constant 0 : index
    %c0_25 = arith.constant 0 : index
    %c0_26 = arith.constant 0 : index
    %90 = vector.load %arg6[%c0_24, %c0_25, %c0_26] : memref<4x8x32xbf16, #tpu.memory_space<vmem>>, vector<1x8x32xbf16>
    %91 = vector.shape_cast %90 : vector<1x8x32xbf16> to vector<8x32xbf16>
    %cst_27 = arith.constant dense<0.000000e+00> : vector<8x32xf32>
    %92 = tpu.matmul %89, %91, %cst_27 {dimension_numbers = #tpu.dot_dimension_numbers<[1], [0], [0], [1], [0, 0, 1, 1], [], []>} : vector<8x8xbf16>, vector<8x32xbf16>, vector<8x32xf32> -> vector<8x32xf32>
    %93 = arith.addf %86, %92 : vector<8x32xf32>
    %94 = vector.extract_strided_slice %85 {offsets = [1, 0, 0], sizes = [1, 8, 8], strides = [1, 1, 1]} : vector<4x8x8xf32> to vector<1x8x8xf32>
    %95 = vector.shape_cast %94 : vector<1x8x8xf32> to vector<8x8xf32>
    %96 = arith.truncf %95 : vector<8x8xf32> to vector<8x8xbf16>
    %c1 = arith.constant 1 : index
    %c0_28 = arith.constant 0 : index
    %c0_29 = arith.constant 0 : index
    %97 = vector.load %arg6[%c1, %c0_28, %c0_29] : memref<4x8x32xbf16, #tpu.memory_space<vmem>>, vector<1x8x32xbf16>
    %98 = vector.shape_cast %97 : vector<1x8x32xbf16> to vector<8x32xbf16>
    %cst_30 = arith.constant dense<0.000000e+00> : vector<8x32xf32>
    %99 = tpu.matmul %96, %98, %cst_30 {dimension_numbers = #tpu.dot_dimension_numbers<[1], [0], [0], [1], [0, 0, 1, 1], [], []>} : vector<8x8xbf16>, vector<8x32xbf16>, vector<8x32xf32> -> vector<8x32xf32>
    %100 = arith.addf %93, %99 : vector<8x32xf32>
    %101 = vector.extract_strided_slice %85 {offsets = [2, 0, 0], sizes = [1, 8, 8], strides = [1, 1, 1]} : vector<4x8x8xf32> to vector<1x8x8xf32>
    %102 = vector.shape_cast %101 : vector<1x8x8xf32> to vector<8x8xf32>
    %103 = arith.truncf %102 : vector<8x8xf32> to vector<8x8xbf16>
    %c2 = arith.constant 2 : index
    %c0_31 = arith.constant 0 : index
    %c0_32 = arith.constant 0 : index
    %104 = vector.load %arg6[%c2, %c0_31, %c0_32] : memref<4x8x32xbf16, #tpu.memory_space<vmem>>, vector<1x8x32xbf16>
    %105 = vector.shape_cast %104 : vector<1x8x32xbf16> to vector<8x32xbf16>
    %cst_33 = arith.constant dense<0.000000e+00> : vector<8x32xf32>
    %106 = tpu.matmul %103, %105, %cst_33 {dimension_numbers = #tpu.dot_dimension_numbers<[1], [0], [0], [1], [0, 0, 1, 1], [], []>} : vector<8x8xbf16>, vector<8x32xbf16>, vector<8x32xf32> -> vector<8x32xf32>
    %107 = arith.addf %100, %106 : vector<8x32xf32>
    %108 = vector.extract_strided_slice %85 {offsets = [3, 0, 0], sizes = [1, 8, 8], strides = [1, 1, 1]} : vector<4x8x8xf32> to vector<1x8x8xf32>
    %109 = vector.shape_cast %108 : vector<1x8x8xf32> to vector<8x8xf32>
    %110 = arith.truncf %109 : vector<8x8xf32> to vector<8x8xbf16>
    %c3 = arith.constant 3 : index
    %c0_34 = arith.constant 0 : index
    %c0_35 = arith.constant 0 : index
    %111 = vector.load %arg6[%c3, %c0_34, %c0_35] : memref<4x8x32xbf16, #tpu.memory_space<vmem>>, vector<1x8x32xbf16>
    %112 = vector.shape_cast %111 : vector<1x8x32xbf16> to vector<8x32xbf16>
    %cst_36 = arith.constant dense<0.000000e+00> : vector<8x32xf32>
    %113 = tpu.matmul %110, %112, %cst_36 {dimension_numbers = #tpu.dot_dimension_numbers<[1], [0], [0], [1], [0, 0, 1, 1], [], []>} : vector<8x8xbf16>, vector<8x32xbf16>, vector<8x32xf32> -> vector<8x32xf32>
    %114 = arith.addf %107, %113 : vector<8x32xf32>
    %c0_37 = arith.constant 0 : index
    %c0_38 = arith.constant 0 : index
    %115 = vector.load %arg7[%c0_37, %c0_38] : memref<1x32xf32, #tpu.memory_space<vmem>>, vector<1x32xf32>
    %116 = vector.broadcast %115 : vector<1x32xf32> to vector<8x32xf32>
    %117 = arith.addf %114, %116 : vector<8x32xf32>
    %118 = arith.addf %1, %117 : vector<8x32xf32>
    %c0_39 = arith.constant 0 : index
    %c0_40 = arith.constant 0 : index
    %119 = vector.load %arg8[%c0_39, %c0_40] : memref<1x32xf32, #tpu.memory_space<vmem>>, vector<1x32xf32>
    %c0_41 = arith.constant 0 : index
    %c0_42 = arith.constant 0 : index
    %120 = vector.load %arg9[%c0_41, %c0_42] : memref<1x32xf32, #tpu.memory_space<vmem>>, vector<1x32xf32>
    %cst_43 = arith.constant dense<0.000000e+00> : vector<8xf32>
    %121 = vector.multi_reduction <add>, %118, %cst_43 [1] : vector<8x32xf32> to vector<8xf32>
    %122 = vector.shape_cast %121 : vector<8xf32> to vector<8x1xf32>
    %cst_44 = arith.constant 3.200000e+01 : f32
    %123 = vector.broadcast %cst_44 : f32 to vector<8x1xf32>
    %124 = arith.divf %122, %123 : vector<8x1xf32>
    %125 = vector.broadcast %124 : vector<8x1xf32> to vector<8x32xf32>
    %126 = arith.subf %118, %125 : vector<8x32xf32>
    %127 = arith.mulf %126, %126 : vector<8x32xf32>
    %cst_45 = arith.constant dense<0.000000e+00> : vector<8xf32>
    %128 = vector.multi_reduction <add>, %127, %cst_45 [1] : vector<8x32xf32> to vector<8xf32>
    %129 = vector.shape_cast %128 : vector<8xf32> to vector<8x1xf32>
    %cst_46 = arith.constant 3.200000e+01 : f32
    %130 = vector.broadcast %cst_46 : f32 to vector<8x1xf32>
    %131 = arith.divf %129, %130 : vector<8x1xf32>
    %132 = vector.broadcast %124 : vector<8x1xf32> to vector<8x32xf32>
    %133 = arith.subf %118, %132 : vector<8x32xf32>
    %cst_47 = arith.constant 9.99999974E-6 : f32
    %134 = vector.broadcast %cst_47 : f32 to vector<8x1xf32>
    %135 = arith.addf %131, %134 : vector<8x1xf32>
    %136 = math.rsqrt %135 : vector<8x1xf32>
    %137 = vector.broadcast %136 : vector<8x1xf32> to vector<8x32xf32>
    %138 = arith.mulf %133, %137 : vector<8x32xf32>
    %139 = vector.broadcast %119 : vector<1x32xf32> to vector<8x32xf32>
    %140 = arith.mulf %138, %139 : vector<8x32xf32>
    %141 = vector.broadcast %120 : vector<1x32xf32> to vector<8x32xf32>
    %142 = arith.addf %140, %141 : vector<8x32xf32>
    %143 = arith.truncf %142 : vector<8x32xf32> to vector<8x32xbf16>
    %c0_48 = arith.constant 0 : index
    %c0_49 = arith.constant 0 : index
    %144 = vector.load %arg10[%c0_48, %c0_49] : memref<32x64xbf16, #tpu.memory_space<vmem>>, vector<32x64xbf16>
    %cst_50 = arith.constant dense<0.000000e+00> : vector<8x64xf32>
    %145 = tpu.matmul %143, %144, %cst_50 {dimension_numbers = #tpu.dot_dimension_numbers<[1], [0], [0], [1], [0, 0, 1, 1], [], []>} : vector<8x32xbf16>, vector<32x64xbf16>, vector<8x64xf32> -> vector<8x64xf32>
    %c0_51 = arith.constant 0 : index
    %c0_52 = arith.constant 0 : index
    %146 = vector.load %arg11[%c0_51, %c0_52] : memref<1x64xf32, #tpu.memory_space<vmem>>, vector<1x64xf32>
    %147 = vector.broadcast %146 : vector<1x64xf32> to vector<8x64xf32>
    %148 = arith.addf %145, %147 : vector<8x64xf32>
    %cst_53 = arith.constant 2.000000e+01 : f32
    %149 = vector.broadcast %cst_53 : f32 to vector<8x64xf32>
    %150 = arith.minimumf %148, %149 : vector<8x64xf32>
    %151 = math.exp %150 : vector<8x64xf32>
    %cst_54 = arith.constant 1.000000e+00 : f32
    %152 = vector.broadcast %cst_54 : f32 to vector<8x64xf32>
    %153 = arith.addf %152, %151 : vector<8x64xf32>
    %154 = arith.mulf %153, %153 : vector<8x64xf32>
    %cst_55 = arith.constant 1.000000e+00 : f32
    %155 = vector.broadcast %cst_55 : f32 to vector<8x64xf32>
    %156 = arith.subf %154, %155 : vector<8x64xf32>
    %157 = arith.mulf %148, %156 : vector<8x64xf32>
    %cst_56 = arith.constant 1.000000e+00 : f32
    %158 = vector.broadcast %cst_56 : f32 to vector<8x64xf32>
    %159 = arith.addf %154, %158 : vector<8x64xf32>
    %160 = arith.divf %157, %159 : vector<8x64xf32>
    %161 = arith.truncf %160 : vector<8x64xf32> to vector<8x64xbf16>
    %c0_57 = arith.constant 0 : index
    %c0_58 = arith.constant 0 : index
    %162 = vector.load %arg12[%c0_57, %c0_58] : memref<64x32xbf16, #tpu.memory_space<vmem>>, vector<64x32xbf16>
    %cst_59 = arith.constant dense<0.000000e+00> : vector<8x32xf32>
    %163 = tpu.matmul %161, %162, %cst_59 {dimension_numbers = #tpu.dot_dimension_numbers<[1], [0], [0], [1], [0, 0, 1, 1], [], []>} : vector<8x64xbf16>, vector<64x32xbf16>, vector<8x32xf32> -> vector<8x32xf32>
    %c0_60 = arith.constant 0 : index
    %c0_61 = arith.constant 0 : index
    %164 = vector.load %arg13[%c0_60, %c0_61] : memref<1x32xf32, #tpu.memory_space<vmem>>, vector<1x32xf32>
    %165 = vector.broadcast %164 : vector<1x32xf32> to vector<8x32xf32>
    %166 = arith.addf %163, %165 : vector<8x32xf32>
    %167 = arith.addf %118, %166 : vector<8x32xf32>
    %168 = vector.shape_cast %167 : vector<8x32xf32> to vector<1x8x32xf32>
    %c0_62 = arith.constant 0 : index
    %c0_63 = arith.constant 0 : index
    %c0_64 = arith.constant 0 : index
    %169 = vector.load %arg14[%c0_62, %c0_63, %c0_64] : memref<1x8x32xf32, #tpu.memory_space<vmem>>, vector<1x8x32xf32>
    tpu.vector_store %arg14[%c0_62, %c0_63, %c0_64], %168 {strides = array<i32>} : memref<1x8x32xf32, #tpu.memory_space<vmem>>, vector<1x8x32xf32>,
    return
  }
  func.func @transform_0(%arg0: i32) -> (i32, i32, i32) {
    %c0_i32 = arith.constant 0 : i32
    %c0_i32_0 = arith.constant 0 : i32
    %c0_i32_1 = arith.constant 0 : i32
    return %arg0, %c0_i32, %c0_i32_0 : i32, i32, i32
  }
  func.func @transform_1(%arg0: i32) -> (i32, i32) {
    %c0_i32 = arith.constant 0 : i32
    %c0_i32_0 = arith.constant 0 : i32
    %c0_i32_1 = arith.constant 0 : i32
    return %c0_i32, %c0_i32_0 : i32, i32
  }
  func.func @transform_2(%arg0: i32) -> (i32, i32) {
    %c0_i32 = arith.constant 0 : i32
    %c0_i32_0 = arith.constant 0 : i32
    %c0_i32_1 = arith.constant 0 : i32
    return %c0_i32, %c0_i32_0 : i32, i32
  }
  func.func @transform_3(%arg0: i32) -> (i32, i32) {
    %c0_i32 = arith.constant 0 : i32
    %c0_i32_0 = arith.constant 0 : i32
    %c0_i32_1 = arith.constant 0 : i32
    return %c0_i32, %c0_i32_0 : i32, i32
  }
  func.func @transform_4(%arg0: i32) -> (i32, i32) {
    %c0_i32 = arith.constant 0 : i32
    %c0_i32_0 = arith.constant 0 : i32
    %c0_i32_1 = arith.constant 0 : i32
    return %c0_i32, %c0_i32_0 : i32, i32
  }
  func.func @transform_5(%arg0: i32) -> (i32, i32, i32) {
    %c0_i32 = arith.constant 0 : i32
    %c0_i32_0 = arith.constant 0 : i32
    %c0_i32_1 = arith.constant 0 : i32
    %c0_i32_2 = arith.constant 0 : i32
    return %c0_i32, %c0_i32_0, %c0_i32_1 : i32, i32, i32
  }
  func.func @transform_6(%arg0: i32) -> (i32, i32) {
    %c0_i32 = arith.constant 0 : i32
    %c0_i32_0 = arith.constant 0 : i32
    %c0_i32_1 = arith.constant 0 : i32
    return %c0_i32, %c0_i32_0 : i32, i32
  }
  func.func @transform_7(%arg0: i32) -> (i32, i32) {
    %c0_i32 = arith.constant 0 : i32
    %c0_i32_0 = arith.constant 0 : i32
    %c0_i32_1 = arith.constant 0 : i32
    return %c0_i32, %c0_i32_0 : i32, i32
  }
  func.func @transform_8(%arg0: i32) -> (i32, i32) {
    %c0_i32 = arith.constant 0 : i32
    %c0_i32_0 = arith.constant 0 : i32
    %c0_i32_1 = arith.constant 0 : i32
    return %c0_i32, %c0_i32_0 : i32, i32
  }
  func.func @transform_9(%arg0: i32) -> (i32, i32) {
    %c0_i32 = arith.constant 0 : i32
    %c0_i32_0 = arith.constant 0 : i32
    %c0_i32_1 = arith.constant 0 : i32
    return %c0_i32, %c0_i32_0 : i32, i32
  }
  func.func @transform_10(%arg0: i32) -> (i32, i32) {
    %c0_i32 = arith.constant 0 : i32
    %c0_i32_0 = arith.constant 0 : i32
    %c0_i32_1 = arith.constant 0 : i32
    return %c0_i32, %c0_i32_0 : i32, i32
  }
  func.func @transform_11(%arg0: i32) -> (i32, i32) {
    %c0_i32 = arith.constant 0 : i32
    %c0_i32_0 = arith.constant 0 : i32
    %c0_i32_1 = arith.constant 0 : i32
    return %c0_i32, %c0_i32_0 : i32, i32
  }
  func.func @transform_12(%arg0: i32) -> (i32, i32) {
    %c0_i32 = arith.constant 0 : i32
    %c0_i32_0 = arith.constant 0 : i32
    %c0_i32_1 = arith.constant 0 : i32
    return %c0_i32, %c0_i32_0 : i32, i32
  }
  func.func @transform_13(%arg0: i32) -> (i32, i32, i32) {
    %c0_i32 = arith.constant 0 : i32
    %c0_i32_0 = arith.constant 0 : i32
    %c0_i32_1 = arith.constant 0 : i32
    return %arg0, %c0_i32, %c0_i32_0 : i32, i32, i32
  }
}

module attributes {stable_mosaic.version = 11 : i64} {
  func.func @encoder_kernel(%arg0: i32, %arg1: memref<1x8x32xf32, #tpu.memory_space<vmem>>, %arg2: memref<1x32xf32, #tpu.memory_space<vmem>>, %arg3: memref<1x32xf32, #tpu.memory_space<vmem>>, %arg4: memref<32x96xbf16, #tpu.memory_space<vmem>>, %arg5: memref<1x96xf32, #tpu.memory_space<vmem>>, %arg6: memref<4x8x32xbf16, #tpu.memory_space<vmem>>, %arg7: memref<1x32xf32, #tpu.memory_space<vmem>>, %arg8: memref<1x32xf32, #tpu.memory_space<vmem>>, %arg9: memref<1x32xf32, #tpu.memory_space<vmem>>, %arg10: memref<32x64xbf16, #tpu.memory_space<vmem>>, %arg11: memref<1x64xf32, #tpu.memory_space<vmem>>, %arg12: memref<64x32xbf16, #tpu.memory_space<vmem>>, %arg13: memref<1x32xf32, #tpu.memory_space<vmem>>, %arg14: memref<1x8x32xf32, #tpu.memory_space<vmem>>) attributes {dimension_semantics = [#tpu.dimension_semantics<parallel>], iteration_bounds = array<i64: 2>, scalar_prefetch = 0 : i64, scratch_operands = 0 : i64, tpu.core_type = #tpu.core_type<tc>, window_params = [{transform_indices = @transform_0, window_bounds = array<i64: 1, 8, 32>}, {pipeline_mode = #tpu.pipeline_mode<synchronous>, transform_indices = @transform_1, window_bounds = array<i64: 1, 32>}, {pipeline_mode = #tpu.pipeline_mode<synchronous>, transform_indices = @transform_2, window_bounds = array<i64: 1, 32>}, {pipeline_mode = #tpu.pipeline_mode<synchronous>, transform_indices = @transform_3, window_bounds = array<i64: 32, 96>}, {pipeline_mode = #tpu.pipeline_mode<synchronous>, transform_indices = @transform_4, window_bounds = array<i64: 1, 96>}, {pipeline_mode = #tpu.pipeline_mode<synchronous>, transform_indices = @transform_5, window_bounds = array<i64: 4, 8, 32>}, {pipeline_mode = #tpu.pipeline_mode<synchronous>, transform_indices = @transform_6, window_bounds = array<i64: 1, 32>}, {pipeline_mode = #tpu.pipeline_mode<synchronous>, transform_indices = @transform_7, window_bounds = array<i64: 1, 32>}, {pipeline_mode = #tpu.pipeline_mode<synchronous>, transform_indices = @transform_8, window_bounds = array<i64: 1, 32>}, {pipeline_mode = #tpu.pipeline_mode<synchronous>, transform_indices = @transform_9, window_bounds = array<i64: 32, 64>}, {pipeline_mode = #tpu.pipeline_mode<synchronous>, transform_indices = @transform_10, window_bounds = array<i64: 1, 64>}, {pipeline_mode = #tpu.pipeline_mode<synchronous>, transform_indices = @transform_11, window_bounds = array<i64: 64, 32>}, {pipeline_mode = #tpu.pipeline_mode<synchronous>, transform_indices = @transform_12, window_bounds = array<i64: 1, 32>}, {transform_indices = @transform_13, window_bounds = array<i64: 1, 8, 32>}]} {
    %c0 = arith.constant 0 : index
    %c0_0 = arith.constant 0 : index
    %c0_1 = arith.constant 0 : index
    %0 = vector.load %arg1[%c0, %c0_0, %c0_1] : memref<1x8x32xf32, #tpu.memory_space<vmem>>, vector<1x8x32xf32>
    %1 = vector.shape_cast %0 : vector<1x8x32xf32> to vector<8x32xf32>
    %c0_2 = arith.constant 0 : index
    %c0_3 = arith.constant 0 : index
    %2 = vector.load %arg2[%c0_2, %c0_3] : memref<1x32xf32, #tpu.memory_space<vmem>>, vector<1x32xf32>
    %c0_4 = arith.constant 0 : index
    %c0_5 = arith.constant 0 : index
    %3 = vector.load %arg3[%c0_4, %c0_5] : memref<1x32xf32, #tpu.memory_space<vmem>>, vector<1x32xf32>
    %cst = arith.constant dense<0.000000e+00> : vector<8xf32>
    %4 = vector.multi_reduction <add>, %1, %cst [1] : vector<8x32xf32> to vector<8xf32>
    %5 = vector.shape_cast %4 : vector<8xf32> to vector<8x1xf32>
    %cst_6 = arith.constant 3.200000e+01 : f32
    %6 = vector.broadcast %cst_6 : f32 to vector<8x1xf32>
    %7 = arith.divf %5, %6 : vector<8x1xf32>
    %8 = vector.broadcast %7 : vector<8x1xf32> to vector<8x32xf32>
    %9 = arith.subf %1, %8 : vector<8x32xf32>
    %10 = arith.mulf %9, %9 : vector<8x32xf32>
    %cst_7 = arith.constant dense<0.000000e+00> : vector<8xf32>
    %11 = vector.multi_reduction <add>, %10, %cst_7 [1] : vector<8x32xf32> to vector<8xf32>
    %12 = vector.shape_cast %11 : vector<8xf32> to vector<8x1xf32>
    %cst_8 = arith.constant 3.200000e+01 : f32
    %13 = vector.broadcast %cst_8 : f32 to vector<8x1xf32>
    %14 = arith.divf %12, %13 : vector<8x1xf32>
    %15 = vector.broadcast %7 : vector<8x1xf32> to vector<8x32xf32>
    %16 = arith.subf %1, %15 : vector<8x32xf32>
    %cst_9 = arith.constant 9.99999974E-6 : f32
    %17 = vector.broadcast %cst_9 : f32 to vector<8x1xf32>
    %18 = arith.addf %14, %17 : vector<8x1xf32>
    %19 = math.rsqrt %18 : vector<8x1xf32>
    %20 = vector.broadcast %19 : vector<8x1xf32> to vector<8x32xf32>
    %21 = arith.mulf %16, %20 : vector<8x32xf32>
    %22 = vector.broadcast %2 : vector<1x32xf32> to vector<8x32xf32>
    %23 = arith.mulf %21, %22 : vector<8x32xf32>
    %24 = vector.broadcast %3 : vector<1x32xf32> to vector<8x32xf32>
    %25 = arith.addf %23, %24 : vector<8x32xf32>
    %26 = arith.truncf %25 : vector<8x32xf32> to vector<8x32xbf16>
    %c0_10 = arith.constant 0 : index
    %c0_11 = arith.constant 0 : index
    %27 = vector.load %arg4[%c0_10, %c0_11] : memref<32x96xbf16, #tpu.memory_space<vmem>>, vector<32x96xbf16>
    %cst_12 = arith.constant dense<0.000000e+00> : vector<8x96xf32>
    %28 = tpu.matmul %26, %27, %cst_12 {dimension_numbers = #tpu.dot_dimension_numbers<[1], [0], [0], [1], [0, 0, 1, 1], [], []>} : vector<8x32xbf16>, vector<32x96xbf16>, vector<8x96xf32> -> vector<8x96xf32>
    %c0_13 = arith.constant 0 : index
    %c0_14 = arith.constant 0 : index
    %29 = vector.load %arg5[%c0_13, %c0_14] : memref<1x96xf32, #tpu.memory_space<vmem>>, vector<1x96xf32>
    %30 = vector.broadcast %29 : vector<1x96xf32> to vector<8x96xf32>
    %31 = arith.addf %28, %30 : vector<8x96xf32>
    %32 = vector.extract_strided_slice %31 {offsets = [0, 0], sizes = [8, 8], strides = [1, 1]} : vector<8x96xf32> to vector<8x8xf32>
    %33 = vector.shape_cast %32 : vector<8x8xf32> to vector<1x8x8xf32>
    %34 = vector.extract_strided_slice %31 {offsets = [0, 8], sizes = [8, 8], strides = [1, 1]} : vector<8x96xf32> to vector<8x8xf32>
    %35 = vector.shape_cast %34 : vector<8x8xf32> to vector<1x8x8xf32>
    %36 = vector.extract_strided_slice %31 {offsets = [0, 16], sizes = [8, 8], strides = [1, 1]} : vector<8x96xf32> to vector<8x8xf32>
    %37 = vector.shape_cast %36 : vector<8x8xf32> to vector<1x8x8xf32>
    %38 = vector.extract_strided_slice %31 {offsets = [0, 24], sizes = [8, 8], strides = [1, 1]} : vector<8x96xf32> to vector<8x8xf32>
    %39 = vector.shape_cast %38 : vector<8x8xf32> to vector<1x8x8xf32>
    %40 = tpu.concatenate %33, %35, %37, %39 in 0 : vector<1x8x8xf32>, vector<1x8x8xf32>, vector<1x8x8xf32>, vector<1x8x8xf32> -> vector<4x8x8xf32>
    %41 = arith.truncf %40 : vector<4x8x8xf32> to vector<4x8x8xbf16>
    %42 = vector.extract_strided_slice %31 {offsets = [0, 32], sizes = [8, 8], strides = [1, 1]} : vector<8x96xf32> to vector<8x8xf32>
    %43 = vector.shape_cast %42 : vector<8x8xf32> to vector<1x8x8xf32>
    %44 = vector.extract_strided_slice %31 {offsets = [0, 40], sizes = [8, 8], strides = [1, 1]} : vector<8x96xf32> to vector<8x8xf32>
    %45 = vector.shape_cast %44 : vector<8x8xf32> to vector<1x8x8xf32>
    %46 = vector.extract_strided_slice %31 {offsets = [0, 48], sizes = [8, 8], strides = [1, 1]} : vector<8x96xf32> to vector<8x8xf32>
    %47 = vector.shape_cast %46 : vector<8x8xf32> to vector<1x8x8xf32>
    %48 = vector.extract_strided_slice %31 {offsets = [0, 56], sizes = [8, 8], strides = [1, 1]} : vector<8x96xf32> to vector<8x8xf32>
    %49 = vector.shape_cast %48 : vector<8x8xf32> to vector<1x8x8xf32>
    %50 = tpu.concatenate %43, %45, %47, %49 in 0 : vector<1x8x8xf32>, vector<1x8x8xf32>, vector<1x8x8xf32>, vector<1x8x8xf32> -> vector<4x8x8xf32>
    %51 = arith.truncf %50 : vector<4x8x8xf32> to vector<4x8x8xbf16>
    %52 = vector.extract_strided_slice %31 {offsets = [0, 64], sizes = [8, 8], strides = [1, 1]} : vector<8x96xf32> to vector<8x8xf32>
    %53 = vector.shape_cast %52 : vector<8x8xf32> to vector<1x8x8xf32>
    %54 = vector.extract_strided_slice %31 {offsets = [0, 72], sizes = [8, 8], strides = [1, 1]} : vector<8x96xf32> to vector<8x8xf32>
    %55 = vector.shape_cast %54 : vector<8x8xf32> to vector<1x8x8xf32>
    %56 = vector.extract_strided_slice %31 {offsets = [0, 80], sizes = [8, 8], strides = [1, 1]} : vector<8x96xf32> to vector<8x8xf32>
    %57 = vector.shape_cast %56 : vector<8x8xf32> to vector<1x8x8xf32>
    %58 = vector.extract_strided_slice %31 {offsets = [0, 88], sizes = [8, 8], strides = [1, 1]} : vector<8x96xf32> to vector<8x8xf32>
    %59 = vector.shape_cast %58 : vector<8x8xf32> to vector<1x8x8xf32>
    %60 = tpu.concatenate %53, %55, %57, %59 in 0 : vector<1x8x8xf32>, vector<1x8x8xf32>, vector<1x8x8xf32>, vector<1x8x8xf32> -> vector<4x8x8xf32>
    %61 = arith.truncf %60 : vector<4x8x8xf32> to vector<4x8x8xbf16>
    "tpu.trace_start"() <{level = 10 : i32, message = "gqd,gkd->gqk"}> : () -> ()
    %cst_15 = arith.constant dense<0.000000e+00> : vector<4x8x8xf32>
    %62 = tpu.matmul %41, %51, %cst_15 {dimension_numbers = #tpu.dot_dimension_numbers<[2], [2], [1], [1], [0, 0, 0, 1, 1, 1], [0], [0]>} : vector<4x8x8xbf16>, vector<4x8x8xbf16>, vector<4x8x8xf32> -> vector<4x8x8xf32>
    "tpu.trace_stop"() : () -> ()
    %cst_16 = arith.constant dense<0xFF800000> : vector<4x8xf32>
    %63 = vector.multi_reduction <maximumf>, %62, %cst_16 [2] : vector<4x8x8xf32> to vector<4x8xf32>
    %64 = vector.shape_cast %63 : vector<4x8xf32> to vector<4x8x1xf32>
    %65 = vector.broadcast %64 : vector<4x8x1xf32> to vector<4x8x8xf32>
    %66 = arith.subf %62, %65 : vector<4x8x8xf32>
    %cst_17 = arith.constant -1.000000e+00 : f32
    %67 = vector.broadcast %cst_17 : f32 to vector<4x8x1xf32>
    %cst_18 = arith.constant 0.000000e+00 : f32
    %68 = vector.broadcast %cst_18 : f32 to vector<4x8x1xf32>
    %c0_i32 = arith.constant 0 : i32
    %c23_i32 = arith.constant 23 : i32
    %69 = arith.addi %c0_i32, %c23_i32 : i32
    %c1_i32 = arith.constant 1 : i32
    %70:2 = scf.for %arg15 = %c0_i32 to %69 step %c1_i32 iter_args(%arg16 = %67, %arg17 = %68) -> (vector<4x8x1xf32>, vector<4x8x1xf32>)  : i32 {
      %170 = arith.addf %arg16, %arg17 : vector<4x8x1xf32>
      %cst_65 = arith.constant 5.000000e-01 : f32
      %171 = vector.broadcast %cst_65 : f32 to vector<4x8x1xf32>
      %172 = arith.mulf %171, %170 : vector<4x8x1xf32>
      %173 = vector.broadcast %172 : vector<4x8x1xf32> to vector<4x8x8xf32>
      %174 = arith.subf %66, %173 : vector<4x8x8xf32>
      %cst_66 = arith.constant 0.000000e+00 : f32
      %175 = vector.broadcast %cst_66 : f32 to vector<4x8x8xf32>
      %176 = arith.maximumf %174, %175 : vector<4x8x8xf32>
      %177 = arith.mulf %176, %176 : vector<4x8x8xf32>
      %cst_67 = arith.constant dense<0.000000e+00> : vector<4x8xf32>
      %178 = vector.multi_reduction <add>, %177, %cst_67 [2] : vector<4x8x8xf32> to vector<4x8xf32>
      %179 = vector.shape_cast %178 : vector<4x8xf32> to vector<4x8x1xf32>
      %cst_68 = arith.constant 1.000000e+00 : f32
      %180 = vector.broadcast %cst_68 : f32 to vector<4x8x1xf32>
      %181 = arith.cmpf ogt, %179, %180 : vector<4x8x1xf32>
      %182 = arith.select %181, %172, %arg16 : vector<4x8x1xi1>, vector<4x8x1xf32>
      %183 = arith.select %181, %arg17, %172 : vector<4x8x1xi1>, vector<4x8x1xf32>
      scf.yield %182, %183 : vector<4x8x1xf32>, vector<4x8x1xf32>
    }
    %71 = arith.addf %70#0, %70#1 : vector<4x8x1xf32>
    %cst_19 = arith.constant 5.000000e-01 : f32
    %72 = vector.broadcast %cst_19 : f32 to vector<4x8x1xf32>
    %73 = arith.mulf %72, %71 : vector<4x8x1xf32>
    %74 = vector.broadcast %73 : vector<4x8x1xf32> to vector<4x8x8xf32>
    %75 = arith.subf %66, %74 : vector<4x8x8xf32>
    %cst_20 = arith.constant 0.000000e+00 : f32
    %76 = vector.broadcast %cst_20 : f32 to vector<4x8x8xf32>
    %77 = arith.maximumf %75, %76 : vector<4x8x8xf32>
    %78 = arith.mulf %77, %77 : vector<4x8x8xf32>
    %cst_21 = arith.constant dense<0.000000e+00> : vector<4x8xf32>
    %79 = vector.multi_reduction <add>, %78, %cst_21 [2] : vector<4x8x8xf32> to vector<4x8xf32>
    %80 = vector.shape_cast %79 : vector<4x8xf32> to vector<4x8x1xf32>
    %81 = tpu.reciprocal %80 {approx = true} : vector<4x8x1xf32> -> vector<4x8x1xf32>
    %82 = vector.broadcast %81 : vector<4x8x1xf32> to vector<4x8x8xf32>
    %83 = arith.mulf %78, %82 : vector<4x8x8xf32>
    %84 = arith.truncf %83 : vector<4x8x8xf32> to vector<4x8x8xbf16>
    "tpu.trace_start"() <{level = 10 : i32, message = "gqk,gkd->gqd"}> : () -> ()
    %cst_22 = arith.constant dense<0.000000e+00> : vector<4x8x8xf32>
    %85 = tpu.matmul %84, %61, %cst_22 {dimension_numbers = #tpu.dot_dimension_numbers<[2], [1], [1], [2], [0, 0, 0, 1, 1, 2], [0], [0]>} : vector<4x8x8xbf16>, vector<4x8x8xbf16>, vector<4x8x8xf32> -> vector<4x8x8xf32>
    %cst_23 = arith.constant 0.000000e+00 : f32
    "tpu.trace_stop"() : () -> ()
    %86 = vector.broadcast %cst_23 : f32 to vector<8x32xf32>
    %87 = vector.extract_strided_slice %85 {offsets = [0, 0, 0], sizes = [1, 8, 8], strides = [1, 1, 1]} : vector<4x8x8xf32> to vector<1x8x8xf32>
    %88 = vector.shape_cast %87 : vector<1x8x8xf32> to vector<8x8xf32>
    %89 = arith.truncf %88 : vector<8x8xf32> to vector<8x8xbf16>
    %c0_24 = arith.constant 0 : index
    %c0_25 = arith.constant 0 : index
    %c0_26 = arith.constant 0 : index
    %90 = vector.load %arg6[%c0_24, %c0_25, %c0_26] : memref<4x8x32xbf16, #tpu.memory_space<vmem>>, vector<1x8x32xbf16>
    %91 = vector.shape_cast %90 : vector<1x8x32xbf16> to vector<8x32xbf16>
    %cst_27 = arith.constant dense<0.000000e+00> : vector<8x32xf32>
    %92 = tpu.matmul %89, %91, %cst_27 {dimension_numbers = #tpu.dot_dimension_numbers<[1], [0], [0], [1], [0, 0, 1, 1], [], []>} : vector<8x8xbf16>, vector<8x32xbf16>, vector<8x32xf32> -> vector<8x32xf32>
    %93 = arith.addf %86, %92 : vector<8x32xf32>
    %94 = vector.extract_strided_slice %85 {offsets = [1, 0, 0], sizes = [1, 8, 8], strides = [1, 1, 1]} : vector<4x8x8xf32> to vector<1x8x8xf32>
    %95 = vector.shape_cast %94 : vector<1x8x8xf32> to vector<8x8xf32>
    %96 = arith.truncf %95 : vector<8x8xf32> to vector<8x8xbf16>
    %c1 = arith.constant 1 : index
    %c0_28 = arith.constant 0 : index
    %c0_29 = arith.constant 0 : index
    %97 = vector.load %arg6[%c1, %c0_28, %c0_29] : memref<4x8x32xbf16, #tpu.memory_space<vmem>>, vector<1x8x32xbf16>
    %98 = vector.shape_cast %97 : vector<1x8x32xbf16> to vector<8x32xbf16>
    %cst_30 = arith.constant dense<0.000000e+00> : vector<8x32xf32>
    %99 = tpu.matmul %96, %98, %cst_30 {dimension_numbers = #tpu.dot_dimension_numbers<[1], [0], [0], [1], [0, 0, 1, 1], [], []>} : vector<8x8xbf16>, vector<8x32xbf16>, vector<8x32xf32> -> vector<8x32xf32>
    %100 = arith.addf %93, %99 : vector<8x32xf32>
    %101 = vector.extract_strided_slice %85 {offsets = [2, 0, 0], sizes = [1, 8, 8], strides = [1, 1, 1]} : vector<4x8x8xf32> to vector<1x8x8xf32>
    %102 = vector.shape_cast %101 : vector<1x8x8xf32> to vector<8x8xf32>
    %103 = arith.truncf %102 : vector<8x8xf32> to vector<8x8xbf16>
    %c2 = arith.constant 2 : index
    %c0_31 = arith.constant 0 : index
    %c0_32 = arith.constant 0 : index
    %104 = vector.load %arg6[%c2, %c0_31, %c0_32] : memref<4x8x32xbf16, #tpu.memory_space<vmem>>, vector<1x8x32xbf16>
    %105 = vector.shape_cast %104 : vector<1x8x32xbf16> to vector<8x32xbf16>
    %cst_33 = arith.constant dense<0.000000e+00> : vector<8x32xf32>
    %106 = tpu.matmul %103, %105, %cst_33 {dimension_numbers = #tpu.dot_dimension_numbers<[1], [0], [0], [1], [0, 0, 1, 1], [], []>} : vector<8x8xbf16>, vector<8x32xbf16>, vector<8x32xf32> -> vector<8x32xf32>
    %107 = arith.addf %100, %106 : vector<8x32xf32>
    %108 = vector.extract_strided_slice %85 {offsets = [3, 0, 0], sizes = [1, 8, 8], strides = [1, 1, 1]} : vector<4x8x8xf32> to vector<1x8x8xf32>
    %109 = vector.shape_cast %108 : vector<1x8x8xf32> to vector<8x8xf32>
    %110 = arith.truncf %109 : vector<8x8xf32> to vector<8x8xbf16>
    %c3 = arith.constant 3 : index
    %c0_34 = arith.constant 0 : index
    %c0_35 = arith.constant 0 : index
    %111 = vector.load %arg6[%c3, %c0_34, %c0_35] : memref<4x8x32xbf16, #tpu.memory_space<vmem>>, vector<1x8x32xbf16>
    %112 = vector.shape_cast %111 : vector<1x8x32xbf16> to vector<8x32xbf16>
    %cst_36 = arith.constant dense<0.000000e+00> : vector<8x32xf32>
    %113 = tpu.matmul %110, %112, %cst_36 {dimension_numbers = #tpu.dot_dimension_numbers<[1], [0], [0], [1], [0, 0, 1, 1], [], []>} : vector<8x8xbf16>, vector<8x32xbf16>, vector<8x32xf32> -> vector<8x32xf32>
    %114 = arith.addf %107, %113 : vector<8x32xf32>
    %c0_37 = arith.constant 0 : index
    %c0_38 = arith.constant 0 : index
    %115 = vector.load %arg7[%c0_37, %c0_38] : memref<1x32xf32, #tpu.memory_space<vmem>>, vector<1x32xf32>
    %116 = vector.broadcast %115 : vector<1x32xf32> to vector<8x32xf32>
    %117 = arith.addf %114, %116 : vector<8x32xf32>
    %118 = arith.addf %1, %117 : vector<8x32xf32>
    %c0_39 = arith.constant 0 : index
    %c0_40 = arith.constant 0 : index
    %119 = vector.load %arg8[%c0_39, %c0_40] : memref<1x32xf32, #tpu.memory_space<vmem>>, vector<1x32xf32>
    %c0_41 = arith.constant 0 : index
    %c0_42 = arith.constant 0 : index
    %120 = vector.load %arg9[%c0_41, %c0_42] : memref<1x32xf32, #tpu.memory_space<vmem>>, vector<1x32xf32>
    %cst_43 = arith.constant dense<0.000000e+00> : vector<8xf32>
    %121 = vector.multi_reduction <add>, %118, %cst_43 [1] : vector<8x32xf32> to vector<8xf32>
    %122 = vector.shape_cast %121 : vector<8xf32> to vector<8x1xf32>
    %cst_44 = arith.constant 3.200000e+01 : f32
    %123 = vector.broadcast %cst_44 : f32 to vector<8x1xf32>
    %124 = arith.divf %122, %123 : vector<8x1xf32>
    %125 = vector.broadcast %124 : vector<8x1xf32> to vector<8x32xf32>
    %126 = arith.subf %118, %125 : vector<8x32xf32>
    %127 = arith.mulf %126, %126 : vector<8x32xf32>
    %cst_45 = arith.constant dense<0.000000e+00> : vector<8xf32>
    %128 = vector.multi_reduction <add>, %127, %cst_45 [1] : vector<8x32xf32> to vector<8xf32>
    %129 = vector.shape_cast %128 : vector<8xf32> to vector<8x1xf32>
    %cst_46 = arith.constant 3.200000e+01 : f32
    %130 = vector.broadcast %cst_46 : f32 to vector<8x1xf32>
    %131 = arith.divf %129, %130 : vector<8x1xf32>
    %132 = vector.broadcast %124 : vector<8x1xf32> to vector<8x32xf32>
    %133 = arith.subf %118, %132 : vector<8x32xf32>
    %cst_47 = arith.constant 9.99999974E-6 : f32
    %134 = vector.broadcast %cst_47 : f32 to vector<8x1xf32>
    %135 = arith.addf %131, %134 : vector<8x1xf32>
    %136 = math.rsqrt %135 : vector<8x1xf32>
    %137 = vector.broadcast %136 : vector<8x1xf32> to vector<8x32xf32>
    %138 = arith.mulf %133, %137 : vector<8x32xf32>
    %139 = vector.broadcast %119 : vector<1x32xf32> to vector<8x32xf32>
    %140 = arith.mulf %138, %139 : vector<8x32xf32>
    %141 = vector.broadcast %120 : vector<1x32xf32> to vector<8x32xf32>
    %142 = arith.addf %140, %141 : vector<8x32xf32>
    %143 = arith.truncf %142 : vector<8x32xf32> to vector<8x32xbf16>
    %c0_48 = arith.constant 0 : index
    %c0_49 = arith.constant 0 : index
    %144 = vector.load %arg10[%c0_48, %c0_49] : memref<32x64xbf16, #tpu.memory_space<vmem>>, vector<32x64xbf16>
    %cst_50 = arith.constant dense<0.000000e+00> : vector<8x64xf32>
    %145 = tpu.matmul %143, %144, %cst_50 {dimension_numbers = #tpu.dot_dimension_numbers<[1], [0], [0], [1], [0, 0, 1, 1], [], []>} : vector<8x32xbf16>, vector<32x64xbf16>, vector<8x64xf32> -> vector<8x64xf32>
    %c0_51 = arith.constant 0 : index
    %c0_52 = arith.constant 0 : index
    %146 = vector.load %arg11[%c0_51, %c0_52] : memref<1x64xf32, #tpu.memory_space<vmem>>, vector<1x64xf32>
    %147 = vector.broadcast %146 : vector<1x64xf32> to vector<8x64xf32>
    %148 = arith.addf %145, %147 : vector<8x64xf32>
    %cst_53 = arith.constant 2.000000e+01 : f32
    %149 = vector.broadcast %cst_53 : f32 to vector<8x64xf32>
    %150 = arith.minimumf %148, %149 : vector<8x64xf32>
    %151 = math.exp %150 : vector<8x64xf32>
    %cst_54 = arith.constant 1.000000e+00 : f32
    %152 = vector.broadcast %cst_54 : f32 to vector<8x64xf32>
    %153 = arith.addf %152, %151 : vector<8x64xf32>
    %154 = arith.mulf %153, %153 : vector<8x64xf32>
    %cst_55 = arith.constant 1.000000e+00 : f32
    %155 = vector.broadcast %cst_55 : f32 to vector<8x64xf32>
    %156 = arith.subf %154, %155 : vector<8x64xf32>
    %157 = arith.mulf %148, %156 : vector<8x64xf32>
    %cst_56 = arith.constant 1.000000e+00 : f32
    %158 = vector.broadcast %cst_56 : f32 to vector<8x64xf32>
    %159 = arith.addf %154, %158 : vector<8x64xf32>
    %160 = arith.divf %157, %159 : vector<8x64xf32>
    %161 = arith.truncf %160 : vector<8x64xf32> to vector<8x64xbf16>
    %c0_57 = arith.constant 0 : index
    %c0_58 = arith.constant 0 : index
    %162 = vector.load %arg12[%c0_57, %c0_58] : memref<64x32xbf16, #tpu.memory_space<vmem>>, vector<64x32xbf16>
    %cst_59 = arith.constant dense<0.000000e+00> : vector<8x32xf32>
    %163 = tpu.matmul %161, %162, %cst_59 {dimension_numbers = #tpu.dot_dimension_numbers<[1], [0], [0], [1], [0, 0, 1, 1], [], []>} : vector<8x64xbf16>, vector<64x32xbf16>, vector<8x32xf32> -> vector<8x32xf32>
    %c0_60 = arith.constant 0 : index
    %c0_61 = arith.constant 0 : index
    %164 = vector.load %arg13[%c0_60, %c0_61] : memref<1x32xf32, #tpu.memory_space<vmem>>, vector<1x32xf32>
    %165 = vector.broadcast %164 : vector<1x32xf32> to vector<8x32xf32>
    %166 = arith.addf %163, %165 : vector<8x32xf32>
    %167 = arith.addf %118, %166 : vector<8x32xf32>
    %168 = vector.shape_cast %167 : vector<8x32xf32> to vector<1x8x32xf32>
    %c0_62 = arith.constant 0 : index
    %c0_63 = arith.constant 0 : index
    %c0_64 = arith.constant 0 : index
    %169 = vector.load %arg14[%c0_62, %c0_63, %c0_64] : memref<1x8x32xf32, #tpu.memory_space<vmem>>, vector<1x8x32xf32>
    tpu.vector_store %arg14[%c0_62, %c0_63, %c0_64], %168 {strides = array<i32>} : memref<1x8x32xf32, #tpu.memory_space<vmem>>, vector<1x8x32xf32>,
    return
  }
  func.func @transform_0(%arg0: i32) -> (i32, i32, i32) {
    %c0_i32 = arith.constant 0 : i32
    %c0_i32_0 = arith.constant 0 : i32
    %c0_i32_1 = arith.constant 0 : i32
    return %arg0, %c0_i32, %c0_i32_0 : i32, i32, i32
  }
  func.func @transform_1(%arg0: i32) -> (i32, i32) {
    %c0_i32 = arith.constant 0 : i32
    %c0_i32_0 = arith.constant 0 : i32
    %c0_i32_1 = arith.constant 0 : i32
    return %c0_i32, %c0_i32_0 : i32, i32
  }
  func.func @transform_2(%arg0: i32) -> (i32, i32) {
    %c0_i32 = arith.constant 0 : i32
    %c0_i32_0 = arith.constant 0 : i32
    %c0_i32_1 = arith.constant 0 : i32
    return %c0_i32, %c0_i32_0 : i32, i32
  }
  func.func @transform_3(%arg0: i32) -> (i32, i32) {
    %c0_i32 = arith.constant 0 : i32
    %c0_i32_0 = arith.constant 0 : i32
    %c0_i32_1 = arith.constant 0 : i32
    return %c0_i32, %c0_i32_0 : i32, i32
  }
  func.func @transform_4(%arg0: i32) -> (i32, i32) {
    %c0_i32 = arith.constant 0 : i32
    %c0_i32_0 = arith.constant 0 : i32
    %c0_i32_1 = arith.constant 0 : i32
    return %c0_i32, %c0_i32_0 : i32, i32
  }
  func.func @transform_5(%arg0: i32) -> (i32, i32, i32) {
    %c0_i32 = arith.constant 0 : i32
    %c0_i32_0 = arith.constant 0 : i32
    %c0_i32_1 = arith.constant 0 : i32
    %c0_i32_2 = arith.constant 0 : i32
    return %c0_i32, %c0_i32_0, %c0_i32_1 : i32, i32, i32
  }
  func.func @transform_6(%arg0: i32) -> (i32, i32) {
    %c0_i32 = arith.constant 0 : i32
    %c0_i32_0 = arith.constant 0 : i32
    %c0_i32_1 = arith.constant 0 : i32
    return %c0_i32, %c0_i32_0 : i32, i32
  }
  func.func @transform_7(%arg0: i32) -> (i32, i32) {
    %c0_i32 = arith.constant 0 : i32
    %c0_i32_0 = arith.constant 0 : i32
    %c0_i32_1 = arith.constant 0 : i32
    return %c0_i32, %c0_i32_0 : i32, i32
  }
  func.func @transform_8(%arg0: i32) -> (i32, i32) {
    %c0_i32 = arith.constant 0 : i32
    %c0_i32_0 = arith.constant 0 : i32
    %c0_i32_1 = arith.constant 0 : i32
    return %c0_i32, %c0_i32_0 : i32, i32
  }
  func.func @transform_9(%arg0: i32) -> (i32, i32) {
    %c0_i32 = arith.constant 0 : i32
    %c0_i32_0 = arith.constant 0 : i32
    %c0_i32_1 = arith.constant 0 : i32
    return %c0_i32, %c0_i32_0 : i32, i32
  }
  func.func @transform_10(%arg0: i32) -> (i32, i32) {
    %c0_i32 = arith.constant 0 : i32
    %c0_i32_0 = arith.constant 0 : i32
    %c0_i32_1 = arith.constant 0 : i32
    return %c0_i32, %c0_i32_0 : i32, i32
  }
  func.func @transform_11(%arg0: i32) -> (i32, i32) {
    %c0_i32 = arith.constant 0 : i32
    %c0_i32_0 = arith.constant 0 : i32
    %c0_i32_1 = arith.constant 0 : i32
    return %c0_i32, %c0_i32_0 : i32, i32
  }
  func.func @transform_12(%arg0: i32) -> (i32, i32) {
    %c0_i32 = arith.constant 0 : i32
    %c0_i32_0 = arith.constant 0 : i32
    %c0_i32_1 = arith.constant 0 : i32
    return %c0_i32, %c0_i32_0 : i32, i32
  }
  func.func @transform_13(%arg0: i32) -> (i32, i32, i32) {
    %c0_i32 = arith.constant 0 : i32
    %c0_i32_0 = arith.constant 0 : i32
    %c0_i32_1 = arith.constant 0 : i32
    return %arg0, %c0_i32, %c0_i32_0 : i32, i32, i32
  }
}

module attributes {stable_mosaic.version = 11 : i64} {
  func.func @encoder_kernel(%arg0: i32, %arg1: memref<1x8x32xf32, #tpu.memory_space<vmem>>, %arg2: memref<1x32xf32, #tpu.memory_space<vmem>>, %arg3: memref<1x32xf32, #tpu.memory_space<vmem>>, %arg4: memref<32x96xbf16, #tpu.memory_space<vmem>>, %arg5: memref<1x96xf32, #tpu.memory_space<vmem>>, %arg6: memref<4x8x32xbf16, #tpu.memory_space<vmem>>, %arg7: memref<1x32xf32, #tpu.memory_space<vmem>>, %arg8: memref<1x32xf32, #tpu.memory_space<vmem>>, %arg9: memref<1x32xf32, #tpu.memory_space<vmem>>, %arg10: memref<32x64xbf16, #tpu.memory_space<vmem>>, %arg11: memref<1x64xf32, #tpu.memory_space<vmem>>, %arg12: memref<64x32xbf16, #tpu.memory_space<vmem>>, %arg13: memref<1x32xf32, #tpu.memory_space<vmem>>, %arg14: memref<1x8x32xf32, #tpu.memory_space<vmem>>) attributes {dimension_semantics = [#tpu.dimension_semantics<parallel>], iteration_bounds = array<i64: 2>, scalar_prefetch = 0 : i64, scratch_operands = 0 : i64, tpu.core_type = #tpu.core_type<tc>, window_params = [{transform_indices = @transform_0, window_bounds = array<i64: 1, 8, 32>}, {pipeline_mode = #tpu.pipeline_mode<synchronous>, transform_indices = @transform_1, window_bounds = array<i64: 1, 32>}, {pipeline_mode = #tpu.pipeline_mode<synchronous>, transform_indices = @transform_2, window_bounds = array<i64: 1, 32>}, {pipeline_mode = #tpu.pipeline_mode<synchronous>, transform_indices = @transform_3, window_bounds = array<i64: 32, 96>}, {pipeline_mode = #tpu.pipeline_mode<synchronous>, transform_indices = @transform_4, window_bounds = array<i64: 1, 96>}, {pipeline_mode = #tpu.pipeline_mode<synchronous>, transform_indices = @transform_5, window_bounds = array<i64: 4, 8, 32>}, {pipeline_mode = #tpu.pipeline_mode<synchronous>, transform_indices = @transform_6, window_bounds = array<i64: 1, 32>}, {pipeline_mode = #tpu.pipeline_mode<synchronous>, transform_indices = @transform_7, window_bounds = array<i64: 1, 32>}, {pipeline_mode = #tpu.pipeline_mode<synchronous>, transform_indices = @transform_8, window_bounds = array<i64: 1, 32>}, {pipeline_mode = #tpu.pipeline_mode<synchronous>, transform_indices = @transform_9, window_bounds = array<i64: 32, 64>}, {pipeline_mode = #tpu.pipeline_mode<synchronous>, transform_indices = @transform_10, window_bounds = array<i64: 1, 64>}, {pipeline_mode = #tpu.pipeline_mode<synchronous>, transform_indices = @transform_11, window_bounds = array<i64: 64, 32>}, {pipeline_mode = #tpu.pipeline_mode<synchronous>, transform_indices = @transform_12, window_bounds = array<i64: 1, 32>}, {transform_indices = @transform_13, window_bounds = array<i64: 1, 8, 32>}]} {
    %c0 = arith.constant 0 : index
    %c0_0 = arith.constant 0 : index
    %c0_1 = arith.constant 0 : index
    %0 = vector.load %arg1[%c0, %c0_0, %c0_1] : memref<1x8x32xf32, #tpu.memory_space<vmem>>, vector<1x8x32xf32>
    %1 = vector.shape_cast %0 : vector<1x8x32xf32> to vector<8x32xf32>
    %c0_2 = arith.constant 0 : index
    %c0_3 = arith.constant 0 : index
    %2 = vector.load %arg2[%c0_2, %c0_3] : memref<1x32xf32, #tpu.memory_space<vmem>>, vector<1x32xf32>
    %c0_4 = arith.constant 0 : index
    %c0_5 = arith.constant 0 : index
    %3 = vector.load %arg3[%c0_4, %c0_5] : memref<1x32xf32, #tpu.memory_space<vmem>>, vector<1x32xf32>
    %cst = arith.constant dense<0.000000e+00> : vector<8xf32>
    %4 = vector.multi_reduction <add>, %1, %cst [1] : vector<8x32xf32> to vector<8xf32>
    %5 = vector.shape_cast %4 : vector<8xf32> to vector<8x1xf32>
    %cst_6 = arith.constant 3.200000e+01 : f32
    %6 = vector.broadcast %cst_6 : f32 to vector<8x1xf32>
    %7 = arith.divf %5, %6 : vector<8x1xf32>
    %8 = vector.broadcast %7 : vector<8x1xf32> to vector<8x32xf32>
    %9 = arith.subf %1, %8 : vector<8x32xf32>
    %10 = arith.mulf %9, %9 : vector<8x32xf32>
    %cst_7 = arith.constant dense<0.000000e+00> : vector<8xf32>
    %11 = vector.multi_reduction <add>, %10, %cst_7 [1] : vector<8x32xf32> to vector<8xf32>
    %12 = vector.shape_cast %11 : vector<8xf32> to vector<8x1xf32>
    %cst_8 = arith.constant 3.200000e+01 : f32
    %13 = vector.broadcast %cst_8 : f32 to vector<8x1xf32>
    %14 = arith.divf %12, %13 : vector<8x1xf32>
    %15 = vector.broadcast %7 : vector<8x1xf32> to vector<8x32xf32>
    %16 = arith.subf %1, %15 : vector<8x32xf32>
    %cst_9 = arith.constant 9.99999974E-6 : f32
    %17 = vector.broadcast %cst_9 : f32 to vector<8x1xf32>
    %18 = arith.addf %14, %17 : vector<8x1xf32>
    %19 = math.rsqrt %18 : vector<8x1xf32>
    %20 = vector.broadcast %19 : vector<8x1xf32> to vector<8x32xf32>
    %21 = arith.mulf %16, %20 : vector<8x32xf32>
    %22 = vector.broadcast %2 : vector<1x32xf32> to vector<8x32xf32>
    %23 = arith.mulf %21, %22 : vector<8x32xf32>
    %24 = vector.broadcast %3 : vector<1x32xf32> to vector<8x32xf32>
    %25 = arith.addf %23, %24 : vector<8x32xf32>
    %26 = arith.truncf %25 : vector<8x32xf32> to vector<8x32xbf16>
    %c0_10 = arith.constant 0 : index
    %c0_11 = arith.constant 0 : index
    %27 = vector.load %arg4[%c0_10, %c0_11] : memref<32x96xbf16, #tpu.memory_space<vmem>>, vector<32x96xbf16>
    %cst_12 = arith.constant dense<0.000000e+00> : vector<8x96xf32>
    %28 = tpu.matmul %26, %27, %cst_12 {dimension_numbers = #tpu.dot_dimension_numbers<[1], [0], [0], [1], [0, 0, 1, 1], [], []>} : vector<8x32xbf16>, vector<32x96xbf16>, vector<8x96xf32> -> vector<8x96xf32>
    %c0_13 = arith.constant 0 : index
    %c0_14 = arith.constant 0 : index
    %29 = vector.load %arg5[%c0_13, %c0_14] : memref<1x96xf32, #tpu.memory_space<vmem>>, vector<1x96xf32>
    %30 = vector.broadcast %29 : vector<1x96xf32> to vector<8x96xf32>
    %31 = arith.addf %28, %30 : vector<8x96xf32>
    %32 = vector.extract_strided_slice %31 {offsets = [0, 0], sizes = [8, 8], strides = [1, 1]} : vector<8x96xf32> to vector<8x8xf32>
    %33 = vector.shape_cast %32 : vector<8x8xf32> to vector<1x8x8xf32>
    %34 = vector.extract_strided_slice %31 {offsets = [0, 8], sizes = [8, 8], strides = [1, 1]} : vector<8x96xf32> to vector<8x8xf32>
    %35 = vector.shape_cast %34 : vector<8x8xf32> to vector<1x8x8xf32>
    %36 = vector.extract_strided_slice %31 {offsets = [0, 16], sizes = [8, 8], strides = [1, 1]} : vector<8x96xf32> to vector<8x8xf32>
    %37 = vector.shape_cast %36 : vector<8x8xf32> to vector<1x8x8xf32>
    %38 = vector.extract_strided_slice %31 {offsets = [0, 24], sizes = [8, 8], strides = [1, 1]} : vector<8x96xf32> to vector<8x8xf32>
    %39 = vector.shape_cast %38 : vector<8x8xf32> to vector<1x8x8xf32>
    %40 = tpu.concatenate %33, %35, %37, %39 in 0 : vector<1x8x8xf32>, vector<1x8x8xf32>, vector<1x8x8xf32>, vector<1x8x8xf32> -> vector<4x8x8xf32>
    %41 = arith.truncf %40 : vector<4x8x8xf32> to vector<4x8x8xbf16>
    %42 = vector.extract_strided_slice %31 {offsets = [0, 32], sizes = [8, 8], strides = [1, 1]} : vector<8x96xf32> to vector<8x8xf32>
    %43 = vector.shape_cast %42 : vector<8x8xf32> to vector<1x8x8xf32>
    %44 = vector.extract_strided_slice %31 {offsets = [0, 40], sizes = [8, 8], strides = [1, 1]} : vector<8x96xf32> to vector<8x8xf32>
    %45 = vector.shape_cast %44 : vector<8x8xf32> to vector<1x8x8xf32>
    %46 = vector.extract_strided_slice %31 {offsets = [0, 48], sizes = [8, 8], strides = [1, 1]} : vector<8x96xf32> to vector<8x8xf32>
    %47 = vector.shape_cast %46 : vector<8x8xf32> to vector<1x8x8xf32>
    %48 = vector.extract_strided_slice %31 {offsets = [0, 56], sizes = [8, 8], strides = [1, 1]} : vector<8x96xf32> to vector<8x8xf32>
    %49 = vector.shape_cast %48 : vector<8x8xf32> to vector<1x8x8xf32>
    %50 = tpu.concatenate %43, %45, %47, %49 in 0 : vector<1x8x8xf32>, vector<1x8x8xf32>, vector<1x8x8xf32>, vector<1x8x8xf32> -> vector<4x8x8xf32>
    %51 = arith.truncf %50 : vector<4x8x8xf32> to vector<4x8x8xbf16>
    %52 = vector.extract_strided_slice %31 {offsets = [0, 64], sizes = [8, 8], strides = [1, 1]} : vector<8x96xf32> to vector<8x8xf32>
    %53 = vector.shape_cast %52 : vector<8x8xf32> to vector<1x8x8xf32>
    %54 = vector.extract_strided_slice %31 {offsets = [0, 72], sizes = [8, 8], strides = [1, 1]} : vector<8x96xf32> to vector<8x8xf32>
    %55 = vector.shape_cast %54 : vector<8x8xf32> to vector<1x8x8xf32>
    %56 = vector.extract_strided_slice %31 {offsets = [0, 80], sizes = [8, 8], strides = [1, 1]} : vector<8x96xf32> to vector<8x8xf32>
    %57 = vector.shape_cast %56 : vector<8x8xf32> to vector<1x8x8xf32>
    %58 = vector.extract_strided_slice %31 {offsets = [0, 88], sizes = [8, 8], strides = [1, 1]} : vector<8x96xf32> to vector<8x8xf32>
    %59 = vector.shape_cast %58 : vector<8x8xf32> to vector<1x8x8xf32>
    %60 = tpu.concatenate %53, %55, %57, %59 in 0 : vector<1x8x8xf32>, vector<1x8x8xf32>, vector<1x8x8xf32>, vector<1x8x8xf32> -> vector<4x8x8xf32>
    %61 = arith.truncf %60 : vector<4x8x8xf32> to vector<4x8x8xbf16>
    "tpu.trace_start"() <{level = 10 : i32, message = "gqd,gkd->gqk"}> : () -> ()
    %cst_15 = arith.constant dense<0.000000e+00> : vector<4x8x8xf32>
    %62 = tpu.matmul %41, %51, %cst_15 {dimension_numbers = #tpu.dot_dimension_numbers<[2], [2], [1], [1], [0, 0, 0, 1, 1, 1], [0], [0]>} : vector<4x8x8xbf16>, vector<4x8x8xbf16>, vector<4x8x8xf32> -> vector<4x8x8xf32>
    "tpu.trace_stop"() : () -> ()
    %cst_16 = arith.constant dense<0xFF800000> : vector<4x8xf32>
    %63 = vector.multi_reduction <maximumf>, %62, %cst_16 [2] : vector<4x8x8xf32> to vector<4x8xf32>
    %64 = vector.shape_cast %63 : vector<4x8xf32> to vector<4x8x1xf32>
    %65 = vector.broadcast %64 : vector<4x8x1xf32> to vector<4x8x8xf32>
    %66 = arith.subf %62, %65 : vector<4x8x8xf32>
    %cst_17 = arith.constant -1.000000e+00 : f32
    %67 = vector.broadcast %cst_17 : f32 to vector<4x8x1xf32>
    %cst_18 = arith.constant 0.000000e+00 : f32
    %68 = vector.broadcast %cst_18 : f32 to vector<4x8x1xf32>
    %c0_i32 = arith.constant 0 : i32
    %c23_i32 = arith.constant 23 : i32
    %69 = arith.addi %c0_i32, %c23_i32 : i32
    %c1_i32 = arith.constant 1 : i32
    %70:2 = scf.for %arg15 = %c0_i32 to %69 step %c1_i32 iter_args(%arg16 = %67, %arg17 = %68) -> (vector<4x8x1xf32>, vector<4x8x1xf32>)  : i32 {
      %170 = arith.addf %arg16, %arg17 : vector<4x8x1xf32>
      %cst_65 = arith.constant 5.000000e-01 : f32
      %171 = vector.broadcast %cst_65 : f32 to vector<4x8x1xf32>
      %172 = arith.mulf %171, %170 : vector<4x8x1xf32>
      %173 = vector.broadcast %172 : vector<4x8x1xf32> to vector<4x8x8xf32>
      %174 = arith.subf %66, %173 : vector<4x8x8xf32>
      %cst_66 = arith.constant 0.000000e+00 : f32
      %175 = vector.broadcast %cst_66 : f32 to vector<4x8x8xf32>
      %176 = arith.maximumf %174, %175 : vector<4x8x8xf32>
      %177 = arith.mulf %176, %176 : vector<4x8x8xf32>
      %cst_67 = arith.constant dense<0.000000e+00> : vector<4x8xf32>
      %178 = vector.multi_reduction <add>, %177, %cst_67 [2] : vector<4x8x8xf32> to vector<4x8xf32>
      %179 = vector.shape_cast %178 : vector<4x8xf32> to vector<4x8x1xf32>
      %cst_68 = arith.constant 1.000000e+00 : f32
      %180 = vector.broadcast %cst_68 : f32 to vector<4x8x1xf32>
      %181 = arith.cmpf ogt, %179, %180 : vector<4x8x1xf32>
      %182 = arith.select %181, %172, %arg16 : vector<4x8x1xi1>, vector<4x8x1xf32>
      %183 = arith.select %181, %arg17, %172 : vector<4x8x1xi1>, vector<4x8x1xf32>
      scf.yield %182, %183 : vector<4x8x1xf32>, vector<4x8x1xf32>
    }
    %71 = arith.addf %70#0, %70#1 : vector<4x8x1xf32>
    %cst_19 = arith.constant 5.000000e-01 : f32
    %72 = vector.broadcast %cst_19 : f32 to vector<4x8x1xf32>
    %73 = arith.mulf %72, %71 : vector<4x8x1xf32>
    %74 = vector.broadcast %73 : vector<4x8x1xf32> to vector<4x8x8xf32>
    %75 = arith.subf %66, %74 : vector<4x8x8xf32>
    %cst_20 = arith.constant 0.000000e+00 : f32
    %76 = vector.broadcast %cst_20 : f32 to vector<4x8x8xf32>
    %77 = arith.maximumf %75, %76 : vector<4x8x8xf32>
    %78 = arith.mulf %77, %77 : vector<4x8x8xf32>
    %cst_21 = arith.constant dense<0.000000e+00> : vector<4x8xf32>
    %79 = vector.multi_reduction <add>, %78, %cst_21 [2] : vector<4x8x8xf32> to vector<4x8xf32>
    %80 = vector.shape_cast %79 : vector<4x8xf32> to vector<4x8x1xf32>
    %81 = tpu.reciprocal %80 {approx = true} : vector<4x8x1xf32> -> vector<4x8x1xf32>
    %82 = vector.broadcast %81 : vector<4x8x1xf32> to vector<4x8x8xf32>
    %83 = arith.mulf %78, %82 : vector<4x8x8xf32>
    %84 = arith.truncf %83 : vector<4x8x8xf32> to vector<4x8x8xbf16>
    "tpu.trace_start"() <{level = 10 : i32, message = "gqk,gkd->gqd"}> : () -> ()
    %cst_22 = arith.constant dense<0.000000e+00> : vector<4x8x8xf32>
    %85 = tpu.matmul %84, %61, %cst_22 {dimension_numbers = #tpu.dot_dimension_numbers<[2], [1], [1], [2], [0, 0, 0, 1, 1, 2], [0], [0]>} : vector<4x8x8xbf16>, vector<4x8x8xbf16>, vector<4x8x8xf32> -> vector<4x8x8xf32>
    %cst_23 = arith.constant 0.000000e+00 : f32
    "tpu.trace_stop"() : () -> ()
    %86 = vector.broadcast %cst_23 : f32 to vector<8x32xf32>
    %87 = vector.extract_strided_slice %85 {offsets = [0, 0, 0], sizes = [1, 8, 8], strides = [1, 1, 1]} : vector<4x8x8xf32> to vector<1x8x8xf32>
    %88 = vector.shape_cast %87 : vector<1x8x8xf32> to vector<8x8xf32>
    %89 = arith.truncf %88 : vector<8x8xf32> to vector<8x8xbf16>
    %c0_24 = arith.constant 0 : index
    %c0_25 = arith.constant 0 : index
    %c0_26 = arith.constant 0 : index
    %90 = vector.load %arg6[%c0_24, %c0_25, %c0_26] : memref<4x8x32xbf16, #tpu.memory_space<vmem>>, vector<1x8x32xbf16>
    %91 = vector.shape_cast %90 : vector<1x8x32xbf16> to vector<8x32xbf16>
    %cst_27 = arith.constant dense<0.000000e+00> : vector<8x32xf32>
    %92 = tpu.matmul %89, %91, %cst_27 {dimension_numbers = #tpu.dot_dimension_numbers<[1], [0], [0], [1], [0, 0, 1, 1], [], []>} : vector<8x8xbf16>, vector<8x32xbf16>, vector<8x32xf32> -> vector<8x32xf32>
    %93 = arith.addf %86, %92 : vector<8x32xf32>
    %94 = vector.extract_strided_slice %85 {offsets = [1, 0, 0], sizes = [1, 8, 8], strides = [1, 1, 1]} : vector<4x8x8xf32> to vector<1x8x8xf32>
    %95 = vector.shape_cast %94 : vector<1x8x8xf32> to vector<8x8xf32>
    %96 = arith.truncf %95 : vector<8x8xf32> to vector<8x8xbf16>
    %c1 = arith.constant 1 : index
    %c0_28 = arith.constant 0 : index
    %c0_29 = arith.constant 0 : index
    %97 = vector.load %arg6[%c1, %c0_28, %c0_29] : memref<4x8x32xbf16, #tpu.memory_space<vmem>>, vector<1x8x32xbf16>
    %98 = vector.shape_cast %97 : vector<1x8x32xbf16> to vector<8x32xbf16>
    %cst_30 = arith.constant dense<0.000000e+00> : vector<8x32xf32>
    %99 = tpu.matmul %96, %98, %cst_30 {dimension_numbers = #tpu.dot_dimension_numbers<[1], [0], [0], [1], [0, 0, 1, 1], [], []>} : vector<8x8xbf16>, vector<8x32xbf16>, vector<8x32xf32> -> vector<8x32xf32>
    %100 = arith.addf %93, %99 : vector<8x32xf32>
    %101 = vector.extract_strided_slice %85 {offsets = [2, 0, 0], sizes = [1, 8, 8], strides = [1, 1, 1]} : vector<4x8x8xf32> to vector<1x8x8xf32>
    %102 = vector.shape_cast %101 : vector<1x8x8xf32> to vector<8x8xf32>
    %103 = arith.truncf %102 : vector<8x8xf32> to vector<8x8xbf16>
    %c2 = arith.constant 2 : index
    %c0_31 = arith.constant 0 : index
    %c0_32 = arith.constant 0 : index
    %104 = vector.load %arg6[%c2, %c0_31, %c0_32] : memref<4x8x32xbf16, #tpu.memory_space<vmem>>, vector<1x8x32xbf16>
    %105 = vector.shape_cast %104 : vector<1x8x32xbf16> to vector<8x32xbf16>
    %cst_33 = arith.constant dense<0.000000e+00> : vector<8x32xf32>
    %106 = tpu.matmul %103, %105, %cst_33 {dimension_numbers = #tpu.dot_dimension_numbers<[1], [0], [0], [1], [0, 0, 1, 1], [], []>} : vector<8x8xbf16>, vector<8x32xbf16>, vector<8x32xf32> -> vector<8x32xf32>
    %107 = arith.addf %100, %106 : vector<8x32xf32>
    %108 = vector.extract_strided_slice %85 {offsets = [3, 0, 0], sizes = [1, 8, 8], strides = [1, 1, 1]} : vector<4x8x8xf32> to vector<1x8x8xf32>
    %109 = vector.shape_cast %108 : vector<1x8x8xf32> to vector<8x8xf32>
    %110 = arith.truncf %109 : vector<8x8xf32> to vector<8x8xbf16>
    %c3 = arith.constant 3 : index
    %c0_34 = arith.constant 0 : index
    %c0_35 = arith.constant 0 : index
    %111 = vector.load %arg6[%c3, %c0_34, %c0_35] : memref<4x8x32xbf16, #tpu.memory_space<vmem>>, vector<1x8x32xbf16>
    %112 = vector.shape_cast %111 : vector<1x8x32xbf16> to vector<8x32xbf16>
    %cst_36 = arith.constant dense<0.000000e+00> : vector<8x32xf32>
    %113 = tpu.matmul %110, %112, %cst_36 {dimension_numbers = #tpu.dot_dimension_numbers<[1], [0], [0], [1], [0, 0, 1, 1], [], []>} : vector<8x8xbf16>, vector<8x32xbf16>, vector<8x32xf32> -> vector<8x32xf32>
    %114 = arith.addf %107, %113 : vector<8x32xf32>
    %c0_37 = arith.constant 0 : index
    %c0_38 = arith.constant 0 : index
    %115 = vector.load %arg7[%c0_37, %c0_38] : memref<1x32xf32, #tpu.memory_space<vmem>>, vector<1x32xf32>
    %116 = vector.broadcast %115 : vector<1x32xf32> to vector<8x32xf32>
    %117 = arith.addf %114, %116 : vector<8x32xf32>
    %118 = arith.addf %1, %117 : vector<8x32xf32>
    %c0_39 = arith.constant 0 : index
    %c0_40 = arith.constant 0 : index
    %119 = vector.load %arg8[%c0_39, %c0_40] : memref<1x32xf32, #tpu.memory_space<vmem>>, vector<1x32xf32>
    %c0_41 = arith.constant 0 : index
    %c0_42 = arith.constant 0 : index
    %120 = vector.load %arg9[%c0_41, %c0_42] : memref<1x32xf32, #tpu.memory_space<vmem>>, vector<1x32xf32>
    %cst_43 = arith.constant dense<0.000000e+00> : vector<8xf32>
    %121 = vector.multi_reduction <add>, %118, %cst_43 [1] : vector<8x32xf32> to vector<8xf32>
    %122 = vector.shape_cast %121 : vector<8xf32> to vector<8x1xf32>
    %cst_44 = arith.constant 3.200000e+01 : f32
    %123 = vector.broadcast %cst_44 : f32 to vector<8x1xf32>
    %124 = arith.divf %122, %123 : vector<8x1xf32>
    %125 = vector.broadcast %124 : vector<8x1xf32> to vector<8x32xf32>
    %126 = arith.subf %118, %125 : vector<8x32xf32>
    %127 = arith.mulf %126, %126 : vector<8x32xf32>
    %cst_45 = arith.constant dense<0.000000e+00> : vector<8xf32>
    %128 = vector.multi_reduction <add>, %127, %cst_45 [1] : vector<8x32xf32> to vector<8xf32>
    %129 = vector.shape_cast %128 : vector<8xf32> to vector<8x1xf32>
    %cst_46 = arith.constant 3.200000e+01 : f32
    %130 = vector.broadcast %cst_46 : f32 to vector<8x1xf32>
    %131 = arith.divf %129, %130 : vector<8x1xf32>
    %132 = vector.broadcast %124 : vector<8x1xf32> to vector<8x32xf32>
    %133 = arith.subf %118, %132 : vector<8x32xf32>
    %cst_47 = arith.constant 9.99999974E-6 : f32
    %134 = vector.broadcast %cst_47 : f32 to vector<8x1xf32>
    %135 = arith.addf %131, %134 : vector<8x1xf32>
    %136 = math.rsqrt %135 : vector<8x1xf32>
    %137 = vector.broadcast %136 : vector<8x1xf32> to vector<8x32xf32>
    %138 = arith.mulf %133, %137 : vector<8x32xf32>
    %139 = vector.broadcast %119 : vector<1x32xf32> to vector<8x32xf32>
    %140 = arith.mulf %138, %139 : vector<8x32xf32>
    %141 = vector.broadcast %120 : vector<1x32xf32> to vector<8x32xf32>
    %142 = arith.addf %140, %141 : vector<8x32xf32>
    %143 = arith.truncf %142 : vector<8x32xf32> to vector<8x32xbf16>
    %c0_48 = arith.constant 0 : index
    %c0_49 = arith.constant 0 : index
    %144 = vector.load %arg10[%c0_48, %c0_49] : memref<32x64xbf16, #tpu.memory_space<vmem>>, vector<32x64xbf16>
    %cst_50 = arith.constant dense<0.000000e+00> : vector<8x64xf32>
    %145 = tpu.matmul %143, %144, %cst_50 {dimension_numbers = #tpu.dot_dimension_numbers<[1], [0], [0], [1], [0, 0, 1, 1], [], []>} : vector<8x32xbf16>, vector<32x64xbf16>, vector<8x64xf32> -> vector<8x64xf32>
    %c0_51 = arith.constant 0 : index
    %c0_52 = arith.constant 0 : index
    %146 = vector.load %arg11[%c0_51, %c0_52] : memref<1x64xf32, #tpu.memory_space<vmem>>, vector<1x64xf32>
    %147 = vector.broadcast %146 : vector<1x64xf32> to vector<8x64xf32>
    %148 = arith.addf %145, %147 : vector<8x64xf32>
    %cst_53 = arith.constant 2.000000e+01 : f32
    %149 = vector.broadcast %cst_53 : f32 to vector<8x64xf32>
    %150 = arith.minimumf %148, %149 : vector<8x64xf32>
    %151 = math.exp %150 : vector<8x64xf32>
    %cst_54 = arith.constant 1.000000e+00 : f32
    %152 = vector.broadcast %cst_54 : f32 to vector<8x64xf32>
    %153 = arith.addf %152, %151 : vector<8x64xf32>
    %154 = arith.mulf %153, %153 : vector<8x64xf32>
    %cst_55 = arith.constant 1.000000e+00 : f32
    %155 = vector.broadcast %cst_55 : f32 to vector<8x64xf32>
    %156 = arith.subf %154, %155 : vector<8x64xf32>
    %157 = arith.mulf %148, %156 : vector<8x64xf32>
    %cst_56 = arith.constant 1.000000e+00 : f32
    %158 = vector.broadcast %cst_56 : f32 to vector<8x64xf32>
    %159 = arith.addf %154, %158 : vector<8x64xf32>
    %160 = arith.divf %157, %159 : vector<8x64xf32>
    %161 = arith.truncf %160 : vector<8x64xf32> to vector<8x64xbf16>
    %c0_57 = arith.constant 0 : index
    %c0_58 = arith.constant 0 : index
    %162 = vector.load %arg12[%c0_57, %c0_58] : memref<64x32xbf16, #tpu.memory_space<vmem>>, vector<64x32xbf16>
    %cst_59 = arith.constant dense<0.000000e+00> : vector<8x32xf32>
    %163 = tpu.matmul %161, %162, %cst_59 {dimension_numbers = #tpu.dot_dimension_numbers<[1], [0], [0], [1], [0, 0, 1, 1], [], []>} : vector<8x64xbf16>, vector<64x32xbf16>, vector<8x32xf32> -> vector<8x32xf32>
    %c0_60 = arith.constant 0 : index
    %c0_61 = arith.constant 0 : index
    %164 = vector.load %arg13[%c0_60, %c0_61] : memref<1x32xf32, #tpu.memory_space<vmem>>, vector<1x32xf32>
    %165 = vector.broadcast %164 : vector<1x32xf32> to vector<8x32xf32>
    %166 = arith.addf %163, %165 : vector<8x32xf32>
    %167 = arith.addf %118, %166 : vector<8x32xf32>
    %168 = vector.shape_cast %167 : vector<8x32xf32> to vector<1x8x32xf32>
    %c0_62 = arith.constant 0 : index
    %c0_63 = arith.constant 0 : index
    %c0_64 = arith.constant 0 : index
    %169 = vector.load %arg14[%c0_62, %c0_63, %c0_64] : memref<1x8x32xf32, #tpu.memory_space<vmem>>, vector<1x8x32xf32>
    tpu.vector_store %arg14[%c0_62, %c0_63, %c0_64], %168 {strides = array<i32>} : memref<1x8x32xf32, #tpu.memory_space<vmem>>, vector<1x8x32xf32>,
    return
  }
  func.func @transform_0(%arg0: i32) -> (i32, i32, i32) {
    %c0_i32 = arith.constant 0 : i32
    %c0_i32_0 = arith.constant 0 : i32
    %c0_i32_1 = arith.constant 0 : i32
    return %arg0, %c0_i32, %c0_i32_0 : i32, i32, i32
  }
  func.func @transform_1(%arg0: i32) -> (i32, i32) {
    %c0_i32 = arith.constant 0 : i32
    %c0_i32_0 = arith.constant 0 : i32
    %c0_i32_1 = arith.constant 0 : i32
    return %c0_i32, %c0_i32_0 : i32, i32
  }
  func.func @transform_2(%arg0: i32) -> (i32, i32) {
    %c0_i32 = arith.constant 0 : i32
    %c0_i32_0 = arith.constant 0 : i32
    %c0_i32_1 = arith.constant 0 : i32
    return %c0_i32, %c0_i32_0 : i32, i32
  }
  func.func @transform_3(%arg0: i32) -> (i32, i32) {
    %c0_i32 = arith.constant 0 : i32
    %c0_i32_0 = arith.constant 0 : i32
    %c0_i32_1 = arith.constant 0 : i32
    return %c0_i32, %c0_i32_0 : i32, i32
  }
  func.func @transform_4(%arg0: i32) -> (i32, i32) {
    %c0_i32 = arith.constant 0 : i32
    %c0_i32_0 = arith.constant 0 : i32
    %c0_i32_1 = arith.constant 0 : i32
    return %c0_i32, %c0_i32_0 : i32, i32
  }
  func.func @transform_5(%arg0: i32) -> (i32, i32, i32) {
    %c0_i32 = arith.constant 0 : i32
    %c0_i32_0 = arith.constant 0 : i32
    %c0_i32_1 = arith.constant 0 : i32
    %c0_i32_2 = arith.constant 0 : i32
    return %c0_i32, %c0_i32_0, %c0_i32_1 : i32, i32, i32
  }
  func.func @transform_6(%arg0: i32) -> (i32, i32) {
    %c0_i32 = arith.constant 0 : i32
    %c0_i32_0 = arith.constant 0 : i32
    %c0_i32_1 = arith.constant 0 : i32
    return %c0_i32, %c0_i32_0 : i32, i32
  }
  func.func @transform_7(%arg0: i32) -> (i32, i32) {
    %c0_i32 = arith.constant 0 : i32
    %c0_i32_0 = arith.constant 0 : i32
    %c0_i32_1 = arith.constant 0 : i32
    return %c0_i32, %c0_i32_0 : i32, i32
  }
  func.func @transform_8(%arg0: i32) -> (i32, i32) {
    %c0_i32 = arith.constant 0 : i32
    %c0_i32_0 = arith.constant 0 : i32
    %c0_i32_1 = arith.constant 0 : i32
    return %c0_i32, %c0_i32_0 : i32, i32
  }
  func.func @transform_9(%arg0: i32) -> (i32, i32) {
    %c0_i32 = arith.constant 0 : i32
    %c0_i32_0 = arith.constant 0 : i32
    %c0_i32_1 = arith.constant 0 : i32
    return %c0_i32, %c0_i32_0 : i32, i32
  }
  func.func @transform_10(%arg0: i32) -> (i32, i32) {
    %c0_i32 = arith.constant 0 : i32
    %c0_i32_0 = arith.constant 0 : i32
    %c0_i32_1 = arith.constant 0 : i32
    return %c0_i32, %c0_i32_0 : i32, i32
  }
  func.func @transform_11(%arg0: i32) -> (i32, i32) {
    %c0_i32 = arith.constant 0 : i32
    %c0_i32_0 = arith.constant 0 : i32
    %c0_i32_1 = arith.constant 0 : i32
    return %c0_i32, %c0_i32_0 : i32, i32
  }
  func.func @transform_12(%arg0: i32) -> (i32, i32) {
    %c0_i32 = arith.constant 0 : i32
    %c0_i32_0 = arith.constant 0 : i32
    %c0_i32_1 = arith.constant 0 : i32
    return %c0_i32, %c0_i32_0 : i32, i32
  }
  func.func @transform_13(%arg0: i32) -> (i32, i32, i32) {
    %c0_i32 = arith.constant 0 : i32
    %c0_i32_0 = arith.constant 0 : i32
    %c0_i32_1 = arith.constant 0 : i32
    return %arg0, %c0_i32, %c0_i32_0 : i32, i32, i32
  }
}

</mosaic_0001>

<bundles_post_ra>
// kernel: tpu_custom_call.1
= control target key start
LH: loop header
LB: loop body
LE: loop exit
PB: predicated region body
PF: predicated region fallthrough
CT: control target
= control target key end

     0   :  { %s2830_s0 = inlined_call_operand.vmem [shape: f32[2,8,32], index: 0, kind: input, shape index: {}]   ;;  %s2831_s1 = inlined_call_operand.vmem [shape: f32[1,32], index: 1, kind: input, shape index: {}]   ;;  %s2832_s2 = inlined_call_operand.vmem [shape: f32[1,32], index: 2, kind: input, shape index: {}]   ;;  %s2833_s3 = inlined_call_operand.vmem [shape: bf16[32,96], index: 3, kind: input, shape index: {}]   ;;  %s2834_s4 = inlined_call_operand.hbm [shape: f32[1,96], index: 4, kind: input, shape index: {}]   ;;  %s2835_s5 = inlined_call_operand.vmem [shape: bf16[4,8,32], index: 5, kind: input, shape index: {}]   ;;  %s2836_s6 = inlined_call_operand.hbm [shape: f32[1,32], index: 6, kind: input, shape index: {}]   ;;  %s2837_s7 = inlined_call_operand.hbm [shape: f32[1,32], index: 7, kind: input, shape index: {}]   ;;  %s2838_s8 = inlined_call_operand.hbm [shape: f32[1,32], index: 8, kind: input, shape index: {}]   ;;  %s2839_s9 = inlined_call_operand.vmem [shape: bf16[32,64], index: 9, kind: input, shape index: {}]   ;;  %s2840_s10 = inlined_call_operand.vmem [shape: f32[1,64], index: 10, kind: input, shape index: {}]   ;;  %s2841_s11 = inlined_call_operand.vmem [shape: bf16[64,32], index: 11, kind: input, shape index: {}]   ;;  %s2842_s12 = inlined_call_operand.vmem [shape: f32[1,32], index: 12, kind: input, shape index: {}]   ;;  %s2843_s13 = inlined_call_operand.hbm [shape: f32[2,8,32], index: 13, kind: output, shape index: {}]  }
   0x1   :  { %2854 = sst [smem:[#allocation21_spill]] %s2843_s13 }
   0x2   :  { %18 = vsyncpa [#allocation3], 0 }
   0x3   :  { %19 = vsyncpa [#allocation6], 0 }
   0x4   :  { %20 = vsyncpa [#allocation9], 0 }
   0x5   :  { %21 = vsyncpa [#allocation4], 0 }
   0x6   :  { %23 = vsyncpa [#allocation4 + $0x1], 0  ;;  %s2363_s25 = smov 0   ;;  %s2365_s26 = smov 0  }
   0x7   :  { %s2367_s27 = smov 0   ;;  %s2369_s28 = smov 0  }
   0x8 LB: > { %2855 = sst [smem:[#allocation15_spill]] %s2231_s25  ;;  %s2384_s29 = sadd.s32 4294967295, %s2243_s28   ;;  %s2243_s28 = sphi %s2369_s28, %s2887_s28   ;;  %s2239_s27 = sphi %s2367_s27, %s2889_s27   ;;  %s2235_s26 = sphi %s2365_s26, %s2891_s26   ;;  %s2231_s25 = sphi %s2363_s25, %s2890_s25  }
   0x9   : > { %2856 = sst [smem:[#allocation16_spill]] %s2239_s27  ;;  %s1650_s30 = sadd.s32 4294967294, %s2243_s28  }
   0xa   : > { %2857 = sst [smem:[#allocation17_spill]] %s2243_s28  ;;  %s2388_s14 = sadd.s32 1, %s2243_s28  }
   0xb   : > { %2858 = sst [smem:[#allocation18_spill]] %s2388_s14  ;;  %s314_s15 = sadd.s32 1, %s2239_s27 }
   0xc   : > { %s311_s16 = ssub.s32 %s2243_s28, %s2388_s14  ;;  %p324_p0 = scmp.ne.s32.totalorder %s2239_s27, %s2235_s26 }
   0xd   : > { %p312_p1 = scmp.eq.s32.totalorder %s311_s16, 0  ;;  %p325_p2 = scmp.eq.s32.totalorder %s2384_s29, 1 }
   0xe   : > { %p330_p3 = scmp.ne.s32.totalorder %s2235_s26, %s2231_s25  ;;  %p331_p4 = scmp.eq.s32.totalorder %s1650_s30, 1 }
   0xf   : > { %s2399_s17 = scalar_select %p312_p1, %s2239_s27, %s314_s15  }
  0x10   : > { %p2401_p5 = por %p325_p2, %p324_p0  ;;  %p2405_p6 = por %p331_p4, %p330_p3 }
  0x11   : > { %2859 = sst [smem:[#allocation19_spill]] %s2399_s17  ;;  %p1651_p7 = scmp.ge.s32.totalorder %s2243_s28, 1 }
  0x12   : > { %s2860_s18 = scalar_select %p2401_p5, 1, 0 }
  0x13   : > { %s2861_s19 = scalar_select %p2405_p6, 1, 0 }
  0x14   : > { %p338_p8 = scmp.lt.s32.totalorder %s2243_s28, 3  ;;  %p2849_p9 = scmp.eq.s32.totalorder %s2384_s29, 0 }
  0x15   : > { %2862 = sst [smem:[#allocation20_spill]] %s2861_s19  ;;  %s2281_s21 = smov [#allocation5]  }
  0x16   : > { %p2412_p10 = pnand %p1651_p7, %p338_p8  ;;  %s374_s22 = sshll.u32 %s2281_s21, 4  ;;  %s375_s22 = int_to_ptr.vmem [resolvable:$true] %s374_s22 }
  0x17   : > { %s2282_s23 = smov [#allocation2]   ;;  %s2283_s15 = smov [#allocation7]  }
  0x18   : > { %s2863_s20 = scalar_select %p2412_p10, 1, 0 }
  0x19   : > { %p1856_p11 = pneg %p2412_p10  ;;  %s360_s24 = sshll.u32 %s2282_s23, 4  ;;  %s2424_s24 = int_to_ptr.vmem [resolvable:$true] %s360_s24 }
  0x1a   : > { %s385_s16 = sshll.u32 %s2283_s15, 4  ;;  %s2021_s21 = scalar_lea.hbm %s2836_s6, 16  ;;  %s2426_s16 = int_to_ptr.vmem [resolvable:$true] %s385_s16 }
  0x1b   : > { %p2420_p12 = pnand %p2849_p9, %p1856_p11  ;;  %p2022_p13 = scmp.ne.s32.totalorder %s2836_s6, %s2021_s21 }
  0x1c   : > { %p2028_p3 = scmp.lt.u32.totalorder %s2021_s21, %s2836_s6 }
  0x1d   : > { %p2436_p0 = pneg %p2420_p12 }
  0x1f   : > { %p2024_p1 = pnand %p2436_p0, %p2022_p13 }
  0x21   : > { %p2025_p2 = pneg %p2024_p1 }
  0x23   : > { %p2030_p4 = pnand %p2028_p3, %p2025_p2 }
  0x25   : > { %2033 = shalt.err (!%p2030_p4)
}
  0x26   : > { %s2034_s27 = scalar_lea.vmem %s375_s22, 16  ;;  %s2041_s14 = scalar_lea.vmem %s375_s22, 32 }
  0x27   : > { %p2035_p7 = scmp.ne.s32.totalorder %s375_s22, %s2034_s27  ;;  %p2042_p9 = scmp.lt.s32.totalorder %s375_s22, %s375_s22 }
  0x28   : > { %p2043_p6 = scmp.lt.s32.totalorder %s2041_s14, %s2034_s27 }
  0x29   : > { %p2037_p8 = pnand %p2035_p7, %p2436_p0 }
  0x2a   : > { %p2044_p5 = por %p2043_p6, %p2042_p9 }
  0x2b   : > { %p2038_p11 = pneg %p2037_p8 }
  0x2d   : > { %p2045_p10 = pnand %p2044_p5, %p2038_p11 }
  0x2f   : > { %2048 = shalt.err (!%p2045_p10)
}
  0x30   : > { %1862 = dma.hbm_to_vmem [thread:$0]  (!%p2420_p12), %s2836_s6, 16, %s375_s22, [#allocation6]  }
  0x31   : > { %s2049_s15 = scalar_lea.hbm %s2834_s4, 16 }
  0x32   : > { %p2050_p13 = scmp.ne.s32.totalorder %s2834_s4, %s2049_s15  ;;  %p2056_p5 = scmp.lt.u32.totalorder %s2049_s15, %s2834_s4 }
  0x34   : > { %p2052_p1 = pnand %p2050_p13, %p2436_p0 }
  0x36   : > { %p2053_p6 = pneg %p2052_p1 }
  0x38   : > { %p2058_p9 = pnand %p2056_p5, %p2053_p6 }
  0x3a   : > { %2061 = shalt.err (!%p2058_p9)
}
  0x3b   : > { %s2062_s22 = scalar_lea.vmem %s2424_s24, 16  ;;  %s2069_s13 = scalar_lea.vmem %s2424_s24, 32 }
  0x3c   : > { %p2063_p10 = scmp.ne.s32.totalorder %s2424_s24, %s2062_s22  ;;  %p2070_p4 = scmp.lt.s32.totalorder %s2424_s24, %s2424_s24 }
  0x3d   : > { %p2071_p7 = scmp.lt.s32.totalorder %s2069_s13, %s2062_s22 }
  0x3e   : > { %p2065_p2 = pnand %p2063_p10, %p2436_p0 }
  0x3f   : > { %p2072_p8 = por %p2071_p7, %p2070_p4 }
  0x40   : > { %p2066_p3 = pneg %p2065_p2 }
  0x42   : > { %p2073_p11 = pnand %p2072_p8, %p2066_p3 }
  0x44   : > { %2076 = shalt.err (!%p2073_p11)
}
  0x45   : > { %1859 = dma.hbm_to_vmem [thread:$0]  (!%p2420_p12), %s2834_s4, 16, %s2424_s24, [#allocation3]  }
  0x46   : > { %s2077_s21 = scalar_lea.hbm %s2837_s7, 16 }
  0x47   : > { %p2078_p13 = scmp.ne.s32.totalorder %s2837_s7, %s2077_s21  ;;  %p2084_p5 = scmp.lt.u32.totalorder %s2077_s21, %s2837_s7 }
  0x49   : > { %p2080_p1 = pnand %p2078_p13, %p2436_p0 }
  0x4b   : > { %p2081_p6 = pneg %p2080_p1 }
  0x4d   : > { %p2086_p9 = pnand %p2084_p5, %p2081_p6 }
  0x4f   : > { %2089 = shalt.err (!%p2086_p9)
}
  0x50   : > { %s2090_s24 = scalar_lea.vmem %s2426_s16, 16  ;;  %s2097_s13 = scalar_lea.vmem %s2426_s16, 32 }
  0x51   : > { %p2091_p10 = scmp.ne.s32.totalorder %s2426_s16, %s2090_s24  ;;  %p2098_p4 = scmp.lt.s32.totalorder %s2426_s16, %s2426_s16 }
  0x52   : > { %p2099_p7 = scmp.lt.s32.totalorder %s2097_s13, %s2090_s24 }
  0x53   : > { %p2093_p2 = pnand %p2091_p10, %p2436_p0 }
  0x54   : > { %p2100_p8 = por %p2099_p7, %p2098_p4 }
  0x55   : > { %p2094_p3 = pneg %p2093_p2 }
  0x57   : > { %p2101_p11 = pnand %p2100_p8, %p2094_p3 }
  0x59   : > { %2104 = shalt.err (!%p2101_p11)
}
  0x5a   : > { %1865 = dma.hbm_to_vmem [thread:$0]  (!%p2420_p12), %s2837_s7, 16, %s2426_s16, [#allocation6]  }
  0x5b   : > { %s2284_s19 = smov [#allocation8]   ;;  %s2105_s27 = scalar_lea.hbm %s2838_s8, 16 }
  0x5c   : > { %s396_s25 = sshll.u32 %s2284_s19, 4  ;;  %p2106_p13 = scmp.ne.s32.totalorder %s2838_s8, %s2105_s27  ;;  %s397_s25 = int_to_ptr.vmem [resolvable:$true] %s396_s25 }
  0x5d   : > { %p2112_p5 = scmp.lt.u32.totalorder %s2105_s27, %s2838_s8 }
  0x5e   : > { %p2108_p1 = pnand %p2106_p13, %p2436_p0 }
  0x60   : > { %p2109_p6 = pneg %p2108_p1 }
  0x62   : > { %p2114_p9 = pnand %p2112_p5, %p2109_p6 }
  0x64   : > { %2117 = shalt.err (!%p2114_p9)
}
  0x65   : > { %s2118_s16 = scalar_lea.vmem %s397_s25, 16  ;;  %s2125_s28 = scalar_lea.vmem %s397_s25, 32 }
  0x66   : > { %p2119_p10 = scmp.ne.s32.totalorder %s397_s25, %s2118_s16  ;;  %p2126_p4 = scmp.lt.s32.totalorder %s397_s25, %s397_s25 }
  0x67   : > { %p2127_p7 = scmp.lt.s32.totalorder %s2125_s28, %s2118_s16 }
  0x68   : > { %p2121_p2 = pnand %p2119_p10, %p2436_p0 }
  0x69   : > { %p2128_p8 = por %p2127_p7, %p2126_p4 }
  0x6a   : > { %p2122_p3 = pneg %p2121_p2 }
  0x6c   : > { %p2129_p11 = pnand %p2128_p8, %p2122_p3 }
  0x6e   : > { %2132 = shalt.err (!%p2129_p11)
}
  0x6f   : > { %1868 = dma.hbm_to_vmem [thread:$0]  (!%p2420_p12), %s2838_s8, 16, %s397_s25, [#allocation9]  }
  0x70   : > { %p2866_p13 = scmp.ne.s32.totalorder %s2863_s20, 0 }
  0x71   : > { %p2867_p1 = scmp.eq.s32.totalorder (!%p2866_p13), %s2384_s29, 0 }
  0x72   : > { %428 = sbr.rel (%p2866_p13) target bundleno = 2836 (0xb14), region = 72 }
  0x79   : > { %2214 = dma.done.wait (%p2867_p1), [#allocation3], 16   ;;  %p2868_p0 = pmov %p2867_p1 }
  0x7b   : > { %2216 = vsyncadd (%p2868_p0), [#allocation3], 4294967280  ;;  %p2869_p6 = pmov %p2868_p0 }
  0x7c   : > { %p2870_p5 = pmov %p2868_p0 }
  0x7d   : > { %2218 = dma.done.wait (%p2869_p6), [#allocation6], 32  }
  0x7e   : > { %2220 = vsyncadd (%p2870_p5), [#allocation6], 4294967264  ;;  %p2871_p9 = pmov %p2868_p0 }
  0x7f   : > { %p2872_p12 = pmov %p2868_p0 }
  0x80   : > { %2222 = dma.done.wait (%p2871_p9), [#allocation9], 16  }
  0x81   : > { %2224 = vsyncadd (%p2872_p12), [#allocation9], 4294967280  ;;  %p483_p10 = scmp.lt.s32.totalorder %s2384_s29, 1  ;;  %vm491_vm0 = vcmask 261120   ;;  %s480_s15 = sand.u32 1, %s2235_s26   ;;  %v1997_v7 = vld [vmem:[%s2833_s3] sm:$0xff]  }
  0x82   : > { %s2549_s22 = sshll.u32 %s480_s15, 3  ;;  %v2285_v8 = vmov 0.0   ;;  %vm2286_vm1 = vmmov 0   ;;  %v1998_v9 = vld [vmem:[%s2833_s3 + $0x8] sm:$0xff]   ;;  %v1664_v14 = vld [vmem:[%s2831_s1] ss:$0 sm:$0xff] }
  0x83   : > { %s484_s20 = scalar_select %p483_p10, %s2384_s29, 1  ;;  %1738 = vmatprep.subr.bf16.mxu1 %v2285_v8  ;;  %1742 = vmatprep.mubr.msk.bf16.mxu1 %vm2286_vm1, %v2285_v8  ;;  %v1665_v16 = vld [vmem:[%s2832_s2] ss:$0 sm:$0xff]  ;;  %vm604_vm2 = vcmask 64512  }
  0x84   : > { %1739 = vmatpush3.bf16.msra.mxu1 %v1997_v7  ;;  %1752 = vmatprep.subr.bf16.mxu0 %v2285_v8  ;;  %v1666_v20 = vld [vmem:[#allocation2] ss:$0 sm:$0xff]  ;;  %s2289_s23 = smov 112   ;;  %s2290_s25 = smov 96   ;;  %v2616_v7 = vmov 0.0  }
  0x85   : > { %s1663_s30 = sshll.u32 %s484_s20, 3  ;;  %1740 = vmatprep.subr.bf16.mxu1 %v2285_v8  ;;  %1754 = vmatprep.mubr.msk.bf16.mxu0 %vm2286_vm1, %v2285_v8  ;;  %s2287_s20 = smov 104  }
  0x86   : > { %s486_s21 = scalar_lea.vmem %s2830_s0, %s1663_s30  ;;  %s2288_s30 = smov 120  }
  0x87   : > { %v2537_v0 = vld [vmem:[%s486_s21] sm:$0xff]  ;;  %s482_s21 = scalar_lea.vmem [#allocation10], %s2549_s22  ;;  %s2630_s27 = smov 0  }
  0x88   : > { %v492_v1 = vsel %vm491_vm0, %v2537_v0, 0.0  ;;  %1741 = vmatpush3.bf16.msra.mxu1 %v1998_v9  ;;  %v2618_v9 = vmov 0.0  }
  0x89   : > { %493 = vadd.xlane.f32.xlu0 %v492_v1  ;;  %1746 = vmatprep.subr.bf16.mxu1 %v2285_v8 }
 0x116   : > { %v494_v2 = vpop.xlane.xlu0 %493 }
 0x117   : > { %v496_v3 = vmul.f32 0.03125, %v494_v2 }
 0x119   : > { %v497_v4 = vsub.f32 %v2537_v0, %v496_v3 }
 0x11b   : > { %v498_v5 = vmul.f32 %v497_v4, %v497_v4 }
 0x11d   : > { %v499_v6 = vsel %vm491_vm0, %v498_v5, 0.0 }
 0x11e   : > { %500 = vadd.xlane.f32.xlu0 %v499_v6  ;;  %v2614_v6 = vmov 0.0  }
 0x1ab   : > { %v501_v10 = vpop.xlane.xlu0 %500 }
 0x1ac   : > { %v502_v11 = vmul.f32 0.03125, %v501_v10  ;;  %v2620_v10 = vmov 0.0  }
 0x1ae   : > { %v503_v12 = vadd.f32 1e-05, %v502_v11  ;;  %v2622_v11 = vmov -1.0  }
 0x1b0   : > { %1999 = vrsqrt.f32 %v503_v12  ;;  %v2624_v12 = vmov -1.0  }
 0x1ba   : > { %v2000_v13 = vpop.eup %1999 }
 0x1bb   : > { %v505_v15 = vmul.f32 %v2000_v13, %v497_v4  ;;  %v2626_v13 = vmov -1.0  }
 0x1bd   : > { %v512_v17 = vmul.f32 %v1664_v14, %v505_v15  ;;  %v2628_v14 = vmov -1.0  }
 0x1bf   : > { %v519_v18 = vadd.f32 %v1665_v16, %v512_v17 }
 0x1c1   : > { %v520_v19 = vpack.c.bf16 %v519_v18, %v519_v18 }
 0x1c3   : > { %1743 = vmatmul.mubr.msk.bf16.vlgmr.msra.gmra.mrb[0].mxu1 %vm491_vm0, %v520_v19 }
 0x1c4   : > { %1748 = vmatprep.mubr.msk.bf16.mxu1 %vm2286_vm1, %v2285_v8 }
 0x296   : > { %v581_v21 = vpop.f32.mrb[0].mxu1 }
 0x297   : > { %v582_v22 = vadd.f32 %v1666_v20, %v581_v21  ;;  %v1744_v23 = vpop.f32.mrb[1].mxu1 }
 0x298   : > { %v584_v24 = vpop.f32.mrb[2].mxu1 }
 0x299   : > { %594 = vrot.lane.b32.xlu0 %v582_v22, %s2287_s20  ;;  %588 = vrot.lane.b32.xlu1 %v582_v22, %s2288_s30  ;;  %v1745_v25 = vpop.f32.mrb[3].mxu1  ;;  %v2571_v26 = vpack.c.bf16 %v582_v22, %v582_v22 }
 0x29d   : > { %591 = vrot.lane.b32.xlu1 %v582_v22, %s2289_s23 }
 0x2a1   : > { %602 = vrot.lane.b32.xlu1 %v2571_v26, %s2290_s25 }
 0x30b   : > { %v589_v27 = vpop.permute.xlu1 %588  ;;  %v595_v31 = vpop.permute.xlu0 %594 }
 0x30c   : > { %v2574_v28 = vpack.c.bf16 %v589_v27, %v589_v27  ;;  %v2580_v33 = vpack.c.bf16 %v595_v31, %v595_v31 }
 0x30e   : > { %652 = vrot.lane.b32.xlu1 %v2574_v28, %s2290_s25 }
 0x30f   : > { %v592_v29 = vpop.permute.xlu1 %591 }
 0x310   : > { %v2577_v30 = vpack.c.bf16 %v592_v29, %v592_v29 }
 0x312   : > { %701 = vrot.lane.b32.xlu1 %v2577_v30, %s2290_s25 }
 0x313   : > { %v603_v32 = vpop.permute.xlu1 %602 }
 0x314   : > { %v609_v34 = vsel %vm604_vm2, %v603_v32, 0 }
 0x315   : > { %1747 = vmatpush3.bf16.xpose.msra.mxu1 %v609_v34 }
 0x316   : > { %750 = vrot.lane.b32.xlu1 %v2580_v33, %s2290_s25  ;;  %1758 = vmatprep.subr.bf16.mxu1 %v2285_v8 }
 0x31c   : > { %1749 = vmatmul.mubr.msk.bf16.vlgmr.msra.gmra.mrb[4].mxu1 %vm604_vm2, %v2571_v26 }
 0x31d   : > { %1760 = vmatprep.mubr.msk.bf16.mxu1 %vm2286_vm1, %v2285_v8 }
 0x380   : > { %v653_v35 = vpop.permute.xlu1 %652 }
 0x381   : > { %v658_v36 = vsel %vm604_vm2, %v653_v35, 0 }
 0x382   : > { %1753 = vmatpush3.bf16.xpose.msra.mxu0 %v658_v36 }
 0x383   : > { %1764 = vmatprep.subr.bf16.mxu0 %v2285_v8 }
 0x384   : > { %v702_v37 = vpop.permute.xlu1 %701 }
 0x385   : > { %v707_v38 = vsel %vm604_vm2, %v702_v37, 0 }
 0x386   : > { %1759 = vmatpush3.bf16.xpose.msra.mxu1 %v707_v38 }
 0x388   : > { %v751_v39 = vpop.permute.xlu1 %750 }
 0x389   : > { %v756_v40 = vsel %vm604_vm2, %v751_v39, 0  ;;  %1755 = vmatmul.mubr.msk.bf16.vlgmr.msra.gmra.mrb[0].mxu0 %vm604_vm2, %v2574_v28 }
 0x38a   : > { %1765 = vmatpush3.bf16.xpose.msra.mxu0 %v756_v40  ;;  %1766 = vmatprep.mubr.msk.bf16.mxu0 %vm2286_vm1, %v2285_v8 }
 0x38d   : > { %1761 = vmatmul.mubr.msk.bf16.vlgmr.msra.gmra.mrb[8].mxu1 %vm604_vm2, %v2577_v30 }
 0x391   : > { %1767 = vmatmul.mubr.msk.bf16.vlgmr.msra.gmra.mrb[4].mxu0 %vm604_vm2, %v2580_v33 }
 0x3ef   : > { %v645_v41 = vpop.f32.mrb[4].mxu1 }
 0x3f0   : > { %v1750_v42 = vpop.f32.mrb[5].mxu1  ;;  %v798_v43 = vsel %vm604_vm2, %v645_v41, -inf }
 0x3f1   : > { %799 = vmax.xlane.f32.xlu1 %v798_v43  ;;  %v648_v44 = vpop.f32.mrb[6].mxu1 }
 0x3f2   : > { %v1751_v45 = vpop.f32.mrb[7].mxu1 }
 0x45c   : > { %v694_v46 = vpop.f32.mrb[0].mxu0 }
 0x45d   : > { %v1756_v47 = vpop.f32.mrb[1].mxu0  ;;  %v801_v48 = vsel %vm604_vm2, %v694_v46, -inf }
 0x45e   : > { %802 = vmax.xlane.f32.xlu0 %v801_v48  ;;  %v697_v49 = vpop.f32.mrb[2].mxu0 }
 0x45f   : > { %v1757_v50 = vpop.f32.mrb[3].mxu0 }
 0x460   : > { %v743_v51 = vpop.f32.mrb[8].mxu1 }
 0x461   : > { %v1762_v52 = vpop.f32.mrb[9].mxu1  ;;  %v804_v53 = vsel %vm604_vm2, %v743_v51, -inf }
 0x462   : > { %805 = vmax.xlane.f32.xlu1 %v804_v53  ;;  %v746_v54 = vpop.f32.mrb[10].mxu1 }
 0x463   : > { %v1763_v55 = vpop.f32.mrb[11].mxu1 }
 0x464   : > { %v792_v56 = vpop.f32.mrb[4].mxu0 }
 0x465   : > { %v1768_v57 = vpop.f32.mrb[5].mxu0  ;;  %v807_v58 = vsel %vm604_vm2, %v792_v56, -inf }
 0x466   : > { %808 = vmax.xlane.f32.xlu0 %v807_v58  ;;  %v795_v59 = vpop.f32.mrb[6].mxu0 }
 0x467   : > { %v1769_v60 = vpop.f32.mrb[7].mxu0 }
 0x47e   : > { %v800_v61 = vpop.xlane.xlu1 %799 }
 0x47f   : > { %v2605_v62 = vsub.f32 %v645_v41, %v800_v61 }
 0x4eb   : > { %v803_v63 = vpop.xlane.xlu0 %802 }
 0x4ec   : > { %v2607_v1 = vsub.f32 %v694_v46, %v803_v63 }
 0x4ef   : > { %v806_v2 = vpop.xlane.xlu1 %805 }
 0x4f0   : > { %v2609_v3 = vsub.f32 %v743_v51, %v806_v2 }
 0x4f3   : > { %v809_v4 = vpop.xlane.xlu0 %808 }
 0x4f4   : > { %v2611_v5 = vsub.f32 %v792_v56, %v809_v4 }
 0x4f5 LB: >> { %v828_v15 = vadd.f32 %v2259_v10, %v2275_v14  ;;  %v830_v16 = vadd.f32 %v2251_v7, %v2267_v12  ;;  %v829_v19 = vadd.f32 %v2255_v9, %v2271_v13  ;;  %v831_v23 = vadd.f32 %v2247_v6, %v2263_v11  ;;  %s819_s27 = sadd.s32 1, %s2279_s27   ;;  %s2279_s27 = sphi %s2630_s27, %s819_s27   ;;  %v2275_v14 = vphi %v2628_v14, %v2880_v14   ;;  %v2271_v13 = vphi %v2626_v13, %v2879_v13   ;;  %v2267_v12 = vphi %v2624_v12, %v2878_v12   ;;  %v2263_v11 = vphi %v2622_v11, %v2877_v11   ;;  %v2259_v10 = vphi %v2620_v10, %v2876_v10   ;;  %v2255_v9 = vphi %v2618_v9, %v2875_v9   ;;  %v2251_v7 = vphi %v2616_v7, %v2874_v7   ;;  %v2247_v6 = vphi %v2614_v6, %v2873_v6  }
 0x4f6   : >> { %p816_p2 = scmp.ge.s32.totalorder %s819_s27, 23  }
 0x4f7   : >> { %v832_v17 = vmul.f32 0.5, %v828_v15  ;;  %v834_v18 = vmul.f32 0.5, %v830_v16  ;;  %v833_v22 = vmul.f32 0.5, %v829_v19  ;;  %v835_v29 = vmul.f32 0.5, %v831_v23  ;;  %1770 = vmatprep.subr.bf16.mxu1 (%p816_p2), %v2285_v8  ;;  %1776 = vmatprep.subr.bf16.mxu0 (%p816_p2), %v2285_v8  ;;  %s2291_s14 = smov (%p816_p2), 64   ;;  %s1700_s24 = sshll.u32 (%p816_p2), %s2384_s29, 7 }
 0x4f8   : > { %1772 = vmatprep.mubr.msk.bf16.mxu1 (%p816_p2), %vm2286_vm1, %v2285_v8  ;;  %1778 = vmatprep.mubr.msk.bf16.mxu0 (%p816_p2), %vm2286_vm1, %v2285_v8  ;;  %vm921_vm7 = vcmask (%p816_p2), 1043456   ;;  %vm1461_vm8 = vcmask (%p816_p2), 523264   ;;  %s1521_s13 = sshll.u32 (%p816_p2), %s482_s21, 4  ;;  %s2881_s17 = sld [smem:[#allocation21_spill]] (%p816_p2)  ;;  %s2785_s13 = int_to_ptr.vmem [resolvable:$true] %s1521_s13 }
 0x4f9   : >> { %v836_v20 = vsub.f32 %v2605_v62, %v832_v17  ;;  %v838_v21 = vsub.f32 %v2609_v3, %v834_v18  ;;  %v837_v27 = vsub.f32 %v2607_v1, %v833_v22  ;;  %v839_v35 = vsub.f32 %v2611_v5, %v835_v29  ;;  %s1508_s29 = scalar_lea.sflag (%p816_p2), [#allocation4], %s480_s15  ;;  %s2133_s20 = scalar_lea.vmem (%p816_p2), %s2785_s13, 128 }
 0x4fa   : > { %p2134_p3 = scmp.ne.s32.totalorder (%p816_p2), %s2785_s13, %s2133_s20  ;;  %p2882_p4 = scmp.ne.s32.totalorder (%p816_p2), %s2860_s18, 0 }
 0x4fb   : >> { %v840_v24 = vmax.f32 %v836_v20, 0.0  ;;  %v842_v25 = vmax.f32 %v838_v21, 0.0  ;;  %v841_v34 = vmax.f32 %v837_v27, 0.0  ;;  %v843_v39 = vmax.f32 %v839_v35, 0.0  ;;  %s2292_s30 = smov (%p816_p2), [#allocation10]  }
 0x4fc   : > { %p2135_p7 = pnand (%p816_p2), %p2134_p3, %p2882_p4  ;;  %s2137_s23 = sshll.u32 (%p816_p2), %s2292_s30, 4  ;;  %s2138_s23 = int_to_ptr.vmem [resolvable:$false] %s2137_s23 }
 0x4fd   : >> { %v844_v31 = vmul.f32 %v840_v24, %v840_v24  ;;  %v846_v32 = vmul.f32 %v842_v25, %v842_v25  ;;  %v845_v38 = vmul.f32 %v841_v34, %v841_v34  ;;  %v847_v41 = vmul.f32 %v843_v39, %v843_v39  ;;  %s2139_s25 = scalar_lea.vmem (%p816_p2), %s2138_s23, 256  ;;  %p2140_p11 = scmp.lt.s32.totalorder (%p816_p2), %s2785_s13, %s2138_s23 }
 0x4fe   : > { %s2783_s19 = scalar_lea.hbm (%p816_p2), %s2881_s17, %s1700_s24  ;;  %p2136_p8 = pneg (%p816_p2), %p2135_p7 }
 0x4ff   : >> { %v848_v36 = vsel %vm604_vm2, %v844_v31, 0.0  ;;  %v854_v37 = vsel %vm604_vm2, %v846_v32, 0.0  ;;  %v851_v40 = vsel %vm604_vm2, %v845_v38, 0.0  ;;  %v857_v42 = vsel %vm604_vm2, %v847_v41, 0.0  ;;  %v1678_v38 = vld [vmem:[%s2835_s5 + $0x4] sm:$0xf] (%p816_p2)  ;;  %p2141_p13 = scmp.lt.s32.totalorder (%p816_p2), %s2139_s25, %s2133_s20 }
 0x500   : >> { %849 = vadd.xlane.f32.xlu0 %v848_v36  ;;  %855 = vadd.xlane.f32.xlu1 %v854_v37  ;;  %v1118_v41 = vsel (%p816_p2), %vm921_vm7, %v1678_v38, 0 }
 0x501   : > { %p2142_p1 = por (%p816_p2), %p2141_p13, %p2140_p11 }
 0x503   : > { %p2143_p0 = pnand (%p816_p2), %p2142_p1, %p2136_p8 }
 0x504   : >> { %852 = vadd.xlane.f32.xlu0 %v851_v40  ;;  %858 = vadd.xlane.f32.xlu1 %v857_v42 }
 0x58d   : >> { %v850_v43 = vpop.xlane.xlu0 %849  ;;  %v856_v44 = vpop.xlane.xlu1 %855 }
 0x58e   : >> { %vm860_vm3 = vcmp.gt.f32.partialorder %v850_v43, 1.0  ;;  %vm862_vm4 = vcmp.gt.f32.partialorder %v856_v44, 1.0  ;;  %818 = sbr.rel (!%p816_p2) target bundleno = 1269 (0x4f5), region = 134  ;;  %v1110_v43 = vld [vmem:[%s2835_s5] sm:$0xf] (%p816_p2) }
 0x58f   : >> { %v864_v45 = vsel %vm860_vm3, %v832_v17, %v2275_v14   ;;  %v868_v46 = vsel %vm860_vm3, %v2259_v10, %v832_v17   ;;  %v866_v47 = vsel %vm862_vm4, %v834_v18, %v2267_v12   ;;  %v870_v48 = vsel %vm862_vm4, %v2251_v7, %v834_v18  }
 0x590   : >> { %v2874_v7 = vmov %v870_v48  ;;  %v2876_v10 = vmov %v868_v46  ;;  %v2878_v12 = vmov %v866_v47  ;;  %v2880_v14 = vmov %v864_v45 }
 0x591   : >> { %v853_v49 = vpop.xlane.xlu0 %852  ;;  %v859_v50 = vpop.xlane.xlu1 %858  ;;  %v872_v55 = vadd.f32 (%p816_p2), %v868_v46, %v864_v45  ;;  %v874_v56 = vadd.f32 (%p816_p2), %v870_v48, %v866_v47  ;;  %v1164_v44 = vsel (%p816_p2), %vm921_vm7, %v1110_v43, 0  ;;  %v1683_v45 = vld [vmem:[%s2835_s5 + $0xc] sm:$0xf] (%p816_p2) }
 0x592   : >> { %vm861_vm5 = vcmp.gt.f32.partialorder %v853_v49, 1.0  ;;  %vm863_vm6 = vcmp.gt.f32.partialorder %v859_v50, 1.0  ;;  %v1263_v49 = vsel (%p816_p2), %vm921_vm7, %v1683_v45, 0 }
 0x593   : >> { %v865_v51 = vsel %vm861_vm5, %v833_v22, %v2271_v13   ;;  %v869_v52 = vsel %vm861_vm5, %v2255_v9, %v833_v22   ;;  %v867_v53 = vsel %vm863_vm6, %v835_v29, %v2263_v11   ;;  %v871_v54 = vsel %vm863_vm6, %v2247_v6, %v835_v29  }
 0x594   : >> { %v2873_v6 = vmov %v871_v54  ;;  %v2875_v9 = vmov %v869_v52  ;;  %v2877_v11 = vmov %v867_v53  ;;  %v2879_v13 = vmov %v865_v51 }
 0x595   : > { %v873_v57 = vadd.f32 %v869_v52, %v865_v51  ;;  %v875_v58 = vadd.f32 %v871_v54, %v867_v53  ;;  %v876_v59 = vmul.f32 0.5, %v872_v55  ;;  %v878_v60 = vmul.f32 0.5, %v874_v56  ;;  %v1681_v51 = vld [vmem:[%s2835_s5 + $0x8] sm:$0xf] }
 0x596   : > { %v1213_v56 = vsel %vm921_vm7, %v1681_v51, 0 }
 0x597   : > { %v877_v61 = vmul.f32 0.5, %v873_v57  ;;  %v879_v63 = vmul.f32 0.5, %v875_v58  ;;  %v880_v2 = vsub.f32 %v2605_v62, %v876_v59  ;;  %v882_v4 = vsub.f32 %v2609_v3, %v878_v60 }
 0x599   : > { %v881_v6 = vsub.f32 %v2607_v1, %v877_v61  ;;  %v883_v7 = vsub.f32 %v2611_v5, %v879_v63  ;;  %v884_v9 = vmax.f32 %v880_v2, 0.0  ;;  %v886_v10 = vmax.f32 %v882_v4, 0.0 }
 0x59b   : > { %v885_v11 = vmax.f32 %v881_v6, 0.0  ;;  %v887_v12 = vmax.f32 %v883_v7, 0.0  ;;  %v888_v13 = vmul.f32 %v884_v9, %v884_v9  ;;  %v890_v14 = vmul.f32 %v886_v10, %v886_v10 }
 0x59d   : > { %v889_v15 = vmul.f32 %v885_v11, %v885_v11  ;;  %v891_v16 = vmul.f32 %v887_v12, %v887_v12  ;;  %v892_v17 = vsel %vm604_vm2, %v888_v13, 0.0  ;;  %v898_v18 = vsel %vm604_vm2, %v890_v14, 0.0 }
 0x59e   : > { %893 = vadd.xlane.f32.xlu0 %v892_v17  ;;  %899 = vadd.xlane.f32.xlu1 %v898_v18 }
 0x59f   : > { %v895_v62 = vsel %vm604_vm2, %v889_v15, 0.0  ;;  %v901_v1 = vsel %vm604_vm2, %v891_v16, 0.0 }
 0x5a2   : > { %896 = vadd.xlane.f32.xlu0 %v895_v62  ;;  %902 = vadd.xlane.f32.xlu1 %v901_v1 }
 0x5b3   : > { %965 = vrot.lane.b32.xlu1 %v2574_v28, %s2291_s14 }
 0x5b7   : > { %1013 = vrot.lane.b32.xlu1 %v2577_v30, %s2291_s14 }
 0x5b8   : > { %916 = vrot.lane.b32.xlu0 %v2571_v26, %s2291_s14 }
 0x5bb   : > { %1061 = vrot.lane.b32.xlu1 %v2580_v33, %s2291_s14 }
 0x62b   : > { %v894_v3 = vpop.xlane.xlu0 %893  ;;  %v900_v5 = vpop.xlane.xlu1 %899 }
 0x62c   : > { %2007 = vrcp.f32 %v894_v3 }
 0x62d   : > { %2009 = vrcp.f32 %v900_v5 }
 0x62f   : > { %v897_v19 = vpop.xlane.xlu0 %896  ;;  %v903_v20 = vpop.xlane.xlu1 %902 }
 0x630   : > { %2011 = vrcp.f32 %v897_v19 }
 0x631   : > { %2013 = vrcp.f32 %v903_v20 }
 0x633   : > { %v917_v21 = vpop.permute.xlu0 %916  ;;  %v966_v22 = vpop.permute.xlu1 %965 }
 0x634   : > { %v923_v23 = vsel %vm921_vm7, %v917_v21, 0  ;;  %v971_v28 = vsel %vm921_vm7, %v966_v22, 0  ;;  %v1685_v21 = vld [vmem:[#allocation5] ss:$0 sm:$0xff] }
 0x635   : > { %1771 = vmatpush3.bf16.msra.mxu1 %v923_v23  ;;  %1777 = vmatpush3.bf16.msra.mxu0 %v971_v28 }
 0x636   : > { %v2008_v26 = vpop.eup %2007  ;;  %1782 = vmatprep.subr.bf16.mxu1 %v2285_v8  ;;  %1788 = vmatprep.subr.bf16.mxu0 %v2285_v8 }
 0x637   : > { %v1014_v30 = vpop.permute.xlu1 %1013  ;;  %v908_v33 = vmul.f32 %v2008_v26, %v888_v13  ;;  %v2010_v24 = vpop.eup %2009 }
 0x638   : > { %v1019_v25 = vsel %vm921_vm7, %v1014_v30, 0  ;;  %v910_v34 = vmul.f32 %v2010_v24, %v890_v14 }
 0x639   : > { %v912_v27 = vpack.c.bf16 %v908_v33, %v908_v33 }
 0x63a   : > { %v2012_v29 = vpop.eup %2011  ;;  %v914_v39 = vpack.c.bf16 %v910_v34, %v910_v34 }
 0x63b   : > { %1773 = vmatmul.mubr.msk.bf16.vlgmr.msra.gmra.mrb[12].mxu1 %vm604_vm2, %v912_v27  ;;  %v1062_v31 = vpop.permute.xlu1 %1061  ;;  %v909_v32 = vmul.f32 %v2012_v29, %v889_v15  ;;  %v2014_v35 = vpop.eup %2013 }
 0x63c   : > { %1783 = vmatpush3.bf16.msra.mxu1 %v1019_v25  ;;  %1784 = vmatprep.mubr.msk.bf16.mxu1 %vm2286_vm1, %v2285_v8  ;;  %v1067_v36 = vsel %vm921_vm7, %v1062_v31, 0  ;;  %v911_v40 = vmul.f32 %v2014_v35, %v891_v16  ;;  %v2001_v35 = vld [vmem:[%s2839_s9] sm:$0xff]  }
 0x63d   : > { %v913_v37 = vpack.c.bf16 %v909_v32, %v909_v32  ;;  %1794 = vmatprep.subr.bf16.mxu1 %v2285_v8 }
 0x63e   : > { %v915_v42 = vpack.c.bf16 %v911_v40, %v911_v40  ;;  %v1686_v40 = vld [vmem:[#allocation7] ss:$0 sm:$0xff] }
 0x63f   : > { %1779 = vmatmul.mubr.msk.bf16.vlgmr.msra.gmra.mrb[8].mxu0 %vm604_vm2, %v913_v37 }
 0x640   : > { %1789 = vmatpush3.bf16.msra.mxu0 %v1067_v36  ;;  %1790 = vmatprep.mubr.msk.bf16.mxu0 %vm2286_vm1, %v2285_v8 }
 0x641   : > { %1800 = vmatprep.subr.bf16.mxu0 %v2285_v8 }
 0x643   : > { %1785 = vmatmul.mubr.msk.bf16.vlgmr.msra.gmra.mrb[16].mxu1 %vm604_vm2, %v914_v39 }
 0x644   : > { %1795 = vmatpush3.bf16.msra.mxu1 %v1118_v41  ;;  %1796 = vmatprep.mubr.msk.bf16.mxu1 %vm2286_vm1, %v2285_v8 }
 0x645   : > { %1806 = vmatprep.subr.bf16.mxu1 %v2285_v8 }
 0x647   : > { %1791 = vmatmul.mubr.msk.bf16.vlgmr.msra.gmra.mrb[12].mxu0 %vm604_vm2, %v915_v42  ;;  %v1687_v42 = vld [vmem:[#allocation8] ss:$0 sm:$0xff] }
 0x648   : > { %1802 = vmatprep.mubr.msk.bf16.mxu0 %vm2286_vm1, %v2285_v8  ;;  %1801 = vmatpush3.bf16.msra.mxu0 %v1164_v44 }
 0x649   : > { %1812 = vmatprep.subr.bf16.mxu0 %v2285_v8 }
 0x70e   : > { %v959_v46 = vpop.f32.mrb[12].mxu1 }
 0x70f   : > { %v1109_v47 = vpack.c.bf16 %v959_v46, %v959_v46  ;;  %v1774_v48 = vpop.f32.mrb[13].mxu1  ;;  %v2003_v46 = vld [vmem:[%s2841_s11] sm:$0xff]  }
 0x710   : > { %v962_v50 = vpop.f32.mrb[14].mxu1  ;;  %v2005_v48 = vld [vmem:[%s2841_s11 + $0x10] sm:$0xff]  }
 0x711   : > { %v1775_v52 = vpop.f32.mrb[15].mxu1  ;;  %1803 = vmatmul.mubr.msk.bf16.vlgmr.msra.gmra.mrb[16].mxu0 %vm604_vm2, %v1109_v47  ;;  %v2004_v47 = vld [vmem:[%s2841_s11 + $0x8] sm:$0xff]   ;;  %v1688_v50 = vld [vmem:[%s2840_s10] ss:$0 sm:$0xff] }
 0x712   : > { %v1007_v53 = vpop.f32.mrb[8].mxu0  ;;  %1813 = vmatpush3.bf16.msra.mxu0 %v1263_v49  ;;  %1814 = vmatprep.mubr.msk.bf16.mxu0 %vm2286_vm1, %v2285_v8  ;;  %v2006_v49 = vld [vmem:[%s2841_s11 + $0x18] sm:$0xff]  }
 0x713   : > { %v1111_v54 = vpack.c.bf16 %v1007_v53, %v1007_v53  ;;  %v1780_v55 = vpop.f32.mrb[9].mxu0  ;;  %1826 = vmatprep.subr.bf16.mxu0 %v2285_v8 }
 0x714   : > { %v1010_v57 = vpop.f32.mrb[10].mxu0 }
 0x715   : > { %v1781_v58 = vpop.f32.mrb[11].mxu0  ;;  %1797 = vmatmul.mubr.msk.bf16.vlgmr.msra.gmra.mrb[20].mxu1 %vm604_vm2, %v1111_v54 }
 0x716   : > { %1807 = vmatpush3.bf16.msra.mxu1 %v1213_v56  ;;  %v1055_v59 = vpop.f32.mrb[16].mxu1  ;;  %1808 = vmatprep.mubr.msk.bf16.mxu1 %vm2286_vm1, %v2285_v8 }
 0x717   : > { %v1786_v60 = vpop.f32.mrb[17].mxu1  ;;  %1818 = vmatprep.subr.bf16.mxu1 %v2285_v8  ;;  %v1206_v4 = vpack.c.bf16 %v1055_v59, %v1055_v59 }
 0x718   : > { %v1058_v61 = vpop.f32.mrb[18].mxu1 }
 0x719   : > { %v1787_v63 = vpop.f32.mrb[19].mxu1 }
 0x71a   : > { %v1103_v2 = vpop.f32.mrb[12].mxu0 }
 0x71b   : > { %v1256_v6 = vpack.c.bf16 %v1103_v2, %v1103_v2  ;;  %v1792_v7 = vpop.f32.mrb[13].mxu0 }
 0x71c   : > { %v1106_v9 = vpop.f32.mrb[14].mxu0  ;;  %v1693_v7 = vld [vmem:[%s2842_s12] ss:$0 sm:$0xff] }
 0x71d   : > { %v1793_v10 = vpop.f32.mrb[15].mxu0  ;;  %1809 = vmatmul.mubr.msk.bf16.vlgmr.msra.gmra.mrb[24].mxu1 %vm604_vm2, %v1206_v4  ;;  %1815 = vmatmul.mubr.msk.bf16.vlgmr.msra.gmra.mrb[20].mxu0 %vm604_vm2, %v1256_v6 }
 0x71e   : > { %1822 = vmatprep.mubr.msk.bf16.mxu1 %vm2286_vm1, %v2285_v8  ;;  %1834 = vmatprep.mubr.msk.bf16.mxu0 %vm2286_vm1, %v2285_v8 }
 0x71f   : > { %1819 = vmatpush3.bf16.msra.mxu1 %v2001_v35  ;;  %1827 = vmatpush3.bf16.msra.mxu0 %v2003_v46 }
 0x720   : > { %1820 = vmatprep.subr.bf16.mxu1 %v2285_v8  ;;  %1828 = vmatprep.subr.bf16.mxu0 %v2285_v8 }
 0x723   : > { %1829 = vmatpush3.bf16.msra.mxu0 %v2004_v47 }
 0x724   : > { %1830 = vmatprep.subr.bf16.mxu0 %v2285_v8 }
 0x727   : > { %1831 = vmatpush3.bf16.msra.mxu0 %v2005_v48 }
 0x728   : > { %1832 = vmatprep.subr.bf16.mxu0 %v2285_v8 }
 0x72b   : > { %1833 = vmatpush3.bf16.msra.mxu0 %v2006_v49 }
 0x7e4   : > { %v1200_v11 = vpop.f32.mrb[16].mxu0 }
 0x7e5   : > { %v1804_v12 = vpop.f32.mrb[17].mxu0 }
 0x7e6   : > { %v1203_v13 = vpop.f32.mrb[18].mxu0 }
 0x7e7   : > { %v1805_v14 = vpop.f32.mrb[19].mxu0 }
 0x7e8   : > { %v1154_v15 = vpop.f32.mrb[20].mxu1 }
 0x7e9   : > { %v1201_v16 = vadd.f32 %v1200_v11, %v1154_v15  ;;  %v1798_v17 = vpop.f32.mrb[21].mxu1 }
 0x7ea   : > { %v1157_v18 = vpop.f32.mrb[22].mxu1 }
 0x7eb   : > { %v1799_v62 = vpop.f32.mrb[23].mxu1 }
 0x7f0   : > { %v1249_v1 = vpop.f32.mrb[24].mxu1  ;;  %v1299_v3 = vpop.f32.mrb[20].mxu0 }
 0x7f1   : > { %v1255_v5 = vadd.f32 %v1249_v1, %v1201_v16  ;;  %v1810_v19 = vpop.f32.mrb[25].mxu1  ;;  %v1816_v20 = vpop.f32.mrb[21].mxu0 }
 0x7f2   : > { %v1252_v22 = vpop.f32.mrb[26].mxu1  ;;  %v1302_v23 = vpop.f32.mrb[22].mxu0 }
 0x7f3   : > { %v1305_v28 = vadd.f32 %v1299_v3, %v1255_v5  ;;  %v1811_v26 = vpop.f32.mrb[27].mxu1  ;;  %v1817_v30 = vpop.f32.mrb[23].mxu0 }
 0x7f5   : > { %v1313_v33 = vadd.f32 %v1685_v21, %v1305_v28 }
 0x7f7   : > { %v2741_v24 = vadd.f32 %v1313_v33, %v2537_v0  ;;  %v2002_v0 = vld [vmem:[%s2839_s9 + $0x8] sm:$0xff]  }
 0x7f8   : > { %1821 = vmatpush3.bf16.msra.mxu1 %v2002_v0 }
 0x7f9   : > { %v1317_v25 = vsel %vm491_vm0, %v2741_v24, 0.0 }
 0x7fa   : > { %1318 = vadd.xlane.f32.xlu0 %v1317_v25 }
 0x887   : > { %v1319_v27 = vpop.xlane.xlu0 %1318 }
 0x888   : > { %v1320_v29 = vmul.f32 0.03125, %v1319_v27 }
 0x88a   : > { %v1321_v31 = vsub.f32 %v2741_v24, %v1320_v29 }
 0x88c   : > { %v1322_v32 = vmul.f32 %v1321_v31, %v1321_v31 }
 0x88e   : > { %v1323_v34 = vsel %vm491_vm0, %v1322_v32, 0.0 }
 0x88f   : > { %1324 = vadd.xlane.f32.xlu1 %v1323_v34 }
 0x91c   : > { %v1325_v36 = vpop.xlane.xlu1 %1324 }
 0x91d   : > { %v1326_v37 = vmul.f32 0.03125, %v1325_v36 }
 0x91f   : > { %v1327_v38 = vadd.f32 1e-05, %v1326_v37 }
 0x921   : > { %2015 = vrsqrt.f32 %v1327_v38 }
 0x92b   : > { %v2016_v39 = vpop.eup %2015 }
 0x92c   : > { %v1329_v41 = vmul.f32 %v2016_v39, %v1321_v31 }
 0x92e   : > { %v1336_v43 = vmul.f32 %v1686_v40, %v1329_v41 }
 0x930   : > { %v1343_v44 = vadd.f32 %v1687_v42, %v1336_v43 }
 0x932   : > { %v1344_v45 = vpack.c.bf16 %v1343_v44, %v1343_v44 }
 0x934   : > { %1823 = vmatmul.mubr.msk.bf16.vlgmr.msra.gmra.mrb[28].mxu1 %vm491_vm0, %v1344_v45 }
 0xa07   : > { %v1405_v51 = vpop.f32.mrb[28].mxu1 }
 0xa08   : > { %v1406_v52 = vadd.f32 %v1688_v50, %v1405_v51  ;;  %v1824_v53 = vpop.f32.mrb[29].mxu1 }
 0xa09   : > { %v1408_v54 = vpop.f32.mrb[30].mxu1 }
 0xa0a   : > { %v1411_v55 = vmin.f32 %v1406_v52, 20.0  ;;  %v1825_v56 = vpop.f32.mrb[31].mxu1 }
 0xa0c   : > { %v1412_v57 = vmul.f32 1.442695, %v1411_v55 }
 0xa0e   : > { %2017 = vpow2.f32 %v1412_v57 }
 0xa18   : > { %v2018_v8 = vpop.eup %2017 }
 0xa19   : > { %v1414_v58 = vadd.f32 1.0, %v2018_v8 }
 0xa1b   : > { %v1415_v59 = vmul.f32 %v1414_v58, %v1414_v58 }
 0xa1d   : > { %v1418_v60 = vadd.f32 1.0, %v1415_v59  ;;  %v1692_v61 = vadd.f32 -1.0, %v1415_v59 }
 0xa1f   : > { %2019 = vrcp.f32 %v1418_v60  ;;  %v1417_v63 = vmul.f32 %v1692_v61, %v1406_v52 }
 0xa29   : > { %v2020_v2 = vpop.eup %2019 }
 0xa2a   : > { %v1420_v4 = vmul.f32 %v2020_v2, %v1417_v63 }
 0xa2c   : > { %v1421_v6 = vpack.c.bf16 %v1420_v4, %v1420_v4 }
 0xa2e   : > { %1835 = vmatmul.mubr.msk.bf16.vlgmr.msra.gmra.mrb[24].mxu0 %vm1461_vm8, %v1421_v6 }
 0xb01   : > { %v1499_v9 = vpop.f32.mrb[24].mxu0 }
 0xb02   : > { %v1500_v10 = vadd.f32 %v1693_v7, %v1499_v9  ;;  %v1836_v11 = vpop.f32.mrb[25].mxu0 }
 0xb03   : > { %v1502_v12 = vpop.f32.mrb[26].mxu0 }
 0xb04   : > { %v1505_v13 = vadd.f32 %v1500_v10, %v2741_v24  ;;  %v1837_v14 = vpop.f32.mrb[27].mxu0 }
 0xb06   : > { %1506 = vst.msk [vmem:[%s482_s21] sm:$0xff] %vm491_vm0, %v1505_v13 }
 0xb07   : > { %2146 = shalt.err (!%p2143_p0)
}
 0xb08   : > { %s2147_s15 = scalar_lea.hbm %s2783_s19, 128  ;;  %s2151_s27 = scalar_lea.hbm %s2881_s17, 256 }
 0xb09   : > { %p2148_p6 = scmp.ne.s32.totalorder %s2783_s19, %s2147_s15  ;;  %p2152_p12 = scmp.lt.u32.totalorder %s2783_s19, %s2881_s17 }
 0xb0a   : > { %p2153_p10 = scmp.lt.u32.totalorder %s2151_s27, %s2147_s15  ;;  %p2155_p3 = scmp.lt.u32.totalorder %s2147_s15, %s2783_s19 }
 0xb0b   : > { %p2149_p5 = pnand %p2148_p6, %p2882_p4 }
 0xb0c   : > { %p2154_p2 = por %p2153_p10, %p2152_p12 }
 0xb0d   : > { %p2150_p9 = pneg %p2149_p5 }
 0xb0e   : > { %p2156_p7 = por %p2155_p3, %p2154_p2 }
 0xb10   : > { %p2157_p8 = pnand %p2156_p7, %p2150_p9 }
 0xb12   : > { %2160 = shalt.err (!%p2157_p8)
}
 0xb13   : > { %1854 = dma.vmem_to_hbm [thread:$0]  (%p2882_p4), %s2785_s13, 128, %s2783_s19, %s1508_s29  }
 0xb14 PF: > { %s2883_s16 = sld [smem:[#allocation17_spill]]  ;;  %s2884_s28 = sld [smem:[#allocation15_spill]] }
 0xb15   : > { %s2885_s20 = sld [smem:[#allocation20_spill]] }
 0xb1a   : > { %p1881_p11 = scmp.ge.s32.totalorder %s2883_s16, 2  ;;  %s1533_s30 = sand.u32 1, %s2884_s28  }
 0xb1b   : > { %p2886_p13 = scmp.ne.s32.totalorder %s2885_s20, 0  ;;  %s1534_s23 = scalar_lea.sflag [#allocation4], %s1533_s30 }
 0xb1d   : > { %p1870_p1 = pnand %p1881_p11, %p2886_p13 }
 0xb1f   : > { %2226 = dma.done.wait (!%p1870_p1), %s1534_s23, 128  }
 0xb20   : > { %2228 = vsyncadd (!%p1870_p1), %s1534_s23, 4294967168  ;;  %s2887_s28 = sld [smem:[#allocation18_spill]]  ;;  %s2888_s15 = sld [smem:[#allocation16_spill]] }
 0xb21   : > { %s2889_s27 = sld [smem:[#allocation19_spill]]  ;;  %s2890_s25 = smov %s2235_s26 }
 0xb26   : > { %p26_p0 = scmp.ge.s32.totalorder %s2887_s28, 4   ;;  %s2891_s26 = smov %s2888_s15 }
 0xb28   :  { %28 = sbr.rel (!%p26_p0) target bundleno = 8 (0x8), region = 145 }
 0xb2f   :  { %1539 = vsyncpa [#allocation3], 1 }
 0xb30   :  { %1541 = vsyncpa [#allocation3 + $0x1], 1 }
 0xb31   :  { %1542 = vsyncpa [#allocation6], 1 }
 0xb32   :  { %1543 = vsyncpa [#allocation9], 1 }
 0xb33   :  { %1544 = vsyncpa [#allocation4], 1 }
 0xb34   :  { %1546 = vsyncpa [#allocation4 + $0x1], 1 }

// kernel: tpu_custom_call.1
= control target key start
LH: loop header
LB: loop body
LE: loop exit
PB: predicated region body
PF: predicated region fallthrough
CT: control target
= control target key end

     0   :  { %s2830_s0 = inlined_call_operand.vmem [shape: f32[2,8,32], index: 0, kind: input, shape index: {}]   ;;  %s2831_s1 = inlined_call_operand.vmem [shape: f32[1,32], index: 1, kind: input, shape index: {}]   ;;  %s2832_s2 = inlined_call_operand.vmem [shape: f32[1,32], index: 2, kind: input, shape index: {}]   ;;  %s2833_s3 = inlined_call_operand.vmem [shape: bf16[32,96], index: 3, kind: input, shape index: {}]   ;;  %s2834_s4 = inlined_call_operand.hbm [shape: f32[1,96], index: 4, kind: input, shape index: {}]   ;;  %s2835_s5 = inlined_call_operand.vmem [shape: bf16[4,8,32], index: 5, kind: input, shape index: {}]   ;;  %s2836_s6 = inlined_call_operand.hbm [shape: f32[1,32], index: 6, kind: input, shape index: {}]   ;;  %s2837_s7 = inlined_call_operand.hbm [shape: f32[1,32], index: 7, kind: input, shape index: {}]   ;;  %s2838_s8 = inlined_call_operand.hbm [shape: f32[1,32], index: 8, kind: input, shape index: {}]   ;;  %s2839_s9 = inlined_call_operand.vmem [shape: bf16[32,64], index: 9, kind: input, shape index: {}]   ;;  %s2840_s10 = inlined_call_operand.vmem [shape: f32[1,64], index: 10, kind: input, shape index: {}]   ;;  %s2841_s11 = inlined_call_operand.vmem [shape: bf16[64,32], index: 11, kind: input, shape index: {}]   ;;  %s2842_s12 = inlined_call_operand.vmem [shape: f32[1,32], index: 12, kind: input, shape index: {}]   ;;  %s2843_s13 = inlined_call_operand.hbm [shape: f32[2,8,32], index: 13, kind: output, shape index: {}]  }
   0x1   :  { %2854 = sst [smem:[#allocation21_spill]] %s2843_s13 }
   0x2   :  { %18 = vsyncpa [#allocation3], 0 }
   0x3   :  { %19 = vsyncpa [#allocation6], 0 }
   0x4   :  { %20 = vsyncpa [#allocation9], 0 }
   0x5   :  { %21 = vsyncpa [#allocation4], 0 }
   0x6   :  { %23 = vsyncpa [#allocation4 + $0x1], 0  ;;  %s2363_s25 = smov 0   ;;  %s2365_s26 = smov 0  }
   0x7   :  { %s2367_s27 = smov 0   ;;  %s2369_s28 = smov 0  }
   0x8 LB: > { %2855 = sst [smem:[#allocation15_spill]] %s2231_s25  ;;  %s2384_s29 = sadd.s32 4294967295, %s2243_s28   ;;  %s2243_s28 = sphi %s2369_s28, %s2887_s28   ;;  %s2239_s27 = sphi %s2367_s27, %s2889_s27   ;;  %s2235_s26 = sphi %s2365_s26, %s2891_s26   ;;  %s2231_s25 = sphi %s2363_s25, %s2890_s25  }
   0x9   : > { %2856 = sst [smem:[#allocation16_spill]] %s2239_s27  ;;  %s1650_s30 = sadd.s32 4294967294, %s2243_s28  }
   0xa   : > { %2857 = sst [smem:[#allocation17_spill]] %s2243_s28  ;;  %s2388_s14 = sadd.s32 1, %s2243_s28  }
   0xb   : > { %2858 = sst [smem:[#allocation18_spill]] %s2388_s14  ;;  %s314_s15 = sadd.s32 1, %s2239_s27 }
   0xc   : > { %s311_s16 = ssub.s32 %s2243_s28, %s2388_s14  ;;  %p324_p0 = scmp.ne.s32.totalorder %s2239_s27, %s2235_s26 }
   0xd   : > { %p312_p1 = scmp.eq.s32.totalorder %s311_s16, 0  ;;  %p325_p2 = scmp.eq.s32.totalorder %s2384_s29, 1 }
   0xe   : > { %p330_p3 = scmp.ne.s32.totalorder %s2235_s26, %s2231_s25  ;;  %p331_p4 = scmp.eq.s32.totalorder %s1650_s30, 1 }
   0xf   : > { %s2399_s17 = scalar_select %p312_p1, %s2239_s27, %s314_s15  }
  0x10   : > { %p2401_p5 = por %p325_p2, %p324_p0  ;;  %p2405_p6 = por %p331_p4, %p330_p3 }
  0x11   : > { %2859 = sst [smem:[#allocation19_spill]] %s2399_s17  ;;  %p1651_p7 = scmp.ge.s32.totalorder %s2243_s28, 1 }
  0x12   : > { %s2860_s18 = scalar_select %p2401_p5, 1, 0 }
  0x13   : > { %s2861_s19 = scalar_select %p2405_p6, 1, 0 }
  0x14   : > { %p338_p8 = scmp.lt.s32.totalorder %s2243_s28, 3  ;;  %p2849_p9 = scmp.eq.s32.totalorder %s2384_s29, 0 }
  0x15   : > { %2862 = sst [smem:[#allocation20_spill]] %s2861_s19  ;;  %s2281_s21 = smov [#allocation5]  }
  0x16   : > { %p2412_p10 = pnand %p1651_p7, %p338_p8  ;;  %s374_s22 = sshll.u32 %s2281_s21, 4  ;;  %s375_s22 = int_to_ptr.vmem [resolvable:$true] %s374_s22 }
  0x17   : > { %s2282_s23 = smov [#allocation2]   ;;  %s2283_s15 = smov [#allocation7]  }
  0x18   : > { %s2863_s20 = scalar_select %p2412_p10, 1, 0 }
  0x19   : > { %p1856_p11 = pneg %p2412_p10  ;;  %s360_s24 = sshll.u32 %s2282_s23, 4  ;;  %s2424_s24 = int_to_ptr.vmem [resolvable:$true] %s360_s24 }
  0x1a   : > { %s385_s16 = sshll.u32 %s2283_s15, 4  ;;  %s2021_s21 = scalar_lea.hbm %s2836_s6, 16  ;;  %s2426_s16 = int_to_ptr.vmem [resolvable:$true] %s385_s16 }
  0x1b   : > { %p2420_p12 = pnand %p2849_p9, %p1856_p11  ;;  %p2022_p13 = scmp.ne.s32.totalorder %s2836_s6, %s2021_s21 }
  0x1c   : > { %p2028_p3 = scmp.lt.u32.totalorder %s2021_s21, %s2836_s6 }
  0x1d   : > { %p2436_p0 = pneg %p2420_p12 }
  0x1f   : > { %p2024_p1 = pnand %p2436_p0, %p2022_p13 }
  0x21   : > { %p2025_p2 = pneg %p2024_p1 }
  0x23   : > { %p2030_p4 = pnand %p2028_p3, %p2025_p2 }
  0x25   : > { %2033 = shalt.err (!%p2030_p4)
}
  0x26   : > { %s2034_s27 = scalar_lea.vmem %s375_s22, 16  ;;  %s2041_s14 = scalar_lea.vmem %s375_s22, 32 }
  0x27   : > { %p2035_p7 = scmp.ne.s32.totalorder %s375_s22, %s2034_s27  ;;  %p2042_p9 = scmp.lt.s32.totalorder %s375_s22, %s375_s22 }
  0x28   : > { %p2043_p6 = scmp.lt.s32.totalorder %s2041_s14, %s2034_s27 }
  0x29   : > { %p2037_p8 = pnand %p2035_p7, %p2436_p0 }
  0x2a   : > { %p2044_p5 = por %p2043_p6, %p2042_p9 }
  0x2b   : > { %p2038_p11 = pneg %p2037_p8 }
  0x2d   : > { %p2045_p10 = pnand %p2044_p5, %p2038_p11 }
  0x2f   : > { %2048 = shalt.err (!%p2045_p10)
}
  0x30   : > { %1862 = dma.hbm_to_vmem [thread:$0]  (!%p2420_p12), %s2836_s6, 16, %s375_s22, [#allocation6]  }
  0x31   : > { %s2049_s15 = scalar_lea.hbm %s2834_s4, 16 }
  0x32   : > { %p2050_p13 = scmp.ne.s32.totalorder %s2834_s4, %s2049_s15  ;;  %p2056_p5 = scmp.lt.u32.totalorder %s2049_s15, %s2834_s4 }
  0x34   : > { %p2052_p1 = pnand %p2050_p13, %p2436_p0 }
  0x36   : > { %p2053_p6 = pneg %p2052_p1 }
  0x38   : > { %p2058_p9 = pnand %p2056_p5, %p2053_p6 }
  0x3a   : > { %2061 = shalt.err (!%p2058_p9)
}
  0x3b   : > { %s2062_s22 = scalar_lea.vmem %s2424_s24, 16  ;;  %s2069_s13 = scalar_lea.vmem %s2424_s24, 32 }
  0x3c   : > { %p2063_p10 = scmp.ne.s32.totalorder %s2424_s24, %s2062_s22  ;;  %p2070_p4 = scmp.lt.s32.totalorder %s2424_s24, %s2424_s24 }
  0x3d   : > { %p2071_p7 = scmp.lt.s32.totalorder %s2069_s13, %s2062_s22 }
  0x3e   : > { %p2065_p2 = pnand %p2063_p10, %p2436_p0 }
  0x3f   : > { %p2072_p8 = por %p2071_p7, %p2070_p4 }
  0x40   : > { %p2066_p3 = pneg %p2065_p2 }
  0x42   : > { %p2073_p11 = pnand %p2072_p8, %p2066_p3 }
  0x44   : > { %2076 = shalt.err (!%p2073_p11)
}
  0x45   : > { %1859 = dma.hbm_to_vmem [thread:$0]  (!%p2420_p12), %s2834_s4, 16, %s2424_s24, [#allocation3]  }
  0x46   : > { %s2077_s21 = scalar_lea.hbm %s2837_s7, 16 }
  0x47   : > { %p2078_p13 = scmp.ne.s32.totalorder %s2837_s7, %s2077_s21  ;;  %p2084_p5 = scmp.lt.u32.totalorder %s2077_s21, %s2837_s7 }
  0x49   : > { %p2080_p1 = pnand %p2078_p13, %p2436_p0 }
  0x4b   : > { %p2081_p6 = pneg %p2080_p1 }
  0x4d   : > { %p2086_p9 = pnand %p2084_p5, %p2081_p6 }
  0x4f   : > { %2089 = shalt.err (!%p2086_p9)
}
  0x50   : > { %s2090_s24 = scalar_lea.vmem %s2426_s16, 16  ;;  %s2097_s13 = scalar_lea.vmem %s2426_s16, 32 }
  0x51   : > { %p2091_p10 = scmp.ne.s32.totalorder %s2426_s16, %s2090_s24  ;;  %p2098_p4 = scmp.lt.s32.totalorder %s2426_s16, %s2426_s16 }
  0x52   : > { %p2099_p7 = scmp.lt.s32.totalorder %s2097_s13, %s2090_s24 }
  0x53   : > { %p2093_p2 = pnand %p2091_p10, %p2436_p0 }
  0x54   : > { %p2100_p8 = por %p2099_p7, %p2098_p4 }
  0x55   : > { %p2094_p3 = pneg %p2093_p2 }
  0x57   : > { %p2101_p11 = pnand %p2100_p8, %p2094_p3 }
  0x59   : > { %2104 = shalt.err (!%p2101_p11)
}
  0x5a   : > { %1865 = dma.hbm_to_vmem [thread:$0]  (!%p2420_p12), %s2837_s7, 16, %s2426_s16, [#allocation6]  }
  0x5b   : > { %s2284_s19 = smov [#allocation8]   ;;  %s2105_s27 = scalar_lea.hbm %s2838_s8, 16 }
  0x5c   : > { %s396_s25 = sshll.u32 %s2284_s19, 4  ;;  %p2106_p13 = scmp.ne.s32.totalorder %s2838_s8, %s2105_s27  ;;  %s397_s25 = int_to_ptr.vmem [resolvable:$true] %s396_s25 }
  0x5d   : > { %p2112_p5 = scmp.lt.u32.totalorder %s2105_s27, %s2838_s8 }
  0x5e   : > { %p2108_p1 = pnand %p2106_p13, %p2436_p0 }
  0x60   : > { %p2109_p6 = pneg %p2108_p1 }
  0x62   : > { %p2114_p9 = pnand %p2112_p5, %p2109_p6 }
  0x64   : > { %2117 = shalt.err (!%p2114_p9)
}
  0x65   : > { %s2118_s16 = scalar_lea.vmem %s397_s25, 16  ;;  %s2125_s28 = scalar_lea.vmem %s397_s25, 32 }
  0x66   : > { %p2119_p10 = scmp.ne.s32.totalorder %s397_s25, %s2118_s16  ;;  %p2126_p4 = scmp.lt.s32.totalorder %s397_s25, %s397_s25 }
  0x67   : > { %p2127_p7 = scmp.lt.s32.totalorder %s2125_s28, %s2118_s16 }
  0x68   : > { %p2121_p2 = pnand %p2119_p10, %p2436_p0 }
  0x69   : > { %p2128_p8 = por %p2127_p7, %p2126_p4 }
  0x6a   : > { %p2122_p3 = pneg %p2121_p2 }
  0x6c   : > { %p2129_p11 = pnand %p2128_p8, %p2122_p3 }
  0x6e   : > { %2132 = shalt.err (!%p2129_p11)
}
  0x6f   : > { %1868 = dma.hbm_to_vmem [thread:$0]  (!%p2420_p12), %s2838_s8, 16, %s397_s25, [#allocation9]  }
  0x70   : > { %p2866_p13 = scmp.ne.s32.totalorder %s2863_s20, 0 }
  0x71   : > { %p2867_p1 = scmp.eq.s32.totalorder (!%p2866_p13), %s2384_s29, 0 }
  0x72   : > { %428 = sbr.rel (%p2866_p13) target bundleno = 2836 (0xb14), region = 72 }
  0x79   : > { %2214 = dma.done.wait (%p2867_p1), [#allocation3], 16   ;;  %p2868_p0 = pmov %p2867_p1 }
  0x7b   : > { %2216 = vsyncadd (%p2868_p0), [#allocation3], 4294967280  ;;  %p2869_p6 = pmov %p2868_p0 }
  0x7c   : > { %p2870_p5 = pmov %p2868_p0 }
  0x7d   : > { %2218 = dma.done.wait (%p2869_p6), [#allocation6], 32  }
  0x7e   : > { %2220 = vsyncadd (%p2870_p5), [#allocation6], 4294967264  ;;  %p2871_p9 = pmov %p2868_p0 }
  0x7f   : > { %p2872_p12 = pmov %p2868_p0 }
  0x80   : > { %2222 = dma.done.wait (%p2871_p9), [#allocation9], 16  }
  0x81   : > { %2224 = vsyncadd (%p2872_p12), [#allocation9], 4294967280  ;;  %p483_p10 = scmp.lt.s32.totalorder %s2384_s29, 1  ;;  %vm491_vm0 = vcmask 261120   ;;  %s480_s15 = sand.u32 1, %s2235_s26   ;;  %v1997_v7 = vld [vmem:[%s2833_s3] sm:$0xff]  }
  0x82   : > { %s2549_s22 = sshll.u32 %s480_s15, 3  ;;  %v2285_v8 = vmov 0.0   ;;  %vm2286_vm1 = vmmov 0   ;;  %v1998_v9 = vld [vmem:[%s2833_s3 + $0x8] sm:$0xff]   ;;  %v1664_v14 = vld [vmem:[%s2831_s1] ss:$0 sm:$0xff] }
  0x83   : > { %s484_s20 = scalar_select %p483_p10, %s2384_s29, 1  ;;  %1738 = vmatprep.subr.bf16.mxu1 %v2285_v8  ;;  %1742 = vmatprep.mubr.msk.bf16.mxu1 %vm2286_vm1, %v2285_v8  ;;  %v1665_v16 = vld [vmem:[%s2832_s2] ss:$0 sm:$0xff]  ;;  %vm604_vm2 = vcmask 64512  }
  0x84   : > { %1739 = vmatpush3.bf16.msra.mxu1 %v1997_v7  ;;  %1752 = vmatprep.subr.bf16.mxu0 %v2285_v8  ;;  %v1666_v20 = vld [vmem:[#allocation2] ss:$0 sm:$0xff]  ;;  %s2289_s23 = smov 112   ;;  %s2290_s25 = smov 96   ;;  %v2616_v7 = vmov 0.0  }
  0x85   : > { %s1663_s30 = sshll.u32 %s484_s20, 3  ;;  %1740 = vmatprep.subr.bf16.mxu1 %v2285_v8  ;;  %1754 = vmatprep.mubr.msk.bf16.mxu0 %vm2286_vm1, %v2285_v8  ;;  %s2287_s20 = smov 104  }
  0x86   : > { %s486_s21 = scalar_lea.vmem %s2830_s0, %s1663_s30  ;;  %s2288_s30 = smov 120  }
  0x87   : > { %v2537_v0 = vld [vmem:[%s486_s21] sm:$0xff]  ;;  %s482_s21 = scalar_lea.vmem [#allocation10], %s2549_s22  ;;  %s2630_s27 = smov 0  }
  0x88   : > { %v492_v1 = vsel %vm491_vm0, %v2537_v0, 0.0  ;;  %1741 = vmatpush3.bf16.msra.mxu1 %v1998_v9  ;;  %v2618_v9 = vmov 0.0  }
  0x89   : > { %493 = vadd.xlane.f32.xlu0 %v492_v1  ;;  %1746 = vmatprep.subr.bf16.mxu1 %v2285_v8 }
 0x116   : > { %v494_v2 = vpop.xlane.xlu0 %493 }
 0x117   : > { %v496_v3 = vmul.f32 0.03125, %v494_v2 }
 0x119   : > { %v497_v4 = vsub.f32 %v2537_v0, %v496_v3 }
 0x11b   : > { %v498_v5 = vmul.f32 %v497_v4, %v497_v4 }
 0x11d   : > { %v499_v6 = vsel %vm491_vm0, %v498_v5, 0.0 }
 0x11e   : > { %500 = vadd.xlane.f32.xlu0 %v499_v6  ;;  %v2614_v6 = vmov 0.0  }
 0x1ab   : > { %v501_v10 = vpop.xlane.xlu0 %500 }
 0x1ac   : > { %v502_v11 = vmul.f32 0.03125, %v501_v10  ;;  %v2620_v10 = vmov 0.0  }
 0x1ae   : > { %v503_v12 = vadd.f32 1e-05, %v502_v11  ;;  %v2622_v11 = vmov -1.0  }
 0x1b0   : > { %1999 = vrsqrt.f32 %v503_v12  ;;  %v2624_v12 = vmov -1.0  }
 0x1ba   : > { %v2000_v13 = vpop.eup %1999 }
 0x1bb   : > { %v505_v15 = vmul.f32 %v2000_v13, %v497_v4  ;;  %v2626_v13 = vmov -1.0  }
 0x1bd   : > { %v512_v17 = vmul.f32 %v1664_v14, %v505_v15  ;;  %v2628_v14 = vmov -1.0  }
 0x1bf   : > { %v519_v18 = vadd.f32 %v1665_v16, %v512_v17 }
 0x1c1   : > { %v520_v19 = vpack.c.bf16 %v519_v18, %v519_v18 }
 0x1c3   : > { %1743 = vmatmul.mubr.msk.bf16.vlgmr.msra.gmra.mrb[0].mxu1 %vm491_vm0, %v520_v19 }
 0x1c4   : > { %1748 = vmatprep.mubr.msk.bf16.mxu1 %vm2286_vm1, %v2285_v8 }
 0x296   : > { %v581_v21 = vpop.f32.mrb[0].mxu1 }
 0x297   : > { %v582_v22 = vadd.f32 %v1666_v20, %v581_v21  ;;  %v1744_v23 = vpop.f32.mrb[1].mxu1 }
 0x298   : > { %v584_v24 = vpop.f32.mrb[2].mxu1 }
 0x299   : > { %594 = vrot.lane.b32.xlu0 %v582_v22, %s2287_s20  ;;  %588 = vrot.lane.b32.xlu1 %v582_v22, %s2288_s30  ;;  %v1745_v25 = vpop.f32.mrb[3].mxu1  ;;  %v2571_v26 = vpack.c.bf16 %v582_v22, %v582_v22 }
 0x29d   : > { %591 = vrot.lane.b32.xlu1 %v582_v22, %s2289_s23 }
 0x2a1   : > { %602 = vrot.lane.b32.xlu1 %v2571_v26, %s2290_s25 }
 0x30b   : > { %v589_v27 = vpop.permute.xlu1 %588  ;;  %v595_v31 = vpop.permute.xlu0 %594 }
 0x30c   : > { %v2574_v28 = vpack.c.bf16 %v589_v27, %v589_v27  ;;  %v2580_v33 = vpack.c.bf16 %v595_v31, %v595_v31 }
 0x30e   : > { %652 = vrot.lane.b32.xlu1 %v2574_v28, %s2290_s25 }
 0x30f   : > { %v592_v29 = vpop.permute.xlu1 %591 }
 0x310   : > { %v2577_v30 = vpack.c.bf16 %v592_v29, %v592_v29 }
 0x312   : > { %701 = vrot.lane.b32.xlu1 %v2577_v30, %s2290_s25 }
 0x313   : > { %v603_v32 = vpop.permute.xlu1 %602 }
 0x314   : > { %v609_v34 = vsel %vm604_vm2, %v603_v32, 0 }
 0x315   : > { %1747 = vmatpush3.bf16.xpose.msra.mxu1 %v609_v34 }
 0x316   : > { %750 = vrot.lane.b32.xlu1 %v2580_v33, %s2290_s25  ;;  %1758 = vmatprep.subr.bf16.mxu1 %v2285_v8 }
 0x31c   : > { %1749 = vmatmul.mubr.msk.bf16.vlgmr.msra.gmra.mrb[4].mxu1 %vm604_vm2, %v2571_v26 }
 0x31d   : > { %1760 = vmatprep.mubr.msk.bf16.mxu1 %vm2286_vm1, %v2285_v8 }
 0x380   : > { %v653_v35 = vpop.permute.xlu1 %652 }
 0x381   : > { %v658_v36 = vsel %vm604_vm2, %v653_v35, 0 }
 0x382   : > { %1753 = vmatpush3.bf16.xpose.msra.mxu0 %v658_v36 }
 0x383   : > { %1764 = vmatprep.subr.bf16.mxu0 %v2285_v8 }
 0x384   : > { %v702_v37 = vpop.permute.xlu1 %701 }
 0x385   : > { %v707_v38 = vsel %vm604_vm2, %v702_v37, 0 }
 0x386   : > { %1759 = vmatpush3.bf16.xpose.msra.mxu1 %v707_v38 }
 0x388   : > { %v751_v39 = vpop.permute.xlu1 %750 }
 0x389   : > { %v756_v40 = vsel %vm604_vm2, %v751_v39, 0  ;;  %1755 = vmatmul.mubr.msk.bf16.vlgmr.msra.gmra.mrb[0].mxu0 %vm604_vm2, %v2574_v28 }
 0x38a   : > { %1765 = vmatpush3.bf16.xpose.msra.mxu0 %v756_v40  ;;  %1766 = vmatprep.mubr.msk.bf16.mxu0 %vm2286_vm1, %v2285_v8 }
 0x38d   : > { %1761 = vmatmul.mubr.msk.bf16.vlgmr.msra.gmra.mrb[8].mxu1 %vm604_vm2, %v2577_v30 }
 0x391   : > { %1767 = vmatmul.mubr.msk.bf16.vlgmr.msra.gmra.mrb[4].mxu0 %vm604_vm2, %v2580_v33 }
 0x3ef   : > { %v645_v41 = vpop.f32.mrb[4].mxu1 }
 0x3f0   : > { %v1750_v42 = vpop.f32.mrb[5].mxu1  ;;  %v798_v43 = vsel %vm604_vm2, %v645_v41, -inf }
 0x3f1   : > { %799 = vmax.xlane.f32.xlu1 %v798_v43  ;;  %v648_v44 = vpop.f32.mrb[6].mxu1 }
 0x3f2   : > { %v1751_v45 = vpop.f32.mrb[7].mxu1 }
 0x45c   : > { %v694_v46 = vpop.f32.mrb[0].mxu0 }
 0x45d   : > { %v1756_v47 = vpop.f32.mrb[1].mxu0  ;;  %v801_v48 = vsel %vm604_vm2, %v694_v46, -inf }
 0x45e   : > { %802 = vmax.xlane.f32.xlu0 %v801_v48  ;;  %v697_v49 = vpop.f32.mrb[2].mxu0 }
 0x45f   : > { %v1757_v50 = vpop.f32.mrb[3].mxu0 }
 0x460   : > { %v743_v51 = vpop.f32.mrb[8].mxu1 }
 0x461   : > { %v1762_v52 = vpop.f32.mrb[9].mxu1  ;;  %v804_v53 = vsel %vm604_vm2, %v743_v51, -inf }
 0x462   : > { %805 = vmax.xlane.f32.xlu1 %v804_v53  ;;  %v746_v54 = vpop.f32.mrb[10].mxu1 }
 0x463   : > { %v1763_v55 = vpop.f32.mrb[11].mxu1 }
 0x464   : > { %v792_v56 = vpop.f32.mrb[4].mxu0 }
 0x465   : > { %v1768_v57 = vpop.f32.mrb[5].mxu0  ;;  %v807_v58 = vsel %vm604_vm2, %v792_v56, -inf }
 0x466   : > { %808 = vmax.xlane.f32.xlu0 %v807_v58  ;;  %v795_v59 = vpop.f32.mrb[6].mxu0 }
 0x467   : > { %v1769_v60 = vpop.f32.mrb[7].mxu0 }
 0x47e   : > { %v800_v61 = vpop.xlane.xlu1 %799 }
 0x47f   : > { %v2605_v62 = vsub.f32 %v645_v41, %v800_v61 }
 0x4eb   : > { %v803_v63 = vpop.xlane.xlu0 %802 }
 0x4ec   : > { %v2607_v1 = vsub.f32 %v694_v46, %v803_v63 }
 0x4ef   : > { %v806_v2 = vpop.xlane.xlu1 %805 }
 0x4f0   : > { %v2609_v3 = vsub.f32 %v743_v51, %v806_v2 }
 0x4f3   : > { %v809_v4 = vpop.xlane.xlu0 %808 }
 0x4f4   : > { %v2611_v5 = vsub.f32 %v792_v56, %v809_v4 }
 0x4f5 LB: >> { %v828_v15 = vadd.f32 %v2259_v10, %v2275_v14  ;;  %v830_v16 = vadd.f32 %v2251_v7, %v2267_v12  ;;  %v829_v19 = vadd.f32 %v2255_v9, %v2271_v13  ;;  %v831_v23 = vadd.f32 %v2247_v6, %v2263_v11  ;;  %s819_s27 = sadd.s32 1, %s2279_s27   ;;  %s2279_s27 = sphi %s2630_s27, %s819_s27   ;;  %v2275_v14 = vphi %v2628_v14, %v2880_v14   ;;  %v2271_v13 = vphi %v2626_v13, %v2879_v13   ;;  %v2267_v12 = vphi %v2624_v12, %v2878_v12   ;;  %v2263_v11 = vphi %v2622_v11, %v2877_v11   ;;  %v2259_v10 = vphi %v2620_v10, %v2876_v10   ;;  %v2255_v9 = vphi %v2618_v9, %v2875_v9   ;;  %v2251_v7 = vphi %v2616_v7, %v2874_v7   ;;  %v2247_v6 = vphi %v2614_v6, %v2873_v6  }
 0x4f6   : >> { %p816_p2 = scmp.ge.s32.totalorder %s819_s27, 23  }
 0x4f7   : >> { %v832_v17 = vmul.f32 0.5, %v828_v15  ;;  %v834_v18 = vmul.f32 0.5, %v830_v16  ;;  %v833_v22 = vmul.f32 0.5, %v829_v19  ;;  %v835_v29 = vmul.f32 0.5, %v831_v23  ;;  %1770 = vmatprep.subr.bf16.mxu1 (%p816_p2), %v2285_v8  ;;  %1776 = vmatprep.subr.bf16.mxu0 (%p816_p2), %v2285_v8  ;;  %s2291_s14 = smov (%p816_p2), 64   ;;  %s1700_s24 = sshll.u32 (%p816_p2), %s2384_s29, 7 }
 0x4f8   : > { %1772 = vmatprep.mubr.msk.bf16.mxu1 (%p816_p2), %vm2286_vm1, %v2285_v8  ;;  %1778 = vmatprep.mubr.msk.bf16.mxu0 (%p816_p2), %vm2286_vm1, %v2285_v8  ;;  %vm921_vm7 = vcmask (%p816_p2), 1043456   ;;  %vm1461_vm8 = vcmask (%p816_p2), 523264   ;;  %s1521_s13 = sshll.u32 (%p816_p2), %s482_s21, 4  ;;  %s2881_s17 = sld [smem:[#allocation21_spill]] (%p816_p2)  ;;  %s2785_s13 = int_to_ptr.vmem [resolvable:$true] %s1521_s13 }
 0x4f9   : >> { %v836_v20 = vsub.f32 %v2605_v62, %v832_v17  ;;  %v838_v21 = vsub.f32 %v2609_v3, %v834_v18  ;;  %v837_v27 = vsub.f32 %v2607_v1, %v833_v22  ;;  %v839_v35 = vsub.f32 %v2611_v5, %v835_v29  ;;  %s1508_s29 = scalar_lea.sflag (%p816_p2), [#allocation4], %s480_s15  ;;  %s2133_s20 = scalar_lea.vmem (%p816_p2), %s2785_s13, 128 }
 0x4fa   : > { %p2134_p3 = scmp.ne.s32.totalorder (%p816_p2), %s2785_s13, %s2133_s20  ;;  %p2882_p4 = scmp.ne.s32.totalorder (%p816_p2), %s2860_s18, 0 }
 0x4fb   : >> { %v840_v24 = vmax.f32 %v836_v20, 0.0  ;;  %v842_v25 = vmax.f32 %v838_v21, 0.0  ;;  %v841_v34 = vmax.f32 %v837_v27, 0.0  ;;  %v843_v39 = vmax.f32 %v839_v35, 0.0  ;;  %s2292_s30 = smov (%p816_p2), [#allocation10]  }
 0x4fc   : > { %p2135_p7 = pnand (%p816_p2), %p2134_p3, %p2882_p4  ;;  %s2137_s23 = sshll.u32 (%p816_p2), %s2292_s30, 4  ;;  %s2138_s23 = int_to_ptr.vmem [resolvable:$false] %s2137_s23 }
 0x4fd   : >> { %v844_v31 = vmul.f32 %v840_v24, %v840_v24  ;;  %v846_v32 = vmul.f32 %v842_v25, %v842_v25  ;;  %v845_v38 = vmul.f32 %v841_v34, %v841_v34  ;;  %v847_v41 = vmul.f32 %v843_v39, %v843_v39  ;;  %s2139_s25 = scalar_lea.vmem (%p816_p2), %s2138_s23, 256  ;;  %p2140_p11 = scmp.lt.s32.totalorder (%p816_p2), %s2785_s13, %s2138_s23 }
 0x4fe   : > { %s2783_s19 = scalar_lea.hbm (%p816_p2), %s2881_s17, %s1700_s24  ;;  %p2136_p8 = pneg (%p816_p2), %p2135_p7 }
 0x4ff   : >> { %v848_v36 = vsel %vm604_vm2, %v844_v31, 0.0  ;;  %v854_v37 = vsel %vm604_vm2, %v846_v32, 0.0  ;;  %v851_v40 = vsel %vm604_vm2, %v845_v38, 0.0  ;;  %v857_v42 = vsel %vm604_vm2, %v847_v41, 0.0  ;;  %v1678_v38 = vld [vmem:[%s2835_s5 + $0x4] sm:$0xf] (%p816_p2)  ;;  %p2141_p13 = scmp.lt.s32.totalorder (%p816_p2), %s2139_s25, %s2133_s20 }
 0x500   : >> { %849 = vadd.xlane.f32.xlu0 %v848_v36  ;;  %855 = vadd.xlane.f32.xlu1 %v854_v37  ;;  %v1118_v41 = vsel (%p816_p2), %vm921_vm7, %v1678_v38, 0 }
 0x501   : > { %p2142_p1 = por (%p816_p2), %p2141_p13, %p2140_p11 }
 0x503   : > { %p2143_p0 = pnand (%p816_p2), %p2142_p1, %p2136_p8 }
 0x504   : >> { %852 = vadd.xlane.f32.xlu0 %v851_v40  ;;  %858 = vadd.xlane.f32.xlu1 %v857_v42 }
 0x58d   : >> { %v850_v43 = vpop.xlane.xlu0 %849  ;;  %v856_v44 = vpop.xlane.xlu1 %855 }
 0x58e   : >> { %vm860_vm3 = vcmp.gt.f32.partialorder %v850_v43, 1.0  ;;  %vm862_vm4 = vcmp.gt.f32.partialorder %v856_v44, 1.0  ;;  %818 = sbr.rel (!%p816_p2) target bundleno = 1269 (0x4f5), region = 134  ;;  %v1110_v43 = vld [vmem:[%s2835_s5] sm:$0xf] (%p816_p2) }
 0x58f   : >> { %v864_v45 = vsel %vm860_vm3, %v832_v17, %v2275_v14   ;;  %v868_v46 = vsel %vm860_vm3, %v2259_v10, %v832_v17   ;;  %v866_v47 = vsel %vm862_vm4, %v834_v18, %v2267_v12   ;;  %v870_v48 = vsel %vm862_vm4, %v2251_v7, %v834_v18  }
 0x590   : >> { %v2874_v7 = vmov %v870_v48  ;;  %v2876_v10 = vmov %v868_v46  ;;  %v2878_v12 = vmov %v866_v47  ;;  %v2880_v14 = vmov %v864_v45 }
 0x591   : >> { %v853_v49 = vpop.xlane.xlu0 %852  ;;  %v859_v50 = vpop.xlane.xlu1 %858  ;;  %v872_v55 = vadd.f32 (%p816_p2), %v868_v46, %v864_v45  ;;  %v874_v56 = vadd.f32 (%p816_p2), %v870_v48, %v866_v47  ;;  %v1164_v44 = vsel (%p816_p2), %vm921_vm7, %v1110_v43, 0  ;;  %v1683_v45 = vld [vmem:[%s2835_s5 + $0xc] sm:$0xf] (%p816_p2) }
 0x592   : >> { %vm861_vm5 = vcmp.gt.f32.partialorder %v853_v49, 1.0  ;;  %vm863_vm6 = vcmp.gt.f32.partialorder %v859_v50, 1.0  ;;  %v1263_v49 = vsel (%p816_p2), %vm921_vm7, %v1683_v45, 0 }
 0x593   : >> { %v865_v51 = vsel %vm861_vm5, %v833_v22, %v2271_v13   ;;  %v869_v52 = vsel %vm861_vm5, %v2255_v9, %v833_v22   ;;  %v867_v53 = vsel %vm863_vm6, %v835_v29, %v2263_v11   ;;  %v871_v54 = vsel %vm863_vm6, %v2247_v6, %v835_v29  }
 0x594   : >> { %v2873_v6 = vmov %v871_v54  ;;  %v2875_v9 = vmov %v869_v52  ;;  %v2877_v11 = vmov %v867_v53  ;;  %v2879_v13 = vmov %v865_v51 }
 0x595   : > { %v873_v57 = vadd.f32 %v869_v52, %v865_v51  ;;  %v875_v58 = vadd.f32 %v871_v54, %v867_v53  ;;  %v876_v59 = vmul.f32 0.5, %v872_v55  ;;  %v878_v60 = vmul.f32 0.5, %v874_v56  ;;  %v1681_v51 = vld [vmem:[%s2835_s5 + $0x8] sm:$0xf] }
 0x596   : > { %v1213_v56 = vsel %vm921_vm7, %v1681_v51, 0 }
 0x597   : > { %v877_v61 = vmul.f32 0.5, %v873_v57  ;;  %v879_v63 = vmul.f32 0.5, %v875_v58  ;;  %v880_v2 = vsub.f32 %v2605_v62, %v876_v59  ;;  %v882_v4 = vsub.f32 %v2609_v3, %v878_v60 }
 0x599   : > { %v881_v6 = vsub.f32 %v2607_v1, %v877_v61  ;;  %v883_v7 = vsub.f32 %v2611_v5, %v879_v63  ;;  %v884_v9 = vmax.f32 %v880_v2, 0.0  ;;  %v886_v10 = vmax.f32 %v882_v4, 0.0 }
 0x59b   : > { %v885_v11 = vmax.f32 %v881_v6, 0.0  ;;  %v887_v12 = vmax.f32 %v883_v7, 0.0  ;;  %v888_v13 = vmul.f32 %v884_v9, %v884_v9  ;;  %v890_v14 = vmul.f32 %v886_v10, %v886_v10 }
 0x59d   : > { %v889_v15 = vmul.f32 %v885_v11, %v885_v11  ;;  %v891_v16 = vmul.f32 %v887_v12, %v887_v12  ;;  %v892_v17 = vsel %vm604_vm2, %v888_v13, 0.0  ;;  %v898_v18 = vsel %vm604_vm2, %v890_v14, 0.0 }
 0x59e   : > { %893 = vadd.xlane.f32.xlu0 %v892_v17  ;;  %899 = vadd.xlane.f32.xlu1 %v898_v18 }
 0x59f   : > { %v895_v62 = vsel %vm604_vm2, %v889_v15, 0.0  ;;  %v901_v1 = vsel %vm604_vm2, %v891_v16, 0.0 }
 0x5a2   : > { %896 = vadd.xlane.f32.xlu0 %v895_v62  ;;  %902 = vadd.xlane.f32.xlu1 %v901_v1 }
 0x5b3   : > { %965 = vrot.lane.b32.xlu1 %v2574_v28, %s2291_s14 }
 0x5b7   : > { %1013 = vrot.lane.b32.xlu1 %v2577_v30, %s2291_s14 }
 0x5b8   : > { %916 = vrot.lane.b32.xlu0 %v2571_v26, %s2291_s14 }
 0x5bb   : > { %1061 = vrot.lane.b32.xlu1 %v2580_v33, %s2291_s14 }
 0x62b   : > { %v894_v3 = vpop.xlane.xlu0 %893  ;;  %v900_v5 = vpop.xlane.xlu1 %899 }
 0x62c   : > { %2007 = vrcp.f32 %v894_v3 }
 0x62d   : > { %2009 = vrcp.f32 %v900_v5 }
 0x62f   : > { %v897_v19 = vpop.xlane.xlu0 %896  ;;  %v903_v20 = vpop.xlane.xlu1 %902 }
 0x630   : > { %2011 = vrcp.f32 %v897_v19 }
 0x631   : > { %2013 = vrcp.f32 %v903_v20 }
 0x633   : > { %v917_v21 = vpop.permute.xlu0 %916  ;;  %v966_v22 = vpop.permute.xlu1 %965 }
 0x634   : > { %v923_v23 = vsel %vm921_vm7, %v917_v21, 0  ;;  %v971_v28 = vsel %vm921_vm7, %v966_v22, 0  ;;  %v1685_v21 = vld [vmem:[#allocation5] ss:$0 sm:$0xff] }
 0x635   : > { %1771 = vmatpush3.bf16.msra.mxu1 %v923_v23  ;;  %1777 = vmatpush3.bf16.msra.mxu0 %v971_v28 }
 0x636   : > { %v2008_v26 = vpop.eup %2007  ;;  %1782 = vmatprep.subr.bf16.mxu1 %v2285_v8  ;;  %1788 = vmatprep.subr.bf16.mxu0 %v2285_v8 }
 0x637   : > { %v1014_v30 = vpop.permute.xlu1 %1013  ;;  %v908_v33 = vmul.f32 %v2008_v26, %v888_v13  ;;  %v2010_v24 = vpop.eup %2009 }
 0x638   : > { %v1019_v25 = vsel %vm921_vm7, %v1014_v30, 0  ;;  %v910_v34 = vmul.f32 %v2010_v24, %v890_v14 }
 0x639   : > { %v912_v27 = vpack.c.bf16 %v908_v33, %v908_v33 }
 0x63a   : > { %v2012_v29 = vpop.eup %2011  ;;  %v914_v39 = vpack.c.bf16 %v910_v34, %v910_v34 }
 0x63b   : > { %1773 = vmatmul.mubr.msk.bf16.vlgmr.msra.gmra.mrb[12].mxu1 %vm604_vm2, %v912_v27  ;;  %v1062_v31 = vpop.permute.xlu1 %1061  ;;  %v909_v32 = vmul.f32 %v2012_v29, %v889_v15  ;;  %v2014_v35 = vpop.eup %2013 }
 0x63c   : > { %1783 = vmatpush3.bf16.msra.mxu1 %v1019_v25  ;;  %1784 = vmatprep.mubr.msk.bf16.mxu1 %vm2286_vm1, %v2285_v8  ;;  %v1067_v36 = vsel %vm921_vm7, %v1062_v31, 0  ;;  %v911_v40 = vmul.f32 %v2014_v35, %v891_v16  ;;  %v2001_v35 = vld [vmem:[%s2839_s9] sm:$0xff]  }
 0x63d   : > { %v913_v37 = vpack.c.bf16 %v909_v32, %v909_v32  ;;  %1794 = vmatprep.subr.bf16.mxu1 %v2285_v8 }
 0x63e   : > { %v915_v42 = vpack.c.bf16 %v911_v40, %v911_v40  ;;  %v1686_v40 = vld [vmem:[#allocation7] ss:$0 sm:$0xff] }
 0x63f   : > { %1779 = vmatmul.mubr.msk.bf16.vlgmr.msra.gmra.mrb[8].mxu0 %vm604_vm2, %v913_v37 }
 0x640   : > { %1789 = vmatpush3.bf16.msra.mxu0 %v1067_v36  ;;  %1790 = vmatprep.mubr.msk.bf16.mxu0 %vm2286_vm1, %v2285_v8 }
 0x641   : > { %1800 = vmatprep.subr.bf16.mxu0 %v2285_v8 }
 0x643   : > { %1785 = vmatmul.mubr.msk.bf16.vlgmr.msra.gmra.mrb[16].mxu1 %vm604_vm2, %v914_v39 }
 0x644   : > { %1795 = vmatpush3.bf16.msra.mxu1 %v1118_v41  ;;  %1796 = vmatprep.mubr.msk.bf16.mxu1 %vm2286_vm1, %v2285_v8 }
 0x645   : > { %1806 = vmatprep.subr.bf16.mxu1 %v2285_v8 }
 0x647   : > { %1791 = vmatmul.mubr.msk.bf16.vlgmr.msra.gmra.mrb[12].mxu0 %vm604_vm2, %v915_v42  ;;  %v1687_v42 = vld [vmem:[#allocation8] ss:$0 sm:$0xff] }
 0x648   : > { %1802 = vmatprep.mubr.msk.bf16.mxu0 %vm2286_vm1, %v2285_v8  ;;  %1801 = vmatpush3.bf16.msra.mxu0 %v1164_v44 }
 0x649   : > { %1812 = vmatprep.subr.bf16.mxu0 %v2285_v8 }
 0x70e   : > { %v959_v46 = vpop.f32.mrb[12].mxu1 }
 0x70f   : > { %v1109_v47 = vpack.c.bf16 %v959_v46, %v959_v46  ;;  %v1774_v48 = vpop.f32.mrb[13].mxu1  ;;  %v2003_v46 = vld [vmem:[%s2841_s11] sm:$0xff]  }
 0x710   : > { %v962_v50 = vpop.f32.mrb[14].mxu1  ;;  %v2005_v48 = vld [vmem:[%s2841_s11 + $0x10] sm:$0xff]  }
 0x711   : > { %v1775_v52 = vpop.f32.mrb[15].mxu1  ;;  %1803 = vmatmul.mubr.msk.bf16.vlgmr.msra.gmra.mrb[16].mxu0 %vm604_vm2, %v1109_v47  ;;  %v2004_v47 = vld [vmem:[%s2841_s11 + $0x8] sm:$0xff]   ;;  %v1688_v50 = vld [vmem:[%s2840_s10] ss:$0 sm:$0xff] }
 0x712   : > { %v1007_v53 = vpop.f32.mrb[8].mxu0  ;;  %1813 = vmatpush3.bf16.msra.mxu0 %v1263_v49  ;;  %1814 = vmatprep.mubr.msk.bf16.mxu0 %vm2286_vm1, %v2285_v8  ;;  %v2006_v49 = vld [vmem:[%s2841_s11 + $0x18] sm:$0xff]  }
 0x713   : > { %v1111_v54 = vpack.c.bf16 %v1007_v53, %v1007_v53  ;;  %v1780_v55 = vpop.f32.mrb[9].mxu0  ;;  %1826 = vmatprep.subr.bf16.mxu0 %v2285_v8 }
 0x714   : > { %v1010_v57 = vpop.f32.mrb[10].mxu0 }
 0x715   : > { %v1781_v58 = vpop.f32.mrb[11].mxu0  ;;  %1797 = vmatmul.mubr.msk.bf16.vlgmr.msra.gmra.mrb[20].mxu1 %vm604_vm2, %v1111_v54 }
 0x716   : > { %1807 = vmatpush3.bf16.msra.mxu1 %v1213_v56  ;;  %v1055_v59 = vpop.f32.mrb[16].mxu1  ;;  %1808 = vmatprep.mubr.msk.bf16.mxu1 %vm2286_vm1, %v2285_v8 }
 0x717   : > { %v1786_v60 = vpop.f32.mrb[17].mxu1  ;;  %1818 = vmatprep.subr.bf16.mxu1 %v2285_v8  ;;  %v1206_v4 = vpack.c.bf16 %v1055_v59, %v1055_v59 }
 0x718   : > { %v1058_v61 = vpop.f32.mrb[18].mxu1 }
 0x719   : > { %v1787_v63 = vpop.f32.mrb[19].mxu1 }
 0x71a   : > { %v1103_v2 = vpop.f32.mrb[12].mxu0 }
 0x71b   : > { %v1256_v6 = vpack.c.bf16 %v1103_v2, %v1103_v2  ;;  %v1792_v7 = vpop.f32.mrb[13].mxu0 }
 0x71c   : > { %v1106_v9 = vpop.f32.mrb[14].mxu0  ;;  %v1693_v7 = vld [vmem:[%s2842_s12] ss:$0 sm:$0xff] }
 0x71d   : > { %v1793_v10 = vpop.f32.mrb[15].mxu0  ;;  %1809 = vmatmul.mubr.msk.bf16.vlgmr.msra.gmra.mrb[24].mxu1 %vm604_vm2, %v1206_v4  ;;  %1815 = vmatmul.mubr.msk.bf16.vlgmr.msra.gmra.mrb[20].mxu0 %vm604_vm2, %v1256_v6 }
 0x71e   : > { %1822 = vmatprep.mubr.msk.bf16.mxu1 %vm2286_vm1, %v2285_v8  ;;  %1834 = vmatprep.mubr.msk.bf16.mxu0 %vm2286_vm1, %v2285_v8 }
 0x71f   : > { %1819 = vmatpush3.bf16.msra.mxu1 %v2001_v35  ;;  %1827 = vmatpush3.bf16.msra.mxu0 %v2003_v46 }
 0x720   : > { %1820 = vmatprep.subr.bf16.mxu1 %v2285_v8  ;;  %1828 = vmatprep.subr.bf16.mxu0 %v2285_v8 }
 0x723   : > { %1829 = vmatpush3.bf16.msra.mxu0 %v2004_v47 }
 0x724   : > { %1830 = vmatprep.subr.bf16.mxu0 %v2285_v8 }
 0x727   : > { %1831 = vmatpush3.bf16.msra.mxu0 %v2005_v48 }
 0x728   : > { %1832 = vmatprep.subr.bf16.mxu0 %v2285_v8 }
 0x72b   : > { %1833 = vmatpush3.bf16.msra.mxu0 %v2006_v49 }
 0x7e4   : > { %v1200_v11 = vpop.f32.mrb[16].mxu0 }
 0x7e5   : > { %v1804_v12 = vpop.f32.mrb[17].mxu0 }
 0x7e6   : > { %v1203_v13 = vpop.f32.mrb[18].mxu0 }
 0x7e7   : > { %v1805_v14 = vpop.f32.mrb[19].mxu0 }
 0x7e8   : > { %v1154_v15 = vpop.f32.mrb[20].mxu1 }
 0x7e9   : > { %v1201_v16 = vadd.f32 %v1200_v11, %v1154_v15  ;;  %v1798_v17 = vpop.f32.mrb[21].mxu1 }
 0x7ea   : > { %v1157_v18 = vpop.f32.mrb[22].mxu1 }
 0x7eb   : > { %v1799_v62 = vpop.f32.mrb[23].mxu1 }
 0x7f0   : > { %v1249_v1 = vpop.f32.mrb[24].mxu1  ;;  %v1299_v3 = vpop.f32.mrb[20].mxu0 }
 0x7f1   : > { %v1255_v5 = vadd.f32 %v1249_v1, %v1201_v16  ;;  %v1810_v19 = vpop.f32.mrb[25].mxu1  ;;  %v1816_v20 = vpop.f32.mrb[21].mxu0 }
 0x7f2   : > { %v1252_v22 = vpop.f32.mrb[26].mxu1  ;;  %v1302_v23 = vpop.f32.mrb[22].mxu0 }
 0x7f3   : > { %v1305_v28 = vadd.f32 %v1299_v3, %v1255_v5  ;;  %v1811_v26 = vpop.f32.mrb[27].mxu1  ;;  %v1817_v30 = vpop.f32.mrb[23].mxu0 }
 0x7f5   : > { %v1313_v33 = vadd.f32 %v1685_v21, %v1305_v28 }
 0x7f7   : > { %v2741_v24 = vadd.f32 %v1313_v33, %v2537_v0  ;;  %v2002_v0 = vld [vmem:[%s2839_s9 + $0x8] sm:$0xff]  }
 0x7f8   : > { %1821 = vmatpush3.bf16.msra.mxu1 %v2002_v0 }
 0x7f9   : > { %v1317_v25 = vsel %vm491_vm0, %v2741_v24, 0.0 }
 0x7fa   : > { %1318 = vadd.xlane.f32.xlu0 %v1317_v25 }
 0x887   : > { %v1319_v27 = vpop.xlane.xlu0 %1318 }
 0x888   : > { %v1320_v29 = vmul.f32 0.03125, %v1319_v27 }
 0x88a   : > { %v1321_v31 = vsub.f32 %v2741_v24, %v1320_v29 }
 0x88c   : > { %v1322_v32 = vmul.f32 %v1321_v31, %v1321_v31 }
 0x88e   : > { %v1323_v34 = vsel %vm491_vm0, %v1322_v32, 0.0 }
 0x88f   : > { %1324 = vadd.xlane.f32.xlu1 %v1323_v34 }
 0x91c   : > { %v1325_v36 = vpop.xlane.xlu1 %1324 }
 0x91d   : > { %v1326_v37 = vmul.f32 0.03125, %v1325_v36 }
 0x91f   : > { %v1327_v38 = vadd.f32 1e-05, %v1326_v37 }
 0x921   : > { %2015 = vrsqrt.f32 %v1327_v38 }
 0x92b   : > { %v2016_v39 = vpop.eup %2015 }
 0x92c   : > { %v1329_v41 = vmul.f32 %v2016_v39, %v1321_v31 }
 0x92e   : > { %v1336_v43 = vmul.f32 %v1686_v40, %v1329_v41 }
 0x930   : > { %v1343_v44 = vadd.f32 %v1687_v42, %v1336_v43 }
 0x932   : > { %v1344_v45 = vpack.c.bf16 %v1343_v44, %v1343_v44 }
 0x934   : > { %1823 = vmatmul.mubr.msk.bf16.vlgmr.msra.gmra.mrb[28].mxu1 %vm491_vm0, %v1344_v45 }
 0xa07   : > { %v1405_v51 = vpop.f32.mrb[28].mxu1 }
 0xa08   : > { %v1406_v52 = vadd.f32 %v1688_v50, %v1405_v51  ;;  %v1824_v53 = vpop.f32.mrb[29].mxu1 }
 0xa09   : > { %v1408_v54 = vpop.f32.mrb[30].mxu1 }
 0xa0a   : > { %v1411_v55 = vmin.f32 %v1406_v52, 20.0  ;;  %v1825_v56 = vpop.f32.mrb[31].mxu1 }
 0xa0c   : > { %v1412_v57 = vmul.f32 1.442695, %v1411_v55 }
 0xa0e   : > { %2017 = vpow2.f32 %v1412_v57 }
 0xa18   : > { %v2018_v8 = vpop.eup %2017 }
 0xa19   : > { %v1414_v58 = vadd.f32 1.0, %v2018_v8 }
 0xa1b   : > { %v1415_v59 = vmul.f32 %v1414_v58, %v1414_v58 }
 0xa1d   : > { %v1418_v60 = vadd.f32 1.0, %v1415_v59  ;;  %v1692_v61 = vadd.f32 -1.0, %v1415_v59 }
 0xa1f   : > { %2019 = vrcp.f32 %v1418_v60  ;;  %v1417_v63 = vmul.f32 %v1692_v61, %v1406_v52 }
 0xa29   : > { %v2020_v2 = vpop.eup %2019 }
 0xa2a   : > { %v1420_v4 = vmul.f32 %v2020_v2, %v1417_v63 }
 0xa2c   : > { %v1421_v6 = vpack.c.bf16 %v1420_v4, %v1420_v4 }
 0xa2e   : > { %1835 = vmatmul.mubr.msk.bf16.vlgmr.msra.gmra.mrb[24].mxu0 %vm1461_vm8, %v1421_v6 }
 0xb01   : > { %v1499_v9 = vpop.f32.mrb[24].mxu0 }
 0xb02   : > { %v1500_v10 = vadd.f32 %v1693_v7, %v1499_v9  ;;  %v1836_v11 = vpop.f32.mrb[25].mxu0 }
 0xb03   : > { %v1502_v12 = vpop.f32.mrb[26].mxu0 }
 0xb04   : > { %v1505_v13 = vadd.f32 %v1500_v10, %v2741_v24  ;;  %v1837_v14 = vpop.f32.mrb[27].mxu0 }
 0xb06   : > { %1506 = vst.msk [vmem:[%s482_s21] sm:$0xff] %vm491_vm0, %v1505_v13 }
 0xb07   : > { %2146 = shalt.err (!%p2143_p0)
}
 0xb08   : > { %s2147_s15 = scalar_lea.hbm %s2783_s19, 128  ;;  %s2151_s27 = scalar_lea.hbm %s2881_s17, 256 }
 0xb09   : > { %p2148_p6 = scmp.ne.s32.totalorder %s2783_s19, %s2147_s15  ;;  %p2152_p12 = scmp.lt.u32.totalorder %s2783_s19, %s2881_s17 }
 0xb0a   : > { %p2153_p10 = scmp.lt.u32.totalorder %s2151_s27, %s2147_s15  ;;  %p2155_p3 = scmp.lt.u32.totalorder %s2147_s15, %s2783_s19 }
 0xb0b   : > { %p2149_p5 = pnand %p2148_p6, %p2882_p4 }
 0xb0c   : > { %p2154_p2 = por %p2153_p10, %p2152_p12 }
 0xb0d   : > { %p2150_p9 = pneg %p2149_p5 }
 0xb0e   : > { %p2156_p7 = por %p2155_p3, %p2154_p2 }
 0xb10   : > { %p2157_p8 = pnand %p2156_p7, %p2150_p9 }
 0xb12   : > { %2160 = shalt.err (!%p2157_p8)
}
 0xb13   : > { %1854 = dma.vmem_to_hbm [thread:$0]  (%p2882_p4), %s2785_s13, 128, %s2783_s19, %s1508_s29  }
 0xb14 PF: > { %s2883_s16 = sld [smem:[#allocation17_spill]]  ;;  %s2884_s28 = sld [smem:[#allocation15_spill]] }
 0xb15   : > { %s2885_s20 = sld [smem:[#allocation20_spill]] }
 0xb1a   : > { %p1881_p11 = scmp.ge.s32.totalorder %s2883_s16, 2  ;;  %s1533_s30 = sand.u32 1, %s2884_s28  }
 0xb1b   : > { %p2886_p13 = scmp.ne.s32.totalorder %s2885_s20, 0  ;;  %s1534_s23 = scalar_lea.sflag [#allocation4], %s1533_s30 }
 0xb1d   : > { %p1870_p1 = pnand %p1881_p11, %p2886_p13 }
 0xb1f   : > { %2226 = dma.done.wait (!%p1870_p1), %s1534_s23, 128  }
 0xb20   : > { %2228 = vsyncadd (!%p1870_p1), %s1534_s23, 4294967168  ;;  %s2887_s28 = sld [smem:[#allocation18_spill]]  ;;  %s2888_s15 = sld [smem:[#allocation16_spill]] }
 0xb21   : > { %s2889_s27 = sld [smem:[#allocation19_spill]]  ;;  %s2890_s25 = smov %s2235_s26 }
 0xb26   : > { %p26_p0 = scmp.ge.s32.totalorder %s2887_s28, 4   ;;  %s2891_s26 = smov %s2888_s15 }
 0xb28   :  { %28 = sbr.rel (!%p26_p0) target bundleno = 8 (0x8), region = 145 }
 0xb2f   :  { %1539 = vsyncpa [#allocation3], 1 }
 0xb30   :  { %1541 = vsyncpa [#allocation3 + $0x1], 1 }
 0xb31   :  { %1542 = vsyncpa [#allocation6], 1 }
 0xb32   :  { %1543 = vsyncpa [#allocation9], 1 }
 0xb33   :  { %1544 = vsyncpa [#allocation4], 1 }
 0xb34   :  { %1546 = vsyncpa [#allocation4 + $0x1], 1 }

// kernel: tpu_custom_call.1
= control target key start
LH: loop header
LB: loop body
LE: loop exit
PB: predicated region body
PF: predicated region fallthrough
CT: control target
= control target key end

     0   :  { %s2830_s0 = inlined_call_operand.vmem [shape: f32[2,8,32], index: 0, kind: input, shape index: {}]   ;;  %s2831_s1 = inlined_call_operand.vmem [shape: f32[1,32], index: 1, kind: input, shape index: {}]   ;;  %s2832_s2 = inlined_call_operand.vmem [shape: f32[1,32], index: 2, kind: input, shape index: {}]   ;;  %s2833_s3 = inlined_call_operand.vmem [shape: bf16[32,96], index: 3, kind: input, shape index: {}]   ;;  %s2834_s4 = inlined_call_operand.hbm [shape: f32[1,96], index: 4, kind: input, shape index: {}]   ;;  %s2835_s5 = inlined_call_operand.vmem [shape: bf16[4,8,32], index: 5, kind: input, shape index: {}]   ;;  %s2836_s6 = inlined_call_operand.hbm [shape: f32[1,32], index: 6, kind: input, shape index: {}]   ;;  %s2837_s7 = inlined_call_operand.hbm [shape: f32[1,32], index: 7, kind: input, shape index: {}]   ;;  %s2838_s8 = inlined_call_operand.hbm [shape: f32[1,32], index: 8, kind: input, shape index: {}]   ;;  %s2839_s9 = inlined_call_operand.vmem [shape: bf16[32,64], index: 9, kind: input, shape index: {}]   ;;  %s2840_s10 = inlined_call_operand.vmem [shape: f32[1,64], index: 10, kind: input, shape index: {}]   ;;  %s2841_s11 = inlined_call_operand.vmem [shape: bf16[64,32], index: 11, kind: input, shape index: {}]   ;;  %s2842_s12 = inlined_call_operand.vmem [shape: f32[1,32], index: 12, kind: input, shape index: {}]   ;;  %s2843_s13 = inlined_call_operand.hbm [shape: f32[2,8,32], index: 13, kind: output, shape index: {}]  }
   0x1   :  { %2854 = sst [smem:[#allocation21_spill]] %s2843_s13 }
   0x2   :  { %18 = vsyncpa [#allocation3], 0 }
   0x3   :  { %19 = vsyncpa [#allocation6], 0 }
   0x4   :  { %20 = vsyncpa [#allocation9], 0 }
   0x5   :  { %21 = vsyncpa [#allocation4], 0 }
   0x6   :  { %23 = vsyncpa [#allocation4 + $0x1], 0  ;;  %s2363_s25 = smov 0   ;;  %s2365_s26 = smov 0  }
   0x7   :  { %s2367_s27 = smov 0   ;;  %s2369_s28 = smov 0  }
   0x8 LB: > { %2855 = sst [smem:[#allocation15_spill]] %s2231_s25  ;;  %s2384_s29 = sadd.s32 4294967295, %s2243_s28   ;;  %s2243_s28 = sphi %s2369_s28, %s2887_s28   ;;  %s2239_s27 = sphi %s2367_s27, %s2889_s27   ;;  %s2235_s26 = sphi %s2365_s26, %s2891_s26   ;;  %s2231_s25 = sphi %s2363_s25, %s2890_s25  }
   0x9   : > { %2856 = sst [smem:[#allocation16_spill]] %s2239_s27  ;;  %s1650_s30 = sadd.s32 4294967294, %s2243_s28  }
   0xa   : > { %2857 = sst [smem:[#allocation17_spill]] %s2243_s28  ;;  %s2388_s14 = sadd.s32 1, %s2243_s28  }
   0xb   : > { %2858 = sst [smem:[#allocation18_spill]] %s2388_s14  ;;  %s314_s15 = sadd.s32 1, %s2239_s27 }
   0xc   : > { %s311_s16 = ssub.s32 %s2243_s28, %s2388_s14  ;;  %p324_p0 = scmp.ne.s32.totalorder %s2239_s27, %s2235_s26 }
   0xd   : > { %p312_p1 = scmp.eq.s32.totalorder %s311_s16, 0  ;;  %p325_p2 = scmp.eq.s32.totalorder %s2384_s29, 1 }
   0xe   : > { %p330_p3 = scmp.ne.s32.totalorder %s2235_s26, %s2231_s25  ;;  %p331_p4 = scmp.eq.s32.totalorder %s1650_s30, 1 }
   0xf   : > { %s2399_s17 = scalar_select %p312_p1, %s2239_s27, %s314_s15  }
  0x10   : > { %p2401_p5 = por %p325_p2, %p324_p0  ;;  %p2405_p6 = por %p331_p4, %p330_p3 }
  0x11   : > { %2859 = sst [smem:[#allocation19_spill]] %s2399_s17  ;;  %p1651_p7 = scmp.ge.s32.totalorder %s2243_s28, 1 }
  0x12   : > { %s2860_s18 = scalar_select %p2401_p5, 1, 0 }
  0x13   : > { %s2861_s19 = scalar_select %p2405_p6, 1, 0 }
  0x14   : > { %p338_p8 = scmp.lt.s32.totalorder %s2243_s28, 3  ;;  %p2849_p9 = scmp.eq.s32.totalorder %s2384_s29, 0 }
  0x15   : > { %2862 = sst [smem:[#allocation20_spill]] %s2861_s19  ;;  %s2281_s21 = smov [#allocation5]  }
  0x16   : > { %p2412_p10 = pnand %p1651_p7, %p338_p8  ;;  %s374_s22 = sshll.u32 %s2281_s21, 4  ;;  %s375_s22 = int_to_ptr.vmem [resolvable:$true] %s374_s22 }
  0x17   : > { %s2282_s23 = smov [#allocation2]   ;;  %s2283_s15 = smov [#allocation7]  }
  0x18   : > { %s2863_s20 = scalar_select %p2412_p10, 1, 0 }
  0x19   : > { %p1856_p11 = pneg %p2412_p10  ;;  %s360_s24 = sshll.u32 %s2282_s23, 4  ;;  %s2424_s24 = int_to_ptr.vmem [resolvable:$true] %s360_s24 }
  0x1a   : > { %s385_s16 = sshll.u32 %s2283_s15, 4  ;;  %s2021_s21 = scalar_lea.hbm %s2836_s6, 16  ;;  %s2426_s16 = int_to_ptr.vmem [resolvable:$true] %s385_s16 }
  0x1b   : > { %p2420_p12 = pnand %p2849_p9, %p1856_p11  ;;  %p2022_p13 = scmp.ne.s32.totalorder %s2836_s6, %s2021_s21 }
  0x1c   : > { %p2028_p3 = scmp.lt.u32.totalorder %s2021_s21, %s2836_s6 }
  0x1d   : > { %p2436_p0 = pneg %p2420_p12 }
  0x1f   : > { %p2024_p1 = pnand %p2436_p0, %p2022_p13 }
  0x21   : > { %p2025_p2 = pneg %p2024_p1 }
  0x23   : > { %p2030_p4 = pnand %p2028_p3, %p2025_p2 }
  0x25   : > { %2033 = shalt.err (!%p2030_p4)
}
  0x26   : > { %s2034_s27 = scalar_lea.vmem %s375_s22, 16  ;;  %s2041_s14 = scalar_lea.vmem %s375_s22, 32 }
  0x27   : > { %p2035_p7 = scmp.ne.s32.totalorder %s375_s22, %s2034_s27  ;;  %p2042_p9 = scmp.lt.s32.totalorder %s375_s22, %s375_s22 }
  0x28   : > { %p2043_p6 = scmp.lt.s32.totalorder %s2041_s14, %s2034_s27 }
  0x29   : > { %p2037_p8 = pnand %p2035_p7, %p2436_p0 }
  0x2a   : > { %p2044_p5 = por %p2043_p6, %p2042_p9 }
  0x2b   : > { %p2038_p11 = pneg %p2037_p8 }
  0x2d   : > { %p2045_p10 = pnand %p2044_p5, %p2038_p11 }
  0x2f   : > { %2048 = shalt.err (!%p2045_p10)
}
  0x30   : > { %1862 = dma.hbm_to_vmem [thread:$0]  (!%p2420_p12), %s2836_s6, 16, %s375_s22, [#allocation6]  }
  0x31   : > { %s2049_s15 = scalar_lea.hbm %s2834_s4, 16 }
  0x32   : > { %p2050_p13 = scmp.ne.s32.totalorder %s2834_s4, %s2049_s15  ;;  %p2056_p5 = scmp.lt.u32.totalorder %s2049_s15, %s2834_s4 }
  0x34   : > { %p2052_p1 = pnand %p2050_p13, %p2436_p0 }
  0x36   : > { %p2053_p6 = pneg %p2052_p1 }
  0x38   : > { %p2058_p9 = pnand %p2056_p5, %p2053_p6 }
  0x3a   : > { %2061 = shalt.err (!%p2058_p9)
}
  0x3b   : > { %s2062_s22 = scalar_lea.vmem %s2424_s24, 16  ;;  %s2069_s13 = scalar_lea.vmem %s2424_s24, 32 }
  0x3c   : > { %p2063_p10 = scmp.ne.s32.totalorder %s2424_s24, %s2062_s22  ;;  %p2070_p4 = scmp.lt.s32.totalorder %s2424_s24, %s2424_s24 }
  0x3d   : > { %p2071_p7 = scmp.lt.s32.totalorder %s2069_s13, %s2062_s22 }
  0x3e   : > { %p2065_p2 = pnand %p2063_p10, %p2436_p0 }
  0x3f   : > { %p2072_p8 = por %p2071_p7, %p2070_p4 }
  0x40   : > { %p2066_p3 = pneg %p2065_p2 }
  0x42   : > { %p2073_p11 = pnand %p2072_p8, %p2066_p3 }
  0x44   : > { %2076 = shalt.err (!%p2073_p11)
}
  0x45   : > { %1859 = dma.hbm_to_vmem [thread:$0]  (!%p2420_p12), %s2834_s4, 16, %s2424_s24, [#allocation3]  }
  0x46   : > { %s2077_s21 = scalar_lea.hbm %s2837_s7, 16 }
  0x47   : > { %p2078_p13 = scmp.ne.s32.totalorder %s2837_s7, %s2077_s21  ;;  %p2084_p5 = scmp.lt.u32.totalorder %s2077_s21, %s2837_s7 }
  0x49   : > { %p2080_p1 = pnand %p2078_p13, %p2436_p0 }
  0x4b   : > { %p2081_p6 = pneg %p2080_p1 }
  0x4d   : > { %p2086_p9 = pnand %p2084_p5, %p2081_p6 }
  0x4f   : > { %2089 = shalt.err (!%p2086_p9)
}
  0x50   : > { %s2090_s24 = scalar_lea.vmem %s2426_s16, 16  ;;  %s2097_s13 = scalar_lea.vmem %s2426_s16, 32 }
  0x51   : > { %p2091_p10 = scmp.ne.s32.totalorder %s2426_s16, %s2090_s24  ;;  %p2098_p4 = scmp.lt.s32.totalorder %s2426_s16, %s2426_s16 }
  0x52   : > { %p2099_p7 = scmp.lt.s32.totalorder %s2097_s13, %s2090_s24 }
  0x53   : > { %p2093_p2 = pnand %p2091_p10, %p2436_p0 }
  0x54   : > { %p2100_p8 = por %p2099_p7, %p2098_p4 }
  0x55   : > { %p2094_p3 = pneg %p2093_p2 }
  0x57   : > { %p2101_p11 = pnand %p2100_p8, %p2094_p3 }
  0x59   : > { %2104 = shalt.err (!%p2101_p11)
}
  0x5a   : > { %1865 = dma.hbm_to_vmem [thread:$0]  (!%p2420_p12), %s2837_s7, 16, %s2426_s16, [#allocation6]  }
  0x5b   : > { %s2284_s19 = smov [#allocation8]   ;;  %s2105_s27 = scalar_lea.hbm %s2838_s8, 16 }
  0x5c   : > { %s396_s25 = sshll.u32 %s2284_s19, 4  ;;  %p2106_p13 = scmp.ne.s32.totalorder %s2838_s8, %s2105_s27  ;;  %s397_s25 = int_to_ptr.vmem [resolvable:$true] %s396_s25 }
  0x5d   : > { %p2112_p5 = scmp.lt.u32.totalorder %s2105_s27, %s2838_s8 }
  0x5e   : > { %p2108_p1 = pnand %p2106_p13, %p2436_p0 }
  0x60   : > { %p2109_p6 = pneg %p2108_p1 }
  0x62   : > { %p2114_p9 = pnand %p2112_p5, %p2109_p6 }
  0x64   : > { %2117 = shalt.err (!%p2114_p9)
}
  0x65   : > { %s2118_s16 = scalar_lea.vmem %s397_s25, 16  ;;  %s2125_s28 = scalar_lea.vmem %s397_s25, 32 }
  0x66   : > { %p2119_p10 = scmp.ne.s32.totalorder %s397_s25, %s2118_s16  ;;  %p2126_p4 = scmp.lt.s32.totalorder %s397_s25, %s397_s25 }
  0x67   : > { %p2127_p7 = scmp.lt.s32.totalorder %s2125_s28, %s2118_s16 }
  0x68   : > { %p2121_p2 = pnand %p2119_p10, %p2436_p0 }
  0x69   : > { %p2128_p8 = por %p2127_p7, %p2126_p4 }
  0x6a   : > { %p2122_p3 = pneg %p2121_p2 }
  0x6c   : > { %p2129_p11 = pnand %p2128_p8, %p2122_p3 }
  0x6e   : > { %2132 = shalt.err (!%p2129_p11)
}
  0x6f   : > { %1868 = dma.hbm_to_vmem [thread:$0]  (!%p2420_p12), %s2838_s8, 16, %s397_s25, [#allocation9]  }
  0x70   : > { %p2866_p13 = scmp.ne.s32.totalorder %s2863_s20, 0 }
  0x71   : > { %p2867_p1 = scmp.eq.s32.totalorder (!%p2866_p13), %s2384_s29, 0 }
  0x72   : > { %428 = sbr.rel (%p2866_p13) target bundleno = 2836 (0xb14), region = 72 }
  0x79   : > { %2214 = dma.done.wait (%p2867_p1), [#allocation3], 16   ;;  %p2868_p0 = pmov %p2867_p1 }
  0x7b   : > { %2216 = vsyncadd (%p2868_p0), [#allocation3], 4294967280  ;;  %p2869_p6 = pmov %p2868_p0 }
  0x7c   : > { %p2870_p5 = pmov %p2868_p0 }
  0x7d   : > { %2218 = dma.done.wait (%p2869_p6), [#allocation6], 32  }
  0x7e   : > { %2220 = vsyncadd (%p2870_p5), [#allocation6], 4294967264  ;;  %p2871_p9 = pmov %p2868_p0 }
  0x7f   : > { %p2872_p12 = pmov %p2868_p0 }
  0x80   : > { %2222 = dma.done.wait (%p2871_p9), [#allocation9], 16  }
  0x81   : > { %2224 = vsyncadd (%p2872_p12), [#allocation9], 4294967280  ;;  %p483_p10 = scmp.lt.s32.totalorder %s2384_s29, 1  ;;  %vm491_vm0 = vcmask 261120   ;;  %s480_s15 = sand.u32 1, %s2235_s26   ;;  %v1997_v7 = vld [vmem:[%s2833_s3] sm:$0xff]  }
  0x82   : > { %s2549_s22 = sshll.u32 %s480_s15, 3  ;;  %v2285_v8 = vmov 0.0   ;;  %vm2286_vm1 = vmmov 0   ;;  %v1998_v9 = vld [vmem:[%s2833_s3 + $0x8] sm:$0xff]   ;;  %v1664_v14 = vld [vmem:[%s2831_s1] ss:$0 sm:$0xff] }
  0x83   : > { %s484_s20 = scalar_select %p483_p10, %s2384_s29, 1  ;;  %1738 = vmatprep.subr.bf16.mxu1 %v2285_v8  ;;  %1742 = vmatprep.mubr.msk.bf16.mxu1 %vm2286_vm1, %v2285_v8  ;;  %v1665_v16 = vld [vmem:[%s2832_s2] ss:$0 sm:$0xff]  ;;  %vm604_vm2 = vcmask 64512  }
  0x84   : > { %1739 = vmatpush3.bf16.msra.mxu1 %v1997_v7  ;;  %1752 = vmatprep.subr.bf16.mxu0 %v2285_v8  ;;  %v1666_v20 = vld [vmem:[#allocation2] ss:$0 sm:$0xff]  ;;  %s2289_s23 = smov 112   ;;  %s2290_s25 = smov 96   ;;  %v2616_v7 = vmov 0.0  }
  0x85   : > { %s1663_s30 = sshll.u32 %s484_s20, 3  ;;  %1740 = vmatprep.subr.bf16.mxu1 %v2285_v8  ;;  %1754 = vmatprep.mubr.msk.bf16.mxu0 %vm2286_vm1, %v2285_v8  ;;  %s2287_s20 = smov 104  }
  0x86   : > { %s486_s21 = scalar_lea.vmem %s2830_s0, %s1663_s30  ;;  %s2288_s30 = smov 120  }
  0x87   : > { %v2537_v0 = vld [vmem:[%s486_s21] sm:$0xff]  ;;  %s482_s21 = scalar_lea.vmem [#allocation10], %s2549_s22  ;;  %s2630_s27 = smov 0  }
  0x88   : > { %v492_v1 = vsel %vm491_vm0, %v2537_v0, 0.0  ;;  %1741 = vmatpush3.bf16.msra.mxu1 %v1998_v9  ;;  %v2618_v9 = vmov 0.0  }
  0x89   : > { %493 = vadd.xlane.f32.xlu0 %v492_v1  ;;  %1746 = vmatprep.subr.bf16.mxu1 %v2285_v8 }
 0x116   : > { %v494_v2 = vpop.xlane.xlu0 %493 }
 0x117   : > { %v496_v3 = vmul.f32 0.03125, %v494_v2 }
 0x119   : > { %v497_v4 = vsub.f32 %v2537_v0, %v496_v3 }
 0x11b   : > { %v498_v5 = vmul.f32 %v497_v4, %v497_v4 }
 0x11d   : > { %v499_v6 = vsel %vm491_vm0, %v498_v5, 0.0 }
 0x11e   : > { %500 = vadd.xlane.f32.xlu0 %v499_v6  ;;  %v2614_v6 = vmov 0.0  }
 0x1ab   : > { %v501_v10 = vpop.xlane.xlu0 %500 }
 0x1ac   : > { %v502_v11 = vmul.f32 0.03125, %v501_v10  ;;  %v2620_v10 = vmov 0.0  }
 0x1ae   : > { %v503_v12 = vadd.f32 1e-05, %v502_v11  ;;  %v2622_v11 = vmov -1.0  }
 0x1b0   : > { %1999 = vrsqrt.f32 %v503_v12  ;;  %v2624_v12 = vmov -1.0  }
 0x1ba   : > { %v2000_v13 = vpop.eup %1999 }
 0x1bb   : > { %v505_v15 = vmul.f32 %v2000_v13, %v497_v4  ;;  %v2626_v13 = vmov -1.0  }
 0x1bd   : > { %v512_v17 = vmul.f32 %v1664_v14, %v505_v15  ;;  %v2628_v14 = vmov -1.0  }
 0x1bf   : > { %v519_v18 = vadd.f32 %v1665_v16, %v512_v17 }
 0x1c1   : > { %v520_v19 = vpack.c.bf16 %v519_v18, %v519_v18 }
 0x1c3   : > { %1743 = vmatmul.mubr.msk.bf16.vlgmr.msra.gmra.mrb[0].mxu1 %vm491_vm0, %v520_v19 }
 0x1c4   : > { %1748 = vmatprep.mubr.msk.bf16.mxu1 %vm2286_vm1, %v2285_v8 }
 0x296   : > { %v581_v21 = vpop.f32.mrb[0].mxu1 }
 0x297   : > { %v582_v22 = vadd.f32 %v1666_v20, %v581_v21  ;;  %v1744_v23 = vpop.f32.mrb[1].mxu1 }
 0x298   : > { %v584_v24 = vpop.f32.mrb[2].mxu1 }
 0x299   : > { %594 = vrot.lane.b32.xlu0 %v582_v22, %s2287_s20  ;;  %588 = vrot.lane.b32.xlu1 %v582_v22, %s2288_s30  ;;  %v1745_v25 = vpop.f32.mrb[3].mxu1  ;;  %v2571_v26 = vpack.c.bf16 %v582_v22, %v582_v22 }
 0x29d   : > { %591 = vrot.lane.b32.xlu1 %v582_v22, %s2289_s23 }
 0x2a1   : > { %602 = vrot.lane.b32.xlu1 %v2571_v26, %s2290_s25 }
 0x30b   : > { %v589_v27 = vpop.permute.xlu1 %588  ;;  %v595_v31 = vpop.permute.xlu0 %594 }
 0x30c   : > { %v2574_v28 = vpack.c.bf16 %v589_v27, %v589_v27  ;;  %v2580_v33 = vpack.c.bf16 %v595_v31, %v595_v31 }
 0x30e   : > { %652 = vrot.lane.b32.xlu1 %v2574_v28, %s2290_s25 }
 0x30f   : > { %v592_v29 = vpop.permute.xlu1 %591 }
 0x310   : > { %v2577_v30 = vpack.c.bf16 %v592_v29, %v592_v29 }
 0x312   : > { %701 = vrot.lane.b32.xlu1 %v2577_v30, %s2290_s25 }
 0x313   : > { %v603_v32 = vpop.permute.xlu1 %602 }
 0x314   : > { %v609_v34 = vsel %vm604_vm2, %v603_v32, 0 }
 0x315   : > { %1747 = vmatpush3.bf16.xpose.msra.mxu1 %v609_v34 }
 0x316   : > { %750 = vrot.lane.b32.xlu1 %v2580_v33, %s2290_s25  ;;  %1758 = vmatprep.subr.bf16.mxu1 %v2285_v8 }
 0x31c   : > { %1749 = vmatmul.mubr.msk.bf16.vlgmr.msra.gmra.mrb[4].mxu1 %vm604_vm2, %v2571_v26 }
 0x31d   : > { %1760 = vmatprep.mubr.msk.bf16.mxu1 %vm2286_vm1, %v2285_v8 }
 0x380   : > { %v653_v35 = vpop.permute.xlu1 %652 }
 0x381   : > { %v658_v36 = vsel %vm604_vm2, %v653_v35, 0 }
 0x382   : > { %1753 = vmatpush3.bf16.xpose.msra.mxu0 %v658_v36 }
 0x383   : > { %1764 = vmatprep.subr.bf16.mxu0 %v2285_v8 }
 0x384   : > { %v702_v37 = vpop.permute.xlu1 %701 }
 0x385   : > { %v707_v38 = vsel %vm604_vm2, %v702_v37, 0 }
 0x386   : > { %1759 = vmatpush3.bf16.xpose.msra.mxu1 %v707_v38 }
 0x388   : > { %v751_v39 = vpop.permute.xlu1 %750 }
 0x389   : > { %v756_v40 = vsel %vm604_vm2, %v751_v39, 0  ;;  %1755 = vmatmul.mubr.msk.bf16.vlgmr.msra.gmra.mrb[0].mxu0 %vm604_vm2, %v2574_v28 }
 0x38a   : > { %1765 = vmatpush3.bf16.xpose.msra.mxu0 %v756_v40  ;;  %1766 = vmatprep.mubr.msk.bf16.mxu0 %vm2286_vm1, %v2285_v8 }
 0x38d   : > { %1761 = vmatmul.mubr.msk.bf16.vlgmr.msra.gmra.mrb[8].mxu1 %vm604_vm2, %v2577_v30 }
 0x391   : > { %1767 = vmatmul.mubr.msk.bf16.vlgmr.msra.gmra.mrb[4].mxu0 %vm604_vm2, %v2580_v33 }
 0x3ef   : > { %v645_v41 = vpop.f32.mrb[4].mxu1 }
 0x3f0   : > { %v1750_v42 = vpop.f32.mrb[5].mxu1  ;;  %v798_v43 = vsel %vm604_vm2, %v645_v41, -inf }
 0x3f1   : > { %799 = vmax.xlane.f32.xlu1 %v798_v43  ;;  %v648_v44 = vpop.f32.mrb[6].mxu1 }
 0x3f2   : > { %v1751_v45 = vpop.f32.mrb[7].mxu1 }
 0x45c   : > { %v694_v46 = vpop.f32.mrb[0].mxu0 }
 0x45d   : > { %v1756_v47 = vpop.f32.mrb[1].mxu0  ;;  %v801_v48 = vsel %vm604_vm2, %v694_v46, -inf }
 0x45e   : > { %802 = vmax.xlane.f32.xlu0 %v801_v48  ;;  %v697_v49 = vpop.f32.mrb[2].mxu0 }
 0x45f   : > { %v1757_v50 = vpop.f32.mrb[3].mxu0 }
 0x460   : > { %v743_v51 = vpop.f32.mrb[8].mxu1 }
 0x461   : > { %v1762_v52 = vpop.f32.mrb[9].mxu1  ;;  %v804_v53 = vsel %vm604_vm2, %v743_v51, -inf }
 0x462   : > { %805 = vmax.xlane.f32.xlu1 %v804_v53  ;;  %v746_v54 = vpop.f32.mrb[10].mxu1 }
 0x463   : > { %v1763_v55 = vpop.f32.mrb[11].mxu1 }
 0x464   : > { %v792_v56 = vpop.f32.mrb[4].mxu0 }
 0x465   : > { %v1768_v57 = vpop.f32.mrb[5].mxu0  ;;  %v807_v58 = vsel %vm604_vm2, %v792_v56, -inf }
 0x466   : > { %808 = vmax.xlane.f32.xlu0 %v807_v58  ;;  %v795_v59 = vpop.f32.mrb[6].mxu0 }
 0x467   : > { %v1769_v60 = vpop.f32.mrb[7].mxu0 }
 0x47e   : > { %v800_v61 = vpop.xlane.xlu1 %799 }
 0x47f   : > { %v2605_v62 = vsub.f32 %v645_v41, %v800_v61 }
 0x4eb   : > { %v803_v63 = vpop.xlane.xlu0 %802 }
 0x4ec   : > { %v2607_v1 = vsub.f32 %v694_v46, %v803_v63 }
 0x4ef   : > { %v806_v2 = vpop.xlane.xlu1 %805 }
 0x4f0   : > { %v2609_v3 = vsub.f32 %v743_v51, %v806_v2 }
 0x4f3   : > { %v809_v4 = vpop.xlane.xlu0 %808 }
 0x4f4   : > { %v2611_v5 = vsub.f32 %v792_v56, %v809_v4 }
 0x4f5 LB: >> { %v828_v15 = vadd.f32 %v2259_v10, %v2275_v14  ;;  %v830_v16 = vadd.f32 %v2251_v7, %v2267_v12  ;;  %v829_v19 = vadd.f32 %v2255_v9, %v2271_v13  ;;  %v831_v23 = vadd.f32 %v2247_v6, %v2263_v11  ;;  %s819_s27 = sadd.s32 1, %s2279_s27   ;;  %s2279_s27 = sphi %s2630_s27, %s819_s27   ;;  %v2275_v14 = vphi %v2628_v14, %v2880_v14   ;;  %v2271_v13 = vphi %v2626_v13, %v2879_v13   ;;  %v2267_v12 = vphi %v2624_v12, %v2878_v12   ;;  %v2263_v11 = vphi %v2622_v11, %v2877_v11   ;;  %v2259_v10 = vphi %v2620_v10, %v2876_v10   ;;  %v2255_v9 = vphi %v2618_v9, %v2875_v9   ;;  %v2251_v7 = vphi %v2616_v7, %v2874_v7   ;;  %v2247_v6 = vphi %v2614_v6, %v2873_v6  }
 0x4f6   : >> { %p816_p2 = scmp.ge.s32.totalorder %s819_s27, 23  }
 0x4f7   : >> { %v832_v17 = vmul.f32 0.5, %v828_v15  ;;  %v834_v18 = vmul.f32 0.5, %v830_v16  ;;  %v833_v22 = vmul.f32 0.5, %v829_v19  ;;  %v835_v29 = vmul.f32 0.5, %v831_v23  ;;  %1770 = vmatprep.subr.bf16.mxu1 (%p816_p2), %v2285_v8  ;;  %1776 = vmatprep.subr.bf16.mxu0 (%p816_p2), %v2285_v8  ;;  %s2291_s14 = smov (%p816_p2), 64   ;;  %s1700_s24 = sshll.u32 (%p816_p2), %s2384_s29, 7 }
 0x4f8   : > { %1772 = vmatprep.mubr.msk.bf16.mxu1 (%p816_p2), %vm2286_vm1, %v2285_v8  ;;  %1778 = vmatprep.mubr.msk.bf16.mxu0 (%p816_p2), %vm2286_vm1, %v2285_v8  ;;  %vm921_vm7 = vcmask (%p816_p2), 1043456   ;;  %vm1461_vm8 = vcmask (%p816_p2), 523264   ;;  %s1521_s13 = sshll.u32 (%p816_p2), %s482_s21, 4  ;;  %s2881_s17 = sld [smem:[#allocation21_spill]] (%p816_p2)  ;;  %s2785_s13 = int_to_ptr.vmem [resolvable:$true] %s1521_s13 }
 0x4f9   : >> { %v836_v20 = vsub.f32 %v2605_v62, %v832_v17  ;;  %v838_v21 = vsub.f32 %v2609_v3, %v834_v18  ;;  %v837_v27 = vsub.f32 %v2607_v1, %v833_v22  ;;  %v839_v35 = vsub.f32 %v2611_v5, %v835_v29  ;;  %s1508_s29 = scalar_lea.sflag (%p816_p2), [#allocation4], %s480_s15  ;;  %s2133_s20 = scalar_lea.vmem (%p816_p2), %s2785_s13, 128 }
 0x4fa   : > { %p2134_p3 = scmp.ne.s32.totalorder (%p816_p2), %s2785_s13, %s2133_s20  ;;  %p2882_p4 = scmp.ne.s32.totalorder (%p816_p2), %s2860_s18, 0 }
 0x4fb   : >> { %v840_v24 = vmax.f32 %v836_v20, 0.0  ;;  %v842_v25 = vmax.f32 %v838_v21, 0.0  ;;  %v841_v34 = vmax.f32 %v837_v27, 0.0  ;;  %v843_v39 = vmax.f32 %v839_v35, 0.0  ;;  %s2292_s30 = smov (%p816_p2), [#allocation10]  }
 0x4fc   : > { %p2135_p7 = pnand (%p816_p2), %p2134_p3, %p2882_p4  ;;  %s2137_s23 = sshll.u32 (%p816_p2), %s2292_s30, 4  ;;  %s2138_s23 = int_to_ptr.vmem [resolvable:$false] %s2137_s23 }
 0x4fd   : >> { %v844_v31 = vmul.f32 %v840_v24, %v840_v24  ;;  %v846_v32 = vmul.f32 %v842_v25, %v842_v25  ;;  %v845_v38 = vmul.f32 %v841_v34, %v841_v34  ;;  %v847_v41 = vmul.f32 %v843_v39, %v843_v39  ;;  %s2139_s25 = scalar_lea.vmem (%p816_p2), %s2138_s23, 256  ;;  %p2140_p11 = scmp.lt.s32.totalorder (%p816_p2), %s2785_s13, %s2138_s23 }
 0x4fe   : > { %s2783_s19 = scalar_lea.hbm (%p816_p2), %s2881_s17, %s1700_s24  ;;  %p2136_p8 = pneg (%p816_p2), %p2135_p7 }
 0x4ff   : >> { %v848_v36 = vsel %vm604_vm2, %v844_v31, 0.0  ;;  %v854_v37 = vsel %vm604_vm2, %v846_v32, 0.0  ;;  %v851_v40 = vsel %vm604_vm2, %v845_v38, 0.0  ;;  %v857_v42 = vsel %vm604_vm2, %v847_v41, 0.0  ;;  %v1678_v38 = vld [vmem:[%s2835_s5 + $0x4] sm:$0xf] (%p816_p2)  ;;  %p2141_p13 = scmp.lt.s32.totalorder (%p816_p2), %s2139_s25, %s2133_s20 }
 0x500   : >> { %849 = vadd.xlane.f32.xlu0 %v848_v36  ;;  %855 = vadd.xlane.f32.xlu1 %v854_v37  ;;  %v1118_v41 = vsel (%p816_p2), %vm921_vm7, %v1678_v38, 0 }
 0x501   : > { %p2142_p1 = por (%p816_p2), %p2141_p13, %p2140_p11 }
 0x503   : > { %p2143_p0 = pnand (%p816_p2), %p2142_p1, %p2136_p8 }
 0x504   : >> { %852 = vadd.xlane.f32.xlu0 %v851_v40  ;;  %858 = vadd.xlane.f32.xlu1 %v857_v42 }
 0x58d   : >> { %v850_v43 = vpop.xlane.xlu0 %849  ;;  %v856_v44 = vpop.xlane.xlu1 %855 }
 0x58e   : >> { %vm860_vm3 = vcmp.gt.f32.partialorder %v850_v43, 1.0  ;;  %vm862_vm4 = vcmp.gt.f32.partialorder %v856_v44, 1.0  ;;  %818 = sbr.rel (!%p816_p2) target bundleno = 1269 (0x4f5), region = 134  ;;  %v1110_v43 = vld [vmem:[%s2835_s5] sm:$0xf] (%p816_p2) }
 0x58f   : >> { %v864_v45 = vsel %vm860_vm3, %v832_v17, %v2275_v14   ;;  %v868_v46 = vsel %vm860_vm3, %v2259_v10, %v832_v17   ;;  %v866_v47 = vsel %vm862_vm4, %v834_v18, %v2267_v12   ;;  %v870_v48 = vsel %vm862_vm4, %v2251_v7, %v834_v18  }
 0x590   : >> { %v2874_v7 = vmov %v870_v48  ;;  %v2876_v10 = vmov %v868_v46  ;;  %v2878_v12 = vmov %v866_v47  ;;  %v2880_v14 = vmov %v864_v45 }
 0x591   : >> { %v853_v49 = vpop.xlane.xlu0 %852  ;;  %v859_v50 = vpop.xlane.xlu1 %858  ;;  %v872_v55 = vadd.f32 (%p816_p2), %v868_v46, %v864_v45  ;;  %v874_v56 = vadd.f32 (%p816_p2), %v870_v48, %v866_v47  ;;  %v1164_v44 = vsel (%p816_p2), %vm921_vm7, %v1110_v43, 0  ;;  %v1683_v45 = vld [vmem:[%s2835_s5 + $0xc] sm:$0xf] (%p816_p2) }
 0x592   : >> { %vm861_vm5 = vcmp.gt.f32.partialorder %v853_v49, 1.0  ;;  %vm863_vm6 = vcmp.gt.f32.partialorder %v859_v50, 1.0  ;;  %v1263_v49 = vsel (%p816_p2), %vm921_vm7, %v1683_v45, 0 }
 0x593   : >> { %v865_v51 = vsel %vm861_vm5, %v833_v22, %v2271_v13   ;;  %v869_v52 = vsel %vm861_vm5, %v2255_v9, %v833_v22   ;;  %v867_v53 = vsel %vm863_vm6, %v835_v29, %v2263_v11   ;;  %v871_v54 = vsel %vm863_vm6, %v2247_v6, %v835_v29  }
 0x594   : >> { %v2873_v6 = vmov %v871_v54  ;;  %v2875_v9 = vmov %v869_v52  ;;  %v2877_v11 = vmov %v867_v53  ;;  %v2879_v13 = vmov %v865_v51 }
 0x595   : > { %v873_v57 = vadd.f32 %v869_v52, %v865_v51  ;;  %v875_v58 = vadd.f32 %v871_v54, %v867_v53  ;;  %v876_v59 = vmul.f32 0.5, %v872_v55  ;;  %v878_v60 = vmul.f32 0.5, %v874_v56  ;;  %v1681_v51 = vld [vmem:[%s2835_s5 + $0x8] sm:$0xf] }
 0x596   : > { %v1213_v56 = vsel %vm921_vm7, %v1681_v51, 0 }
 0x597   : > { %v877_v61 = vmul.f32 0.5, %v873_v57  ;;  %v879_v63 = vmul.f32 0.5, %v875_v58  ;;  %v880_v2 = vsub.f32 %v2605_v62, %v876_v59  ;;  %v882_v4 = vsub.f32 %v2609_v3, %v878_v60 }
 0x599   : > { %v881_v6 = vsub.f32 %v2607_v1, %v877_v61  ;;  %v883_v7 = vsub.f32 %v2611_v5, %v879_v63  ;;  %v884_v9 = vmax.f32 %v880_v2, 0.0  ;;  %v886_v10 = vmax.f32 %v882_v4, 0.0 }
 0x59b   : > { %v885_v11 = vmax.f32 %v881_v6, 0.0  ;;  %v887_v12 = vmax.f32 %v883_v7, 0.0  ;;  %v888_v13 = vmul.f32 %v884_v9, %v884_v9  ;;  %v890_v14 = vmul.f32 %v886_v10, %v886_v10 }
 0x59d   : > { %v889_v15 = vmul.f32 %v885_v11, %v885_v11  ;;  %v891_v16 = vmul.f32 %v887_v12, %v887_v12  ;;  %v892_v17 = vsel %vm604_vm2, %v888_v13, 0.0  ;;  %v898_v18 = vsel %vm604_vm2, %v890_v14, 0.0 }
 0x59e   : > { %893 = vadd.xlane.f32.xlu0 %v892_v17  ;;  %899 = vadd.xlane.f32.xlu1 %v898_v18 }
 0x59f   : > { %v895_v62 = vsel %vm604_vm2, %v889_v15, 0.0  ;;  %v901_v1 = vsel %vm604_vm2, %v891_v16, 0.0 }
 0x5a2   : > { %896 = vadd.xlane.f32.xlu0 %v895_v62  ;;  %902 = vadd.xlane.f32.xlu1 %v901_v1 }
 0x5b3   : > { %965 = vrot.lane.b32.xlu1 %v2574_v28, %s2291_s14 }
 0x5b7   : > { %1013 = vrot.lane.b32.xlu1 %v2577_v30, %s2291_s14 }
 0x5b8   : > { %916 = vrot.lane.b32.xlu0 %v2571_v26, %s2291_s14 }
 0x5bb   : > { %1061 = vrot.lane.b32.xlu1 %v2580_v33, %s2291_s14 }
 0x62b   : > { %v894_v3 = vpop.xlane.xlu0 %893  ;;  %v900_v5 = vpop.xlane.xlu1 %899 }
 0x62c   : > { %2007 = vrcp.f32 %v894_v3 }
 0x62d   : > { %2009 = vrcp.f32 %v900_v5 }
 0x62f   : > { %v897_v19 = vpop.xlane.xlu0 %896  ;;  %v903_v20 = vpop.xlane.xlu1 %902 }
 0x630   : > { %2011 = vrcp.f32 %v897_v19 }
 0x631   : > { %2013 = vrcp.f32 %v903_v20 }
 0x633   : > { %v917_v21 = vpop.permute.xlu0 %916  ;;  %v966_v22 = vpop.permute.xlu1 %965 }
 0x634   : > { %v923_v23 = vsel %vm921_vm7, %v917_v21, 0  ;;  %v971_v28 = vsel %vm921_vm7, %v966_v22, 0  ;;  %v1685_v21 = vld [vmem:[#allocation5] ss:$0 sm:$0xff] }
 0x635   : > { %1771 = vmatpush3.bf16.msra.mxu1 %v923_v23  ;;  %1777 = vmatpush3.bf16.msra.mxu0 %v971_v28 }
 0x636   : > { %v2008_v26 = vpop.eup %2007  ;;  %1782 = vmatprep.subr.bf16.mxu1 %v2285_v8  ;;  %1788 = vmatprep.subr.bf16.mxu0 %v2285_v8 }
 0x637   : > { %v1014_v30 = vpop.permute.xlu1 %1013  ;;  %v908_v33 = vmul.f32 %v2008_v26, %v888_v13  ;;  %v2010_v24 = vpop.eup %2009 }
 0x638   : > { %v1019_v25 = vsel %vm921_vm7, %v1014_v30, 0  ;;  %v910_v34 = vmul.f32 %v2010_v24, %v890_v14 }
 0x639   : > { %v912_v27 = vpack.c.bf16 %v908_v33, %v908_v33 }
 0x63a   : > { %v2012_v29 = vpop.eup %2011  ;;  %v914_v39 = vpack.c.bf16 %v910_v34, %v910_v34 }
 0x63b   : > { %1773 = vmatmul.mubr.msk.bf16.vlgmr.msra.gmra.mrb[12].mxu1 %vm604_vm2, %v912_v27  ;;  %v1062_v31 = vpop.permute.xlu1 %1061  ;;  %v909_v32 = vmul.f32 %v2012_v29, %v889_v15  ;;  %v2014_v35 = vpop.eup %2013 }
 0x63c   : > { %1783 = vmatpush3.bf16.msra.mxu1 %v1019_v25  ;;  %1784 = vmatprep.mubr.msk.bf16.mxu1 %vm2286_vm1, %v2285_v8  ;;  %v1067_v36 = vsel %vm921_vm7, %v1062_v31, 0  ;;  %v911_v40 = vmul.f32 %v2014_v35, %v891_v16  ;;  %v2001_v35 = vld [vmem:[%s2839_s9] sm:$0xff]  }
 0x63d   : > { %v913_v37 = vpack.c.bf16 %v909_v32, %v909_v32  ;;  %1794 = vmatprep.subr.bf16.mxu1 %v2285_v8 }
 0x63e   : > { %v915_v42 = vpack.c.bf16 %v911_v40, %v911_v40  ;;  %v1686_v40 = vld [vmem:[#allocation7] ss:$0 sm:$0xff] }
 0x63f   : > { %1779 = vmatmul.mubr.msk.bf16.vlgmr.msra.gmra.mrb[8].mxu0 %vm604_vm2, %v913_v37 }
 0x640   : > { %1789 = vmatpush3.bf16.msra.mxu0 %v1067_v36  ;;  %1790 = vmatprep.mubr.msk.bf16.mxu0 %vm2286_vm1, %v2285_v8 }
 0x641   : > { %1800 = vmatprep.subr.bf16.mxu0 %v2285_v8 }
 0x643   : > { %1785 = vmatmul.mubr.msk.bf16.vlgmr.msra.gmra.mrb[16].mxu1 %vm604_vm2, %v914_v39 }
 0x644   : > { %1795 = vmatpush3.bf16.msra.mxu1 %v1118_v41  ;;  %1796 = vmatprep.mubr.msk.bf16.mxu1 %vm2286_vm1, %v2285_v8 }
 0x645   : > { %1806 = vmatprep.subr.bf16.mxu1 %v2285_v8 }
 0x647   : > { %1791 = vmatmul.mubr.msk.bf16.vlgmr.msra.gmra.mrb[12].mxu0 %vm604_vm2, %v915_v42  ;;  %v1687_v42 = vld [vmem:[#allocation8] ss:$0 sm:$0xff] }
 0x648   : > { %1802 = vmatprep.mubr.msk.bf16.mxu0 %vm2286_vm1, %v2285_v8  ;;  %1801 = vmatpush3.bf16.msra.mxu0 %v1164_v44 }
 0x649   : > { %1812 = vmatprep.subr.bf16.mxu0 %v2285_v8 }
 0x70e   : > { %v959_v46 = vpop.f32.mrb[12].mxu1 }
 0x70f   : > { %v1109_v47 = vpack.c.bf16 %v959_v46, %v959_v46  ;;  %v1774_v48 = vpop.f32.mrb[13].mxu1  ;;  %v2003_v46 = vld [vmem:[%s2841_s11] sm:$0xff]  }
 0x710   : > { %v962_v50 = vpop.f32.mrb[14].mxu1  ;;  %v2005_v48 = vld [vmem:[%s2841_s11 + $0x10] sm:$0xff]  }
 0x711   : > { %v1775_v52 = vpop.f32.mrb[15].mxu1  ;;  %1803 = vmatmul.mubr.msk.bf16.vlgmr.msra.gmra.mrb[16].mxu0 %vm604_vm2, %v1109_v47  ;;  %v2004_v47 = vld [vmem:[%s2841_s11 + $0x8] sm:$0xff]   ;;  %v1688_v50 = vld [vmem:[%s2840_s10] ss:$0 sm:$0xff] }
 0x712   : > { %v1007_v53 = vpop.f32.mrb[8].mxu0  ;;  %1813 = vmatpush3.bf16.msra.mxu0 %v1263_v49  ;;  %1814 = vmatprep.mubr.msk.bf16.mxu0 %vm2286_vm1, %v2285_v8  ;;  %v2006_v49 = vld [vmem:[%s2841_s11 + $0x18] sm:$0xff]  }
 0x713   : > { %v1111_v54 = vpack.c.bf16 %v1007_v53, %v1007_v53  ;;  %v1780_v55 = vpop.f32.mrb[9].mxu0  ;;  %1826 = vmatprep.subr.bf16.mxu0 %v2285_v8 }
 0x714   : > { %v1010_v57 = vpop.f32.mrb[10].mxu0 }
 0x715   : > { %v1781_v58 = vpop.f32.mrb[11].mxu0  ;;  %1797 = vmatmul.mubr.msk.bf16.vlgmr.msra.gmra.mrb[20].mxu1 %vm604_vm2, %v1111_v54 }
 0x716   : > { %1807 = vmatpush3.bf16.msra.mxu1 %v1213_v56  ;;  %v1055_v59 = vpop.f32.mrb[16].mxu1  ;;  %1808 = vmatprep.mubr.msk.bf16.mxu1 %vm2286_vm1, %v2285_v8 }
 0x717   : > { %v1786_v60 = vpop.f32.mrb[17].mxu1  ;;  %1818 = vmatprep.subr.bf16.mxu1 %v2285_v8  ;;  %v1206_v4 = vpack.c.bf16 %v1055_v59, %v1055_v59 }
 0x718   : > { %v1058_v61 = vpop.f32.mrb[18].mxu1 }
 0x719   : > { %v1787_v63 = vpop.f32.mrb[19].mxu1 }
 0x71a   : > { %v1103_v2 = vpop.f32.mrb[12].mxu0 }
 0x71b   : > { %v1256_v6 = vpack.c.bf16 %v1103_v2, %v1103_v2  ;;  %v1792_v7 = vpop.f32.mrb[13].mxu0 }
 0x71c   : > { %v1106_v9 = vpop.f32.mrb[14].mxu0  ;;  %v1693_v7 = vld [vmem:[%s2842_s12] ss:$0 sm:$0xff] }
 0x71d   : > { %v1793_v10 = vpop.f32.mrb[15].mxu0  ;;  %1809 = vmatmul.mubr.msk.bf16.vlgmr.msra.gmra.mrb[24].mxu1 %vm604_vm2, %v1206_v4  ;;  %1815 = vmatmul.mubr.msk.bf16.vlgmr.msra.gmra.mrb[20].mxu0 %vm604_vm2, %v1256_v6 }
 0x71e   : > { %1822 = vmatprep.mubr.msk.bf16.mxu1 %vm2286_vm1, %v2285_v8  ;;  %1834 = vmatprep.mubr.msk.bf16.mxu0 %vm2286_vm1, %v2285_v8 }
 0x71f   : > { %1819 = vmatpush3.bf16.msra.mxu1 %v2001_v35  ;;  %1827 = vmatpush3.bf16.msra.mxu0 %v2003_v46 }
 0x720   : > { %1820 = vmatprep.subr.bf16.mxu1 %v2285_v8  ;;  %1828 = vmatprep.subr.bf16.mxu0 %v2285_v8 }
 0x723   : > { %1829 = vmatpush3.bf16.msra.mxu0 %v2004_v47 }
 0x724   : > { %1830 = vmatprep.subr.bf16.mxu0 %v2285_v8 }
 0x727   : > { %1831 = vmatpush3.bf16.msra.mxu0 %v2005_v48 }
 0x728   : > { %1832 = vmatprep.subr.bf16.mxu0 %v2285_v8 }
 0x72b   : > { %1833 = vmatpush3.bf16.msra.mxu0 %v2006_v49 }
 0x7e4   : > { %v1200_v11 = vpop.f32.mrb[16].mxu0 }
 0x7e5   : > { %v1804_v12 = vpop.f32.mrb[17].mxu0 }
 0x7e6   : > { %v1203_v13 = vpop.f32.mrb[18].mxu0 }
 0x7e7   : > { %v1805_v14 = vpop.f32.mrb[19].mxu0 }
 0x7e8   : > { %v1154_v15 = vpop.f32.mrb[20].mxu1 }
 0x7e9   : > { %v1201_v16 = vadd.f32 %v1200_v11, %v1154_v15  ;;  %v1798_v17 = vpop.f32.mrb[21].mxu1 }
 0x7ea   : > { %v1157_v18 = vpop.f32.mrb[22].mxu1 }
 0x7eb   : > { %v1799_v62 = vpop.f32.mrb[23].mxu1 }
 0x7f0   : > { %v1249_v1 = vpop.f32.mrb[24].mxu1  ;;  %v1299_v3 = vpop.f32.mrb[20].mxu0 }
 0x7f1   : > { %v1255_v5 = vadd.f32 %v1249_v1, %v1201_v16  ;;  %v1810_v19 = vpop.f32.mrb[25].mxu1  ;;  %v1816_v20 = vpop.f32.mrb[21].mxu0 }
 0x7f2   : > { %v1252_v22 = vpop.f32.mrb[26].mxu1  ;;  %v1302_v23 = vpop.f32.mrb[22].mxu0 }
 0x7f3   : > { %v1305_v28 = vadd.f32 %v1299_v3, %v1255_v5  ;;  %v1811_v26 = vpop.f32.mrb[27].mxu1  ;;  %v1817_v30 = vpop.f32.mrb[23].mxu0 }
 0x7f5   : > { %v1313_v33 = vadd.f32 %v1685_v21, %v1305_v28 }
 0x7f7   : > { %v2741_v24 = vadd.f32 %v1313_v33, %v2537_v0  ;;  %v2002_v0 = vld [vmem:[%s2839_s9 + $0x8] sm:$0xff]  }
 0x7f8   : > { %1821 = vmatpush3.bf16.msra.mxu1 %v2002_v0 }
 0x7f9   : > { %v1317_v25 = vsel %vm491_vm0, %v2741_v24, 0.0 }
 0x7fa   : > { %1318 = vadd.xlane.f32.xlu0 %v1317_v25 }
 0x887   : > { %v1319_v27 = vpop.xlane.xlu0 %1318 }
 0x888   : > { %v1320_v29 = vmul.f32 0.03125, %v1319_v27 }
 0x88a   : > { %v1321_v31 = vsub.f32 %v2741_v24, %v1320_v29 }
 0x88c   : > { %v1322_v32 = vmul.f32 %v1321_v31, %v1321_v31 }
 0x88e   : > { %v1323_v34 = vsel %vm491_vm0, %v1322_v32, 0.0 }
 0x88f   : > { %1324 = vadd.xlane.f32.xlu1 %v1323_v34 }
 0x91c   : > { %v1325_v36 = vpop.xlane.xlu1 %1324 }
 0x91d   : > { %v1326_v37 = vmul.f32 0.03125, %v1325_v36 }
 0x91f   : > { %v1327_v38 = vadd.f32 1e-05, %v1326_v37 }
 0x921   : > { %2015 = vrsqrt.f32 %v1327_v38 }
 0x92b   : > { %v2016_v39 = vpop.eup %2015 }
 0x92c   : > { %v1329_v41 = vmul.f32 %v2016_v39, %v1321_v31 }
 0x92e   : > { %v1336_v43 = vmul.f32 %v1686_v40, %v1329_v41 }
 0x930   : > { %v1343_v44 = vadd.f32 %v1687_v42, %v1336_v43 }
 0x932   : > { %v1344_v45 = vpack.c.bf16 %v1343_v44, %v1343_v44 }
 0x934   : > { %1823 = vmatmul.mubr.msk.bf16.vlgmr.msra.gmra.mrb[28].mxu1 %vm491_vm0, %v1344_v45 }
 0xa07   : > { %v1405_v51 = vpop.f32.mrb[28].mxu1 }
 0xa08   : > { %v1406_v52 = vadd.f32 %v1688_v50, %v1405_v51  ;;  %v1824_v53 = vpop.f32.mrb[29].mxu1 }
 0xa09   : > { %v1408_v54 = vpop.f32.mrb[30].mxu1 }
 0xa0a   : > { %v1411_v55 = vmin.f32 %v1406_v52, 20.0  ;;  %v1825_v56 = vpop.f32.mrb[31].mxu1 }
 0xa0c   : > { %v1412_v57 = vmul.f32 1.442695, %v1411_v55 }
 0xa0e   : > { %2017 = vpow2.f32 %v1412_v57 }
 0xa18   : > { %v2018_v8 = vpop.eup %2017 }
 0xa19   : > { %v1414_v58 = vadd.f32 1.0, %v2018_v8 }
 0xa1b   : > { %v1415_v59 = vmul.f32 %v1414_v58, %v1414_v58 }
 0xa1d   : > { %v1418_v60 = vadd.f32 1.0, %v1415_v59  ;;  %v1692_v61 = vadd.f32 -1.0, %v1415_v59 }
 0xa1f   : > { %2019 = vrcp.f32 %v1418_v60  ;;  %v1417_v63 = vmul.f32 %v1692_v61, %v1406_v52 }
 0xa29   : > { %v2020_v2 = vpop.eup %2019 }
 0xa2a   : > { %v1420_v4 = vmul.f32 %v2020_v2, %v1417_v63 }
 0xa2c   : > { %v1421_v6 = vpack.c.bf16 %v1420_v4, %v1420_v4 }
 0xa2e   : > { %1835 = vmatmul.mubr.msk.bf16.vlgmr.msra.gmra.mrb[24].mxu0 %vm1461_vm8, %v1421_v6 }
 0xb01   : > { %v1499_v9 = vpop.f32.mrb[24].mxu0 }
 0xb02   : > { %v1500_v10 = vadd.f32 %v1693_v7, %v1499_v9  ;;  %v1836_v11 = vpop.f32.mrb[25].mxu0 }
 0xb03   : > { %v1502_v12 = vpop.f32.mrb[26].mxu0 }
 0xb04   : > { %v1505_v13 = vadd.f32 %v1500_v10, %v2741_v24  ;;  %v1837_v14 = vpop.f32.mrb[27].mxu0 }
 0xb06   : > { %1506 = vst.msk [vmem:[%s482_s21] sm:$0xff] %vm491_vm0, %v1505_v13 }
 0xb07   : > { %2146 = shalt.err (!%p2143_p0)
}
 0xb08   : > { %s2147_s15 = scalar_lea.hbm %s2783_s19, 128  ;;  %s2151_s27 = scalar_lea.hbm %s2881_s17, 256 }
 0xb09   : > { %p2148_p6 = scmp.ne.s32.totalorder %s2783_s19, %s2147_s15  ;;  %p2152_p12 = scmp.lt.u32.totalorder %s2783_s19, %s2881_s17 }
 0xb0a   : > { %p2153_p10 = scmp.lt.u32.totalorder %s2151_s27, %s2147_s15  ;;  %p2155_p3 = scmp.lt.u32.totalorder %s2147_s15, %s2783_s19 }
 0xb0b   : > { %p2149_p5 = pnand %p2148_p6, %p2882_p4 }
 0xb0c   : > { %p2154_p2 = por %p2153_p10, %p2152_p12 }
 0xb0d   : > { %p2150_p9 = pneg %p2149_p5 }
 0xb0e   : > { %p2156_p7 = por %p2155_p3, %p2154_p2 }
 0xb10   : > { %p2157_p8 = pnand %p2156_p7, %p2150_p9 }
 0xb12   : > { %2160 = shalt.err (!%p2157_p8)
}
 0xb13   : > { %1854 = dma.vmem_to_hbm [thread:$0]  (%p2882_p4), %s2785_s13, 128, %s2783_s19, %s1508_s29  }
 0xb14 PF: > { %s2883_s16 = sld [smem:[#allocation17_spill]]  ;;  %s2884_s28 = sld [smem:[#allocation15_spill]] }
 0xb15   : > { %s2885_s20 = sld [smem:[#allocation20_spill]] }
 0xb1a   : > { %p1881_p11 = scmp.ge.s32.totalorder %s2883_s16, 2  ;;  %s1533_s30 = sand.u32 1, %s2884_s28  }
 0xb1b   : > { %p2886_p13 = scmp.ne.s32.totalorder %s2885_s20, 0  ;;  %s1534_s23 = scalar_lea.sflag [#allocation4], %s1533_s30 }
 0xb1d   : > { %p1870_p1 = pnand %p1881_p11, %p2886_p13 }
 0xb1f   : > { %2226 = dma.done.wait (!%p1870_p1), %s1534_s23, 128  }
 0xb20   : > { %2228 = vsyncadd (!%p1870_p1), %s1534_s23, 4294967168  ;;  %s2887_s28 = sld [smem:[#allocation18_spill]]  ;;  %s2888_s15 = sld [smem:[#allocation16_spill]] }
 0xb21   : > { %s2889_s27 = sld [smem:[#allocation19_spill]]  ;;  %s2890_s25 = smov %s2235_s26 }
 0xb26   : > { %p26_p0 = scmp.ge.s32.totalorder %s2887_s28, 4   ;;  %s2891_s26 = smov %s2888_s15 }
 0xb28   :  { %28 = sbr.rel (!%p26_p0) target bundleno = 8 (0x8), region = 145 }
 0xb2f   :  { %1539 = vsyncpa [#allocation3], 1 }
 0xb30   :  { %1541 = vsyncpa [#allocation3 + $0x1], 1 }
 0xb31   :  { %1542 = vsyncpa [#allocation6], 1 }
 0xb32   :  { %1543 = vsyncpa [#allocation9], 1 }
 0xb33   :  { %1544 = vsyncpa [#allocation4], 1 }
 0xb34   :  { %1546 = vsyncpa [#allocation4 + $0x1], 1 }

</bundles_post_ra>
